<compile_context>
chip_gen: v7x
topology: tpu7x:2x2x1
jax: 0.10.0
libtpu: 0.0.40
codegen_flags: <defaults>
</compile_context>

<pallas_src>
import functools

import jax
import jax.numpy as jnp
from jax.experimental import pallas as pl
from jax.experimental.pallas import tpu as pltpu


def _interp_matrix(n_src, n_dst):
    """1-D bilinear resampling weights for grid_sample(align_corners=False,
    padding_mode='zeros'). Returns (n_src, n_dst); out-of-range corner taps get
    zero weight. All coordinate math kept in f32 (exact for small integers)."""
    pos = jnp.arange(n_dst, dtype=jnp.float32)
    xn = pos / (n_dst - 1) * 2.0 - 1.0              # normalized coord in [-1, 1]
    xu = ((xn + 1.0) * n_src - 1.0) * 0.5           # align_corners=False unnormalize
    x0 = jnp.floor(xu)
    fx = xu - x0
    src = jnp.arange(n_src, dtype=jnp.float32)[:, None]
    return (jnp.where(src == x0[None, :], 1.0 - fx[None, :], 0.0)
            + jnp.where(src == x0[None, :] + 1.0, fx[None, :], 0.0))


def _pick_tile(full, prefs):
    for t in prefs:
        if t <= full and full % t == 0:
            return t
    return full


def _slice_kernel(grid_ref, rx_ref, ry_ref, guide_ref, out_ref, *, C, D, Hg):
    f32 = jnp.float32
    g = grid_ref[0]            # (C*D*Hg, Wg)   resident across the spatial tiles
    rx = rx_ref[...]           # (Wg, tW)       width interp weights for this tile
    ry = ry_ref[...]           # (tH, Hg)       height interp weights for this tile
    guide = guide_ref[0]       # (tH, tW)

    # ---- width (x) contraction on the MXU ----
    a = jnp.dot(g, rx, preferred_element_type=f32)        # (C*D*Hg, tW)

    # ---- depth (z) bilinear weights from the guidemap (data dependent) ----
    zu = (guide + 1.0) * (0.5 * D) - 0.5
    z0 = jnp.floor(zu)
    fz = zu - z0
    # plane d picks up (1 - fz) when z0 == d and fz when z0 + 1 == d;
    # out-of-range planes never match -> zeros padding, no clamp needed.
    wz = [jnp.where(z0 == d, 1.0 - fz, 0.0) + jnp.where(z0 == d - 1, fz, 0.0)
          for d in range(D)]

    # ---- height (y) contraction on the MXU, fused with depth accumulation ----
    for c in range(C):
        acc = jnp.zeros(guide.shape, f32)
        for d in range(D):
            k = c * D + d
            slab = a[k * Hg:(k + 1) * Hg, :]                        # (Hg, tW)
            plane = jnp.dot(ry, slab, preferred_element_type=f32)   # (tH, tW)
            acc = acc + plane * wz[d]
        out_ref[0, c] = acc


def slice_pallas(bilateral_grid, guidemap):
    """bilateral_grid: (N, C, D, Hg, Wg) f32; guidemap: (N, 1, H, W) f32 -> (N, C, H, W) f32."""
    N, C, D, Hg, Wg = bilateral_grid.shape
    _, _, H, W = guidemap.shape
    assert H > 1 and W > 1, "degenerate spatial dims (H==1 or W==1) not supported"

    grid_flat = bilateral_grid.reshape(N, C * D * Hg, Wg).astype(jnp.float32)
    guide = guidemap.reshape(N, H, W).astype(jnp.float32)

    # Static bilinear resize matrices, hoisted out of the kernel.
    rx = _interp_matrix(Wg, W)        # (Wg, W)
    ry = _interp_matrix(Hg, H).T      # (H, Hg)

    # Spatial tiling: bounds VMEM independent of resolution; tW a multiple of 128
    # whenever the resolution allows -> lane-dense output stores.
    tH = _pick_tile(H, (128, 64, 32, 16, 8))
    tW = _pick_tile(W, (512, 256, 128))
    nI, nJ = H // tH, W // tW

    kernel = functools.partial(_slice_kernel, C=C, D=D, Hg=Hg)
    out = pl.pallas_call(
        kernel,
        out_shape=jax.ShapeDtypeStruct((N, C, H, W), jnp.float32),
        grid_spec=pltpu.PrefetchScalarGridSpec(
            num_scalar_prefetch=0,
            grid=(N, nI, nJ),
            in_specs=[
                # Full bilateral grid per batch element; block index is constant in
                # (i, j) so Pallas skips re-DMA across the spatial tiles.
                pl.BlockSpec((1, C * D * Hg, Wg), lambda n, i, j: (n, 0, 0)),
                pl.BlockSpec((Wg, tW), lambda n, i, j: (0, j)),
                pl.BlockSpec((tH, Hg), lambda n, i, j: (i, 0)),
                pl.BlockSpec((1, tH, tW), lambda n, i, j: (n, i, j)),
            ],
            out_specs=pl.BlockSpec((1, C, tH, tW), lambda n, i, j: (n, 0, i, j)),
        ),
        compiler_params=pltpu.CompilerParams(
            # All grid axes are independent -> shard across TensorCores on v7x.
            dimension_semantics=("parallel", "parallel", "parallel"),
            # Tile caps keep peak usage well under this on every generation
            # (<= 48 MiB fits v7x's 64 MiB physical VMEM with headroom).
            vmem_limit_bytes=48 * 1024 * 1024,
        ),
    )(grid_flat, rx, ry, guide)
    return out


def slice_ref(grid, guide):
    """Pure-JAX reference: trilinear grid_sample, zeros padding, align_corners=False."""
    N, C, D, Hg, Wg = grid.shape
    H, W = guide.shape[2], guide.shape[3]
    y = jnp.broadcast_to(jnp.arange(H, dtype=jnp.float32)[:, None] / (H - 1) * 2 - 1, (H, W))
    x = jnp.broadcast_to(jnp.arange(W, dtype=jnp.float32)[None, :] / (W - 1) * 2 - 1, (H, W))
    z = guide[:, 0]
    xu = ((x + 1) * Wg - 1) / 2
    yu = ((y + 1) * Hg - 1) / 2
    zu = ((z + 1) * D - 1) / 2
    x0, y0, z0 = jnp.floor(xu), jnp.floor(yu), jnp.floor(zu)
    fx, fy, fz = xu - x0, yu - y0, zu - z0
    out = jnp.zeros((N, C, H, W), jnp.float32)
    n_i = jnp.arange(N)[:, None, None, None]
    c_i = jnp.arange(C)[None, :, None, None]
    for dz in (0, 1):
        for dy in (0, 1):
            for dx in (0, 1):
                xi, yi, zi = x0 + dx, y0 + dy, z0 + dz
                wx = fx if dx else (1 - fx)
                wy = fy if dy else (1 - fy)
                wz = fz if dz else (1 - fz)
                valid_xy = ((xi >= 0) & (xi < Wg) & (yi >= 0) & (yi < Hg)).astype(jnp.float32)
                valid_z = ((zi >= 0) & (zi < D)).astype(jnp.float32)
                xi_c = jnp.clip(xi, 0, Wg - 1).astype(jnp.int32)
                yi_c = jnp.clip(yi, 0, Hg - 1).astype(jnp.int32)
                zi_c = jnp.clip(zi, 0, D - 1).astype(jnp.int32)
                vals = grid[n_i, c_i, zi_c[:, None], yi_c[None, None], xi_c[None, None]]
                w = (wx * wy * valid_xy)[None, None] * (wz * valid_z)[:, None]
                out = out + vals * w
    return out


if __name__ == "__main__":
    key = jax.random.PRNGKey(0)
    k1, k2 = jax.random.split(key)
    N, C, D, Hg, Wg = 2, 12, 8, 16, 16   # HDRNet-style bilateral grid
    H, W = 16, 16
    bilateral_grid = jax.random.normal(k1, (N, C, D, Hg, Wg), dtype=jnp.float32)
    # NOTE: the module treats the guidemap as an already-normalized z coord in [-1, 1];
    # a [0, 1) guide (as here) only addresses the upper half of the depth bins.
    guidemap = jax.random.uniform(k2, (N, 1, H, W), dtype=jnp.float32)

    out = slice_pallas(bilateral_grid, guidemap)
    jax.block_until_ready(out)

    ref = slice_ref(bilateral_grid, guidemap)
    assert out.shape == (N, C, H, W), out.shape
    max_err = float(jnp.max(jnp.abs(out - ref)))
    assert jnp.allclose(out, ref, atol=1e-4, rtol=1e-4), max_err

    print("KERNEL_OK")
</pallas_src>

<mosaic_0001>
module attributes {stable_mosaic.version = 11 : i64} {
  func.func @_slice_kernel(%arg0: i32, %arg1: i32, %arg2: i32, %arg3: memref<1x1536x16xf32, #tpu.memory_space<vmem>>, %arg4: memref<16x16xf32, #tpu.memory_space<vmem>>, %arg5: memref<16x16xf32, #tpu.memory_space<vmem>>, %arg6: memref<1x16x16xf32, #tpu.memory_space<vmem>>, %arg7: memref<1x12x16x16xf32, #tpu.memory_space<vmem>>) attributes {dimension_semantics = [#tpu.dimension_semantics<parallel>, #tpu.dimension_semantics<parallel>, #tpu.dimension_semantics<parallel>], iteration_bounds = array<i64: 2, 1, 1>, scalar_prefetch = 0 : i64, scratch_operands = 0 : i64, tpu.core_type = #tpu.core_type<tc>, window_params = [{transform_indices = @transform_0, window_bounds = array<i64: 1, 1536, 16>}, {transform_indices = @transform_1, window_bounds = array<i64: 16, 16>}, {transform_indices = @transform_2, window_bounds = array<i64: 16, 16>}, {transform_indices = @transform_3, window_bounds = array<i64: 1, 16, 16>}, {transform_indices = @transform_4, window_bounds = array<i64: 1, 12, 16, 16>}]} {
    %c0 = arith.constant 0 : index
    %c0_0 = arith.constant 0 : index
    %c0_1 = arith.constant 0 : index
    %0 = vector.load %arg3[%c0, %c0_0, %c0_1] : memref<1x1536x16xf32, #tpu.memory_space<vmem>>, vector<1x1536x16xf32>
    %1 = vector.shape_cast %0 : vector<1x1536x16xf32> to vector<1536x16xf32>
    %c0_2 = arith.constant 0 : index
    %c0_3 = arith.constant 0 : index
    %2 = vector.load %arg4[%c0_2, %c0_3] : memref<16x16xf32, #tpu.memory_space<vmem>>, vector<16x16xf32>
    %c0_4 = arith.constant 0 : index
    %c0_5 = arith.constant 0 : index
    %3 = vector.load %arg5[%c0_4, %c0_5] : memref<16x16xf32, #tpu.memory_space<vmem>>, vector<16x16xf32>
    %c0_6 = arith.constant 0 : index
    %c0_7 = arith.constant 0 : index
    %c0_8 = arith.constant 0 : index
    %4 = vector.load %arg6[%c0_6, %c0_7, %c0_8] : memref<1x16x16xf32, #tpu.memory_space<vmem>>, vector<1x16x16xf32>
    %5 = vector.shape_cast %4 : vector<1x16x16xf32> to vector<16x16xf32>
    %cst = arith.constant dense<0.000000e+00> : vector<1536x16xf32>
    %6 = tpu.matmul %1, %2, %cst {dimension_numbers = #tpu.dot_dimension_numbers<[1], [0], [0], [1], [0, 0, 1, 1], [], []>} : vector<1536x16xf32>, vector<16x16xf32>, vector<1536x16xf32> -> vector<1536x16xf32>
    %cst_9 = arith.constant 1.000000e+00 : f32
    %7 = vector.broadcast %cst_9 : f32 to vector<16x16xf32>
    %8 = arith.addf %5, %7 : vector<16x16xf32>
    %cst_10 = arith.constant 4.000000e+00 : f32
    %9 = vector.broadcast %cst_10 : f32 to vector<16x16xf32>
    %10 = arith.mulf %8, %9 : vector<16x16xf32>
    %cst_11 = arith.constant 5.000000e-01 : f32
    %11 = vector.broadcast %cst_11 : f32 to vector<16x16xf32>
    %12 = arith.subf %10, %11 : vector<16x16xf32>
    %13 = math.floor %12 : vector<16x16xf32>
    %14 = arith.subf %12, %13 : vector<16x16xf32>
    %cst_12 = arith.constant 0.000000e+00 : f32
    %15 = vector.broadcast %cst_12 : f32 to vector<16x16xf32>
    %16 = arith.cmpf oeq, %13, %15 : vector<16x16xf32>
    %cst_13 = arith.constant 1.000000e+00 : f32
    %17 = vector.broadcast %cst_13 : f32 to vector<16x16xf32>
    %18 = arith.subf %17, %14 : vector<16x16xf32>
    %cst_14 = arith.constant 0.000000e+00 : f32
    %19 = vector.broadcast %cst_14 : f32 to vector<16x16xf32>
    %20 = arith.select %16, %18, %19 : vector<16x16xi1>, vector<16x16xf32>
    %cst_15 = arith.constant -1.000000e+00 : f32
    %21 = vector.broadcast %cst_15 : f32 to vector<16x16xf32>
    %22 = arith.cmpf oeq, %13, %21 : vector<16x16xf32>
    %cst_16 = arith.constant 0.000000e+00 : f32
    %23 = vector.broadcast %cst_16 : f32 to vector<16x16xf32>
    %24 = arith.select %22, %14, %23 : vector<16x16xi1>, vector<16x16xf32>
    %25 = arith.addf %20, %24 : vector<16x16xf32>
    %cst_17 = arith.constant 1.000000e+00 : f32
    %26 = vector.broadcast %cst_17 : f32 to vector<16x16xf32>
    %27 = arith.cmpf oeq, %13, %26 : vector<16x16xf32>
    %cst_18 = arith.constant 1.000000e+00 : f32
    %28 = vector.broadcast %cst_18 : f32 to vector<16x16xf32>
    %29 = arith.subf %28, %14 : vector<16x16xf32>
    %cst_19 = arith.constant 0.000000e+00 : f32
    %30 = vector.broadcast %cst_19 : f32 to vector<16x16xf32>
    %31 = arith.select %27, %29, %30 : vector<16x16xi1>, vector<16x16xf32>
    %cst_20 = arith.constant 0.000000e+00 : f32
    %32 = vector.broadcast %cst_20 : f32 to vector<16x16xf32>
    %33 = arith.cmpf oeq, %13, %32 : vector<16x16xf32>
    %cst_21 = arith.constant 0.000000e+00 : f32
    %34 = vector.broadcast %cst_21 : f32 to vector<16x16xf32>
    %35 = arith.select %33, %14, %34 : vector<16x16xi1>, vector<16x16xf32>
    %36 = arith.addf %31, %35 : vector<16x16xf32>
    %cst_22 = arith.constant 2.000000e+00 : f32
    %37 = vector.broadcast %cst_22 : f32 to vector<16x16xf32>
    %38 = arith.cmpf oeq, %13, %37 : vector<16x16xf32>
    %cst_23 = arith.constant 1.000000e+00 : f32
    %39 = vector.broadcast %cst_23 : f32 to vector<16x16xf32>
    %40 = arith.subf %39, %14 : vector<16x16xf32>
    %cst_24 = arith.constant 0.000000e+00 : f32
    %41 = vector.broadcast %cst_24 : f32 to vector<16x16xf32>
    %42 = arith.select %38, %40, %41 : vector<16x16xi1>, vector<16x16xf32>
    %cst_25 = arith.constant 1.000000e+00 : f32
    %43 = vector.broadcast %cst_25 : f32 to vector<16x16xf32>
    %44 = arith.cmpf oeq, %13, %43 : vector<16x16xf32>
    %cst_26 = arith.constant 0.000000e+00 : f32
    %45 = vector.broadcast %cst_26 : f32 to vector<16x16xf32>
    %46 = arith.select %44, %14, %45 : vector<16x16xi1>, vector<16x16xf32>
    %47 = arith.addf %42, %46 : vector<16x16xf32>
    %cst_27 = arith.constant 3.000000e+00 : f32
    %48 = vector.broadcast %cst_27 : f32 to vector<16x16xf32>
    %49 = arith.cmpf oeq, %13, %48 : vector<16x16xf32>
    %cst_28 = arith.constant 1.000000e+00 : f32
    %50 = vector.broadcast %cst_28 : f32 to vector<16x16xf32>
    %51 = arith.subf %50, %14 : vector<16x16xf32>
    %cst_29 = arith.constant 0.000000e+00 : f32
    %52 = vector.broadcast %cst_29 : f32 to vector<16x16xf32>
    %53 = arith.select %49, %51, %52 : vector<16x16xi1>, vector<16x16xf32>
    %cst_30 = arith.constant 2.000000e+00 : f32
    %54 = vector.broadcast %cst_30 : f32 to vector<16x16xf32>
    %55 = arith.cmpf oeq, %13, %54 : vector<16x16xf32>
    %cst_31 = arith.constant 0.000000e+00 : f32
    %56 = vector.broadcast %cst_31 : f32 to vector<16x16xf32>
    %57 = arith.select %55, %14, %56 : vector<16x16xi1>, vector<16x16xf32>
    %58 = arith.addf %53, %57 : vector<16x16xf32>
    %cst_32 = arith.constant 4.000000e+00 : f32
    %59 = vector.broadcast %cst_32 : f32 to vector<16x16xf32>
    %60 = arith.cmpf oeq, %13, %59 : vector<16x16xf32>
    %cst_33 = arith.constant 1.000000e+00 : f32
    %61 = vector.broadcast %cst_33 : f32 to vector<16x16xf32>
    %62 = arith.subf %61, %14 : vector<16x16xf32>
    %cst_34 = arith.constant 0.000000e+00 : f32
    %63 = vector.broadcast %cst_34 : f32 to vector<16x16xf32>
    %64 = arith.select %60, %62, %63 : vector<16x16xi1>, vector<16x16xf32>
    %cst_35 = arith.constant 3.000000e+00 : f32
    %65 = vector.broadcast %cst_35 : f32 to vector<16x16xf32>
    %66 = arith.cmpf oeq, %13, %65 : vector<16x16xf32>
    %cst_36 = arith.constant 0.000000e+00 : f32
    %67 = vector.broadcast %cst_36 : f32 to vector<16x16xf32>
    %68 = arith.select %66, %14, %67 : vector<16x16xi1>, vector<16x16xf32>
    %69 = arith.addf %64, %68 : vector<16x16xf32>
    %cst_37 = arith.constant 5.000000e+00 : f32
    %70 = vector.broadcast %cst_37 : f32 to vector<16x16xf32>
    %71 = arith.cmpf oeq, %13, %70 : vector<16x16xf32>
    %cst_38 = arith.constant 1.000000e+00 : f32
    %72 = vector.broadcast %cst_38 : f32 to vector<16x16xf32>
    %73 = arith.subf %72, %14 : vector<16x16xf32>
    %cst_39 = arith.constant 0.000000e+00 : f32
    %74 = vector.broadcast %cst_39 : f32 to vector<16x16xf32>
    %75 = arith.select %71, %73, %74 : vector<16x16xi1>, vector<16x16xf32>
    %cst_40 = arith.constant 4.000000e+00 : f32
    %76 = vector.broadcast %cst_40 : f32 to vector<16x16xf32>
    %77 = arith.cmpf oeq, %13, %76 : vector<16x16xf32>
    %cst_41 = arith.constant 0.000000e+00 : f32
    %78 = vector.broadcast %cst_41 : f32 to vector<16x16xf32>
    %79 = arith.select %77, %14, %78 : vector<16x16xi1>, vector<16x16xf32>
    %80 = arith.addf %75, %79 : vector<16x16xf32>
    %cst_42 = arith.constant 6.000000e+00 : f32
    %81 = vector.broadcast %cst_42 : f32 to vector<16x16xf32>
    %82 = arith.cmpf oeq, %13, %81 : vector<16x16xf32>
    %cst_43 = arith.constant 1.000000e+00 : f32
    %83 = vector.broadcast %cst_43 : f32 to vector<16x16xf32>
    %84 = arith.subf %83, %14 : vector<16x16xf32>
    %cst_44 = arith.constant 0.000000e+00 : f32
    %85 = vector.broadcast %cst_44 : f32 to vector<16x16xf32>
    %86 = arith.select %82, %84, %85 : vector<16x16xi1>, vector<16x16xf32>
    %cst_45 = arith.constant 5.000000e+00 : f32
    %87 = vector.broadcast %cst_45 : f32 to vector<16x16xf32>
    %88 = arith.cmpf oeq, %13, %87 : vector<16x16xf32>
    %cst_46 = arith.constant 0.000000e+00 : f32
    %89 = vector.broadcast %cst_46 : f32 to vector<16x16xf32>
    %90 = arith.select %88, %14, %89 : vector<16x16xi1>, vector<16x16xf32>
    %91 = arith.addf %86, %90 : vector<16x16xf32>
    %cst_47 = arith.constant 7.000000e+00 : f32
    %92 = vector.broadcast %cst_47 : f32 to vector<16x16xf32>
    %93 = arith.cmpf oeq, %13, %92 : vector<16x16xf32>
    %cst_48 = arith.constant 1.000000e+00 : f32
    %94 = vector.broadcast %cst_48 : f32 to vector<16x16xf32>
    %95 = arith.subf %94, %14 : vector<16x16xf32>
    %cst_49 = arith.constant 0.000000e+00 : f32
    %96 = vector.broadcast %cst_49 : f32 to vector<16x16xf32>
    %97 = arith.select %93, %95, %96 : vector<16x16xi1>, vector<16x16xf32>
    %cst_50 = arith.constant 6.000000e+00 : f32
    %98 = vector.broadcast %cst_50 : f32 to vector<16x16xf32>
    %99 = arith.cmpf oeq, %13, %98 : vector<16x16xf32>
    %cst_51 = arith.constant 0.000000e+00 : f32
    %100 = vector.broadcast %cst_51 : f32 to vector<16x16xf32>
    %101 = arith.select %99, %14, %100 : vector<16x16xi1>, vector<16x16xf32>
    %102 = arith.addf %97, %101 : vector<16x16xf32>
    %cst_52 = arith.constant 0.000000e+00 : f32
    %103 = vector.broadcast %cst_52 : f32 to vector<16x16xf32>
    %104 = vector.extract_strided_slice %6 {offsets = [0, 0], sizes = [16, 16], strides = [1, 1]} : vector<1536x16xf32> to vector<16x16xf32>
    %cst_53 = arith.constant dense<0.000000e+00> : vector<16x16xf32>
    %105 = tpu.matmul %3, %104, %cst_53 {dimension_numbers = #tpu.dot_dimension_numbers<[1], [0], [0], [1], [0, 0, 1, 1], [], []>} : vector<16x16xf32>, vector<16x16xf32>, vector<16x16xf32> -> vector<16x16xf32>
    %106 = arith.mulf %105, %25 : vector<16x16xf32>
    %107 = arith.addf %103, %106 : vector<16x16xf32>
    %108 = vector.extract_strided_slice %6 {offsets = [16, 0], sizes = [16, 16], strides = [1, 1]} : vector<1536x16xf32> to vector<16x16xf32>
    %cst_54 = arith.constant dense<0.000000e+00> : vector<16x16xf32>
    %109 = tpu.matmul %3, %108, %cst_54 {dimension_numbers = #tpu.dot_dimension_numbers<[1], [0], [0], [1], [0, 0, 1, 1], [], []>} : vector<16x16xf32>, vector<16x16xf32>, vector<16x16xf32> -> vector<16x16xf32>
    %110 = arith.mulf %109, %36 : vector<16x16xf32>
    %111 = arith.addf %107, %110 : vector<16x16xf32>
    %112 = vector.extract_strided_slice %6 {offsets = [32, 0], sizes = [16, 16], strides = [1, 1]} : vector<1536x16xf32> to vector<16x16xf32>
    %cst_55 = arith.constant dense<0.000000e+00> : vector<16x16xf32>
    %113 = tpu.matmul %3, %112, %cst_55 {dimension_numbers = #tpu.dot_dimension_numbers<[1], [0], [0], [1], [0, 0, 1, 1], [], []>} : vector<16x16xf32>, vector<16x16xf32>, vector<16x16xf32> -> vector<16x16xf32>
    %114 = arith.mulf %113, %47 : vector<16x16xf32>
    %115 = arith.addf %111, %114 : vector<16x16xf32>
    %116 = vector.extract_strided_slice %6 {offsets = [48, 0], sizes = [16, 16], strides = [1, 1]} : vector<1536x16xf32> to vector<16x16xf32>
    %cst_56 = arith.constant dense<0.000000e+00> : vector<16x16xf32>
    %117 = tpu.matmul %3, %116, %cst_56 {dimension_numbers = #tpu.dot_dimension_numbers<[1], [0], [0], [1], [0, 0, 1, 1], [], []>} : vector<16x16xf32>, vector<16x16xf32>, vector<16x16xf32> -> vector<16x16xf32>
    %118 = arith.mulf %117, %58 : vector<16x16xf32>
    %119 = arith.addf %115, %118 : vector<16x16xf32>
    %120 = vector.extract_strided_slice %6 {offsets = [64, 0], sizes = [16, 16], strides = [1, 1]} : vector<1536x16xf32> to vector<16x16xf32>
    %cst_57 = arith.constant dense<0.000000e+00> : vector<16x16xf32>
    %121 = tpu.matmul %3, %120, %cst_57 {dimension_numbers = #tpu.dot_dimension_numbers<[1], [0], [0], [1], [0, 0, 1, 1], [], []>} : vector<16x16xf32>, vector<16x16xf32>, vector<16x16xf32> -> vector<16x16xf32>
    %122 = arith.mulf %121, %69 : vector<16x16xf32>
    %123 = arith.addf %119, %122 : vector<16x16xf32>
    %124 = vector.extract_strided_slice %6 {offsets = [80, 0], sizes = [16, 16], strides = [1, 1]} : vector<1536x16xf32> to vector<16x16xf32>
    %cst_58 = arith.constant dense<0.000000e+00> : vector<16x16xf32>
    %125 = tpu.matmul %3, %124, %cst_58 {dimension_numbers = #tpu.dot_dimension_numbers<[1], [0], [0], [1], [0, 0, 1, 1], [], []>} : vector<16x16xf32>, vector<16x16xf32>, vector<16x16xf32> -> vector<16x16xf32>
    %126 = arith.mulf %125, %80 : vector<16x16xf32>
    %127 = arith.addf %123, %126 : vector<16x16xf32>
    %128 = vector.extract_strided_slice %6 {offsets = [96, 0], sizes = [16, 16], strides = [1, 1]} : vector<1536x16xf32> to vector<16x16xf32>
    %cst_59 = arith.constant dense<0.000000e+00> : vector<16x16xf32>
    %129 = tpu.matmul %3, %128, %cst_59 {dimension_numbers = #tpu.dot_dimension_numbers<[1], [0], [0], [1], [0, 0, 1, 1], [], []>} : vector<16x16xf32>, vector<16x16xf32>, vector<16x16xf32> -> vector<16x16xf32>
    %130 = arith.mulf %129, %91 : vector<16x16xf32>
    %131 = arith.addf %127, %130 : vector<16x16xf32>
    %132 = vector.extract_strided_slice %6 {offsets = [112, 0], sizes = [16, 16], strides = [1, 1]} : vector<1536x16xf32> to vector<16x16xf32>
    %cst_60 = arith.constant dense<0.000000e+00> : vector<16x16xf32>
    %133 = tpu.matmul %3, %132, %cst_60 {dimension_numbers = #tpu.dot_dimension_numbers<[1], [0], [0], [1], [0, 0, 1, 1], [], []>} : vector<16x16xf32>, vector<16x16xf32>, vector<16x16xf32> -> vector<16x16xf32>
    %134 = arith.mulf %133, %102 : vector<16x16xf32>
    %135 = arith.addf %131, %134 : vector<16x16xf32>
    %c0_61 = arith.constant 0 : index
    %c0_62 = arith.constant 0 : index
    %c0_63 = arith.constant 0 : index
    %c0_64 = arith.constant 0 : index
    %136 = vector.load %arg7[%c0_61, %c0_62, %c0_63, %c0_64] : memref<1x12x16x16xf32, #tpu.memory_space<vmem>>, vector<1x1x16x16xf32>
    %137 = vector.shape_cast %136 : vector<1x1x16x16xf32> to vector<16x16xf32>
    %138 = vector.shape_cast %135 : vector<16x16xf32> to vector<1x1x16x16xf32>
    tpu.vector_store %arg7[%c0_61, %c0_62, %c0_63, %c0_64], %138 {strides = array<i32>} : memref<1x12x16x16xf32, #tpu.memory_space<vmem>>, vector<1x1x16x16xf32>,
    %cst_65 = arith.constant 0.000000e+00 : f32
    %139 = vector.broadcast %cst_65 : f32 to vector<16x16xf32>
    %140 = vector.extract_strided_slice %6 {offsets = [128, 0], sizes = [16, 16], strides = [1, 1]} : vector<1536x16xf32> to vector<16x16xf32>
    %cst_66 = arith.constant dense<0.000000e+00> : vector<16x16xf32>
    %141 = tpu.matmul %3, %140, %cst_66 {dimension_numbers = #tpu.dot_dimension_numbers<[1], [0], [0], [1], [0, 0, 1, 1], [], []>} : vector<16x16xf32>, vector<16x16xf32>, vector<16x16xf32> -> vector<16x16xf32>
    %142 = arith.mulf %141, %25 : vector<16x16xf32>
    %143 = arith.addf %139, %142 : vector<16x16xf32>
    %144 = vector.extract_strided_slice %6 {offsets = [144, 0], sizes = [16, 16], strides = [1, 1]} : vector<1536x16xf32> to vector<16x16xf32>
    %cst_67 = arith.constant dense<0.000000e+00> : vector<16x16xf32>
    %145 = tpu.matmul %3, %144, %cst_67 {dimension_numbers = #tpu.dot_dimension_numbers<[1], [0], [0], [1], [0, 0, 1, 1], [], []>} : vector<16x16xf32>, vector<16x16xf32>, vector<16x16xf32> -> vector<16x16xf32>
    %146 = arith.mulf %145, %36 : vector<16x16xf32>
    %147 = arith.addf %143, %146 : vector<16x16xf32>
    %148 = vector.extract_strided_slice %6 {offsets = [160, 0], sizes = [16, 16], strides = [1, 1]} : vector<1536x16xf32> to vector<16x16xf32>
    %cst_68 = arith.constant dense<0.000000e+00> : vector<16x16xf32>
    %149 = tpu.matmul %3, %148, %cst_68 {dimension_numbers = #tpu.dot_dimension_numbers<[1], [0], [0], [1], [0, 0, 1, 1], [], []>} : vector<16x16xf32>, vector<16x16xf32>, vector<16x16xf32> -> vector<16x16xf32>
    %150 = arith.mulf %149, %47 : vector<16x16xf32>
    %151 = arith.addf %147, %150 : vector<16x16xf32>
    %152 = vector.extract_strided_slice %6 {offsets = [176, 0], sizes = [16, 16], strides = [1, 1]} : vector<1536x16xf32> to vector<16x16xf32>
    %cst_69 = arith.constant dense<0.000000e+00> : vector<16x16xf32>
    %153 = tpu.matmul %3, %152, %cst_69 {dimension_numbers = #tpu.dot_dimension_numbers<[1], [0], [0], [1], [0, 0, 1, 1], [], []>} : vector<16x16xf32>, vector<16x16xf32>, vector<16x16xf32> -> vector<16x16xf32>
    %154 = arith.mulf %153, %58 : vector<16x16xf32>
    %155 = arith.addf %151, %154 : vector<16x16xf32>
    %156 = vector.extract_strided_slice %6 {offsets = [192, 0], sizes = [16, 16], strides = [1, 1]} : vector<1536x16xf32> to vector<16x16xf32>
    %cst_70 = arith.constant dense<0.000000e+00> : vector<16x16xf32>
    %157 = tpu.matmul %3, %156, %cst_70 {dimension_numbers = #tpu.dot_dimension_numbers<[1], [0], [0], [1], [0, 0, 1, 1], [], []>} : vector<16x16xf32>, vector<16x16xf32>, vector<16x16xf32> -> vector<16x16xf32>
    %158 = arith.mulf %157, %69 : vector<16x16xf32>
    %159 = arith.addf %155, %158 : vector<16x16xf32>
    %160 = vector.extract_strided_slice %6 {offsets = [208, 0], sizes = [16, 16], strides = [1, 1]} : vector<1536x16xf32> to vector<16x16xf32>
    %cst_71 = arith.constant dense<0.000000e+00> : vector<16x16xf32>
    %161 = tpu.matmul %3, %160, %cst_71 {dimension_numbers = #tpu.dot_dimension_numbers<[1], [0], [0], [1], [0, 0, 1, 1], [], []>} : vector<16x16xf32>, vector<16x16xf32>, vector<16x16xf32> -> vector<16x16xf32>
    %162 = arith.mulf %161, %80 : vector<16x16xf32>
    %163 = arith.addf %159, %162 : vector<16x16xf32>
    %164 = vector.extract_strided_slice %6 {offsets = [224, 0], sizes = [16, 16], strides = [1, 1]} : vector<1536x16xf32> to vector<16x16xf32>
    %cst_72 = arith.constant dense<0.000000e+00> : vector<16x16xf32>
    %165 = tpu.matmul %3, %164, %cst_72 {dimension_numbers = #tpu.dot_dimension_numbers<[1], [0], [0], [1], [0, 0, 1, 1], [], []>} : vector<16x16xf32>, vector<16x16xf32>, vector<16x16xf32> -> vector<16x16xf32>
    %166 = arith.mulf %165, %91 : vector<16x16xf32>
    %167 = arith.addf %163, %166 : vector<16x16xf32>
    %168 = vector.extract_strided_slice %6 {offsets = [240, 0], sizes = [16, 16], strides = [1, 1]} : vector<1536x16xf32> to vector<16x16xf32>
    %cst_73 = arith.constant dense<0.000000e+00> : vector<16x16xf32>
    %169 = tpu.matmul %3, %168, %cst_73 {dimension_numbers = #tpu.dot_dimension_numbers<[1], [0], [0], [1], [0, 0, 1, 1], [], []>} : vector<16x16xf32>, vector<16x16xf32>, vector<16x16xf32> -> vector<16x16xf32>
    %170 = arith.mulf %169, %102 : vector<16x16xf32>
    %171 = arith.addf %167, %170 : vector<16x16xf32>
    %c0_74 = arith.constant 0 : index
    %c1 = arith.constant 1 : index
    %c0_75 = arith.constant 0 : index
    %c0_76 = arith.constant 0 : index
    %172 = vector.load %arg7[%c0_74, %c1, %c0_75, %c0_76] : memref<1x12x16x16xf32, #tpu.memory_space<vmem>>, vector<1x1x16x16xf32>
    %173 = vector.shape_cast %172 : vector<1x1x16x16xf32> to vector<16x16xf32>
    %174 = vector.shape_cast %171 : vector<16x16xf32> to vector<1x1x16x16xf32>
    tpu.vector_store %arg7[%c0_74, %c1, %c0_75, %c0_76], %174 {strides = array<i32>} : memref<1x12x16x16xf32, #tpu.memory_space<vmem>>, vector<1x1x16x16xf32>,
    %cst_77 = arith.constant 0.000000e+00 : f32
    %175 = vector.broadcast %cst_77 : f32 to vector<16x16xf32>
    %176 = vector.extract_strided_slice %6 {offsets = [256, 0], sizes = [16, 16], strides = [1, 1]} : vector<1536x16xf32> to vector<16x16xf32>
    %cst_78 = arith.constant dense<0.000000e+00> : vector<16x16xf32>
    %177 = tpu.matmul %3, %176, %cst_78 {dimension_numbers = #tpu.dot_dimension_numbers<[1], [0], [0], [1], [0, 0, 1, 1], [], []>} : vector<16x16xf32>, vector<16x16xf32>, vector<16x16xf32> -> vector<16x16xf32>
    %178 = arith.mulf %177, %25 : vector<16x16xf32>
    %179 = arith.addf %175, %178 : vector<16x16xf32>
    %180 = vector.extract_strided_slice %6 {offsets = [272, 0], sizes = [16, 16], strides = [1, 1]} : vector<1536x16xf32> to vector<16x16xf32>
    %cst_79 = arith.constant dense<0.000000e+00> : vector<16x16xf32>
    %181 = tpu.matmul %3, %180, %cst_79 {dimension_numbers = #tpu.dot_dimension_numbers<[1], [0], [0], [1], [0, 0, 1, 1], [], []>} : vector<16x16xf32>, vector<16x16xf32>, vector<16x16xf32> -> vector<16x16xf32>
    %182 = arith.mulf %181, %36 : vector<16x16xf32>
    %183 = arith.addf %179, %182 : vector<16x16xf32>
    %184 = vector.extract_strided_slice %6 {offsets = [288, 0], sizes = [16, 16], strides = [1, 1]} : vector<1536x16xf32> to vector<16x16xf32>
    %cst_80 = arith.constant dense<0.000000e+00> : vector<16x16xf32>
    %185 = tpu.matmul %3, %184, %cst_80 {dimension_numbers = #tpu.dot_dimension_numbers<[1], [0], [0], [1], [0, 0, 1, 1], [], []>} : vector<16x16xf32>, vector<16x16xf32>, vector<16x16xf32> -> vector<16x16xf32>
    %186 = arith.mulf %185, %47 : vector<16x16xf32>
    %187 = arith.addf %183, %186 : vector<16x16xf32>
    %188 = vector.extract_strided_slice %6 {offsets = [304, 0], sizes = [16, 16], strides = [1, 1]} : vector<1536x16xf32> to vector<16x16xf32>
    %cst_81 = arith.constant dense<0.000000e+00> : vector<16x16xf32>
    %189 = tpu.matmul %3, %188, %cst_81 {dimension_numbers = #tpu.dot_dimension_numbers<[1], [0], [0], [1], [0, 0, 1, 1], [], []>} : vector<16x16xf32>, vector<16x16xf32>, vector<16x16xf32> -> vector<16x16xf32>
    %190 = arith.mulf %189, %58 : vector<16x16xf32>
    %191 = arith.addf %187, %190 : vector<16x16xf32>
    %192 = vector.extract_strided_slice %6 {offsets = [320, 0], sizes = [16, 16], strides = [1, 1]} : vector<1536x16xf32> to vector<16x16xf32>
    %cst_82 = arith.constant dense<0.000000e+00> : vector<16x16xf32>
    %193 = tpu.matmul %3, %192, %cst_82 {dimension_numbers = #tpu.dot_dimension_numbers<[1], [0], [0], [1], [0, 0, 1, 1], [], []>} : vector<16x16xf32>, vector<16x16xf32>, vector<16x16xf32> -> vector<16x16xf32>
    %194 = arith.mulf %193, %69 : vector<16x16xf32>
    %195 = arith.addf %191, %194 : vector<16x16xf32>
    %196 = vector.extract_strided_slice %6 {offsets = [336, 0], sizes = [16, 16], strides = [1, 1]} : vector<1536x16xf32> to vector<16x16xf32>
    %cst_83 = arith.constant dense<0.000000e+00> : vector<16x16xf32>
    %197 = tpu.matmul %3, %196, %cst_83 {dimension_numbers = #tpu.dot_dimension_numbers<[1], [0], [0], [1], [0, 0, 1, 1], [], []>} : vector<16x16xf32>, vector<16x16xf32>, vector<16x16xf32> -> vector<16x16xf32>
    %198 = arith.mulf %197, %80 : vector<16x16xf32>
    %199 = arith.addf %195, %198 : vector<16x16xf32>
    %200 = vector.extract_strided_slice %6 {offsets = [352, 0], sizes = [16, 16], strides = [1, 1]} : vector<1536x16xf32> to vector<16x16xf32>
    %cst_84 = arith.constant dense<0.000000e+00> : vector<16x16xf32>
    %201 = tpu.matmul %3, %200, %cst_84 {dimension_numbers = #tpu.dot_dimension_numbers<[1], [0], [0], [1], [0, 0, 1, 1], [], []>} : vector<16x16xf32>, vector<16x16xf32>, vector<16x16xf32> -> vector<16x16xf32>
    %202 = arith.mulf %201, %91 : vector<16x16xf32>
    %203 = arith.addf %199, %202 : vector<16x16xf32>
    %204 = vector.extract_strided_slice %6 {offsets = [368, 0], sizes = [16, 16], strides = [1, 1]} : vector<1536x16xf32> to vector<16x16xf32>
    %cst_85 = arith.constant dense<0.000000e+00> : vector<16x16xf32>
    %205 = tpu.matmul %3, %204, %cst_85 {dimension_numbers = #tpu.dot_dimension_numbers<[1], [0], [0], [1], [0, 0, 1, 1], [], []>} : vector<16x16xf32>, vector<16x16xf32>, vector<16x16xf32> -> vector<16x16xf32>
    %206 = arith.mulf %205, %102 : vector<16x16xf32>
    %207 = arith.addf %203, %206 : vector<16x16xf32>
    %c0_86 = arith.constant 0 : index
    %c2 = arith.constant 2 : index
    %c0_87 = arith.constant 0 : index
    %c0_88 = arith.constant 0 : index
    %208 = vector.load %arg7[%c0_86, %c2, %c0_87, %c0_88] : memref<1x12x16x16xf32, #tpu.memory_space<vmem>>, vector<1x1x16x16xf32>
    %209 = vector.shape_cast %208 : vector<1x1x16x16xf32> to vector<16x16xf32>
    %210 = vector.shape_cast %207 : vector<16x16xf32> to vector<1x1x16x16xf32>
    tpu.vector_store %arg7[%c0_86, %c2, %c0_87, %c0_88], %210 {strides = array<i32>} : memref<1x12x16x16xf32, #tpu.memory_space<vmem>>, vector<1x1x16x16xf32>,
    %cst_89 = arith.constant 0.000000e+00 : f32
    %211 = vector.broadcast %cst_89 : f32 to vector<16x16xf32>
    %212 = vector.extract_strided_slice %6 {offsets = [384, 0], sizes = [16, 16], strides = [1, 1]} : vector<1536x16xf32> to vector<16x16xf32>
    %cst_90 = arith.constant dense<0.000000e+00> : vector<16x16xf32>
    %213 = tpu.matmul %3, %212, %cst_90 {dimension_numbers = #tpu.dot_dimension_numbers<[1], [0], [0], [1], [0, 0, 1, 1], [], []>} : vector<16x16xf32>, vector<16x16xf32>, vector<16x16xf32> -> vector<16x16xf32>
    %214 = arith.mulf %213, %25 : vector<16x16xf32>
    %215 = arith.addf %211, %214 : vector<16x16xf32>
    %216 = vector.extract_strided_slice %6 {offsets = [400, 0], sizes = [16, 16], strides = [1, 1]} : vector<1536x16xf32> to vector<16x16xf32>
    %cst_91 = arith.constant dense<0.000000e+00> : vector<16x16xf32>
    %217 = tpu.matmul %3, %216, %cst_91 {dimension_numbers = #tpu.dot_dimension_numbers<[1], [0], [0], [1], [0, 0, 1, 1], [], []>} : vector<16x16xf32>, vector<16x16xf32>, vector<16x16xf32> -> vector<16x16xf32>
    %218 = arith.mulf %217, %36 : vector<16x16xf32>
    %219 = arith.addf %215, %218 : vector<16x16xf32>
    %220 = vector.extract_strided_slice %6 {offsets = [416, 0], sizes = [16, 16], strides = [1, 1]} : vector<1536x16xf32> to vector<16x16xf32>
    %cst_92 = arith.constant dense<0.000000e+00> : vector<16x16xf32>
    %221 = tpu.matmul %3, %220, %cst_92 {dimension_numbers = #tpu.dot_dimension_numbers<[1], [0], [0], [1], [0, 0, 1, 1], [], []>} : vector<16x16xf32>, vector<16x16xf32>, vector<16x16xf32> -> vector<16x16xf32>
    %222 = arith.mulf %221, %47 : vector<16x16xf32>
    %223 = arith.addf %219, %222 : vector<16x16xf32>
    %224 = vector.extract_strided_slice %6 {offsets = [432, 0], sizes = [16, 16], strides = [1, 1]} : vector<1536x16xf32> to vector<16x16xf32>
    %cst_93 = arith.constant dense<0.000000e+00> : vector<16x16xf32>
    %225 = tpu.matmul %3, %224, %cst_93 {dimension_numbers = #tpu.dot_dimension_numbers<[1], [0], [0], [1], [0, 0, 1, 1], [], []>} : vector<16x16xf32>, vector<16x16xf32>, vector<16x16xf32> -> vector<16x16xf32>
    %226 = arith.mulf %225, %58 : vector<16x16xf32>
    %227 = arith.addf %223, %226 : vector<16x16xf32>
    %228 = vector.extract_strided_slice %6 {offsets = [448, 0], sizes = [16, 16], strides = [1, 1]} : vector<1536x16xf32> to vector<16x16xf32>
    %cst_94 = arith.constant dense<0.000000e+00> : vector<16x16xf32>
    %229 = tpu.matmul %3, %228, %cst_94 {dimension_numbers = #tpu.dot_dimension_numbers<[1], [0], [0], [1], [0, 0, 1, 1], [], []>} : vector<16x16xf32>, vector<16x16xf32>, vector<16x16xf32> -> vector<16x16xf32>
    %230 = arith.mulf %229, %69 : vector<16x16xf32>
    %231 = arith.addf %227, %230 : vector<16x16xf32>
    %232 = vector.extract_strided_slice %6 {offsets = [464, 0], sizes = [16, 16], strides = [1, 1]} : vector<1536x16xf32> to vector<16x16xf32>
    %cst_95 = arith.constant dense<0.000000e+00> : vector<16x16xf32>
    %233 = tpu.matmul %3, %232, %cst_95 {dimension_numbers = #tpu.dot_dimension_numbers<[1], [0], [0], [1], [0, 0, 1, 1], [], []>} : vector<16x16xf32>, vector<16x16xf32>, vector<16x16xf32> -> vector<16x16xf32>
    %234 = arith.mulf %233, %80 : vector<16x16xf32>
    %235 = arith.addf %231, %234 : vector<16x16xf32>
    %236 = vector.extract_strided_slice %6 {offsets = [480, 0], sizes = [16, 16], strides = [1, 1]} : vector<1536x16xf32> to vector<16x16xf32>
    %cst_96 = arith.constant dense<0.000000e+00> : vector<16x16xf32>
    %237 = tpu.matmul %3, %236, %cst_96 {dimension_numbers = #tpu.dot_dimension_numbers<[1], [0], [0], [1], [0, 0, 1, 1], [], []>} : vector<16x16xf32>, vector<16x16xf32>, vector<16x16xf32> -> vector<16x16xf32>
    %238 = arith.mulf %237, %91 : vector<16x16xf32>
    %239 = arith.addf %235, %238 : vector<16x16xf32>
    %240 = vector.extract_strided_slice %6 {offsets = [496, 0], sizes = [16, 16], strides = [1, 1]} : vector<1536x16xf32> to vector<16x16xf32>
    %cst_97 = arith.constant dense<0.000000e+00> : vector<16x16xf32>
    %241 = tpu.matmul %3, %240, %cst_97 {dimension_numbers = #tpu.dot_dimension_numbers<[1], [0], [0], [1], [0, 0, 1, 1], [], []>} : vector<16x16xf32>, vector<16x16xf32>, vector<16x16xf32> -> vector<16x16xf32>
    %242 = arith.mulf %241, %102 : vector<16x16xf32>
    %243 = arith.addf %239, %242 : vector<16x16xf32>
    %c0_98 = arith.constant 0 : index
    %c3 = arith.constant 3 : index
    %c0_99 = arith.constant 0 : index
    %c0_100 = arith.constant 0 : index
    %244 = vector.load %arg7[%c0_98, %c3, %c0_99, %c0_100] : memref<1x12x16x16xf32, #tpu.memory_space<vmem>>, vector<1x1x16x16xf32>
    %245 = vector.shape_cast %244 : vector<1x1x16x16xf32> to vector<16x16xf32>
    %246 = vector.shape_cast %243 : vector<16x16xf32> to vector<1x1x16x16xf32>
    tpu.vector_store %arg7[%c0_98, %c3, %c0_99, %c0_100], %246 {strides = array<i32>} : memref<1x12x16x16xf32, #tpu.memory_space<vmem>>, vector<1x1x16x16xf32>,
    %cst_101 = arith.constant 0.000000e+00 : f32
    %247 = vector.broadcast %cst_101 : f32 to vector<16x16xf32>
    %248 = vector.extract_strided_slice %6 {offsets = [512, 0], sizes = [16, 16], strides = [1, 1]} : vector<1536x16xf32> to vector<16x16xf32>
    %cst_102 = arith.constant dense<0.000000e+00> : vector<16x16xf32>
    %249 = tpu.matmul %3, %248, %cst_102 {dimension_numbers = #tpu.dot_dimension_numbers<[1], [0], [0], [1], [0, 0, 1, 1], [], []>} : vector<16x16xf32>, vector<16x16xf32>, vector<16x16xf32> -> vector<16x16xf32>
    %250 = arith.mulf %249, %25 : vector<16x16xf32>
    %251 = arith.addf %247, %250 : vector<16x16xf32>
    %252 = vector.extract_strided_slice %6 {offsets = [528, 0], sizes = [16, 16], strides = [1, 1]} : vector<1536x16xf32> to vector<16x16xf32>
    %cst_103 = arith.constant dense<0.000000e+00> : vector<16x16xf32>
    %253 = tpu.matmul %3, %252, %cst_103 {dimension_numbers = #tpu.dot_dimension_numbers<[1], [0], [0], [1], [0, 0, 1, 1], [], []>} : vector<16x16xf32>, vector<16x16xf32>, vector<16x16xf32> -> vector<16x16xf32>
    %254 = arith.mulf %253, %36 : vector<16x16xf32>
    %255 = arith.addf %251, %254 : vector<16x16xf32>
    %256 = vector.extract_strided_slice %6 {offsets = [544, 0], sizes = [16, 16], strides = [1, 1]} : vector<1536x16xf32> to vector<16x16xf32>
    %cst_104 = arith.constant dense<0.000000e+00> : vector<16x16xf32>
    %257 = tpu.matmul %3, %256, %cst_104 {dimension_numbers = #tpu.dot_dimension_numbers<[1], [0], [0], [1], [0, 0, 1, 1], [], []>} : vector<16x16xf32>, vector<16x16xf32>, vector<16x16xf32> -> vector<16x16xf32>
    %258 = arith.mulf %257, %47 : vector<16x16xf32>
    %259 = arith.addf %255, %258 : vector<16x16xf32>
    %260 = vector.extract_strided_slice %6 {offsets = [560, 0], sizes = [16, 16], strides = [1, 1]} : vector<1536x16xf32> to vector<16x16xf32>
    %cst_105 = arith.constant dense<0.000000e+00> : vector<16x16xf32>
    %261 = tpu.matmul %3, %260, %cst_105 {dimension_numbers = #tpu.dot_dimension_numbers<[1], [0], [0], [1], [0, 0, 1, 1], [], []>} : vector<16x16xf32>, vector<16x16xf32>, vector<16x16xf32> -> vector<16x16xf32>
    %262 = arith.mulf %261, %58 : vector<16x16xf32>
    %263 = arith.addf %259, %262 : vector<16x16xf32>
    %264 = vector.extract_strided_slice %6 {offsets = [576, 0], sizes = [16, 16], strides = [1, 1]} : vector<1536x16xf32> to vector<16x16xf32>
    %cst_106 = arith.constant dense<0.000000e+00> : vector<16x16xf32>
    %265 = tpu.matmul %3, %264, %cst_106 {dimension_numbers = #tpu.dot_dimension_numbers<[1], [0], [0], [1], [0, 0, 1, 1], [], []>} : vector<16x16xf32>, vector<16x16xf32>, vector<16x16xf32> -> vector<16x16xf32>
    %266 = arith.mulf %265, %69 : vector<16x16xf32>
    %267 = arith.addf %263, %266 : vector<16x16xf32>
    %268 = vector.extract_strided_slice %6 {offsets = [592, 0], sizes = [16, 16], strides = [1, 1]} : vector<1536x16xf32> to vector<16x16xf32>
    %cst_107 = arith.constant dense<0.000000e+00> : vector<16x16xf32>
    %269 = tpu.matmul %3, %268, %cst_107 {dimension_numbers = #tpu.dot_dimension_numbers<[1], [0], [0], [1], [0, 0, 1, 1], [], []>} : vector<16x16xf32>, vector<16x16xf32>, vector<16x16xf32> -> vector<16x16xf32>
    %270 = arith.mulf %269, %80 : vector<16x16xf32>
    %271 = arith.addf %267, %270 : vector<16x16xf32>
    %272 = vector.extract_strided_slice %6 {offsets = [608, 0], sizes = [16, 16], strides = [1, 1]} : vector<1536x16xf32> to vector<16x16xf32>
    %cst_108 = arith.constant dense<0.000000e+00> : vector<16x16xf32>
    %273 = tpu.matmul %3, %272, %cst_108 {dimension_numbers = #tpu.dot_dimension_numbers<[1], [0], [0], [1], [0, 0, 1, 1], [], []>} : vector<16x16xf32>, vector<16x16xf32>, vector<16x16xf32> -> vector<16x16xf32>
    %274 = arith.mulf %273, %91 : vector<16x16xf32>
    %275 = arith.addf %271, %274 : vector<16x16xf32>
    %276 = vector.extract_strided_slice %6 {offsets = [624, 0], sizes = [16, 16], strides = [1, 1]} : vector<1536x16xf32> to vector<16x16xf32>
    %cst_109 = arith.constant dense<0.000000e+00> : vector<16x16xf32>
    %277 = tpu.matmul %3, %276, %cst_109 {dimension_numbers = #tpu.dot_dimension_numbers<[1], [0], [0], [1], [0, 0, 1, 1], [], []>} : vector<16x16xf32>, vector<16x16xf32>, vector<16x16xf32> -> vector<16x16xf32>
    %278 = arith.mulf %277, %102 : vector<16x16xf32>
    %279 = arith.addf %275, %278 : vector<16x16xf32>
    %c0_110 = arith.constant 0 : index
    %c4 = arith.constant 4 : index
    %c0_111 = arith.constant 0 : index
    %c0_112 = arith.constant 0 : index
    %280 = vector.load %arg7[%c0_110, %c4, %c0_111, %c0_112] : memref<1x12x16x16xf32, #tpu.memory_space<vmem>>, vector<1x1x16x16xf32>
    %281 = vector.shape_cast %280 : vector<1x1x16x16xf32> to vector<16x16xf32>
    %282 = vector.shape_cast %279 : vector<16x16xf32> to vector<1x1x16x16xf32>
    tpu.vector_store %arg7[%c0_110, %c4, %c0_111, %c0_112], %282 {strides = array<i32>} : memref<1x12x16x16xf32, #tpu.memory_space<vmem>>, vector<1x1x16x16xf32>,
    %cst_113 = arith.constant 0.000000e+00 : f32
    %283 = vector.broadcast %cst_113 : f32 to vector<16x16xf32>
    %284 = vector.extract_strided_slice %6 {offsets = [640, 0], sizes = [16, 16], strides = [1, 1]} : vector<1536x16xf32> to vector<16x16xf32>
    %cst_114 = arith.constant dense<0.000000e+00> : vector<16x16xf32>
    %285 = tpu.matmul %3, %284, %cst_114 {dimension_numbers = #tpu.dot_dimension_numbers<[1], [0], [0], [1], [0, 0, 1, 1], [], []>} : vector<16x16xf32>, vector<16x16xf32>, vector<16x16xf32> -> vector<16x16xf32>
    %286 = arith.mulf %285, %25 : vector<16x16xf32>
    %287 = arith.addf %283, %286 : vector<16x16xf32>
    %288 = vector.extract_strided_slice %6 {offsets = [656, 0], sizes = [16, 16], strides = [1, 1]} : vector<1536x16xf32> to vector<16x16xf32>
    %cst_115 = arith.constant dense<0.000000e+00> : vector<16x16xf32>
    %289 = tpu.matmul %3, %288, %cst_115 {dimension_numbers = #tpu.dot_dimension_numbers<[1], [0], [0], [1], [0, 0, 1, 1], [], []>} : vector<16x16xf32>, vector<16x16xf32>, vector<16x16xf32> -> vector<16x16xf32>
    %290 = arith.mulf %289, %36 : vector<16x16xf32>
    %291 = arith.addf %287, %290 : vector<16x16xf32>
    %292 = vector.extract_strided_slice %6 {offsets = [672, 0], sizes = [16, 16], strides = [1, 1]} : vector<1536x16xf32> to vector<16x16xf32>
    %cst_116 = arith.constant dense<0.000000e+00> : vector<16x16xf32>
    %293 = tpu.matmul %3, %292, %cst_116 {dimension_numbers = #tpu.dot_dimension_numbers<[1], [0], [0], [1], [0, 0, 1, 1], [], []>} : vector<16x16xf32>, vector<16x16xf32>, vector<16x16xf32> -> vector<16x16xf32>
    %294 = arith.mulf %293, %47 : vector<16x16xf32>
    %295 = arith.addf %291, %294 : vector<16x16xf32>
    %296 = vector.extract_strided_slice %6 {offsets = [688, 0], sizes = [16, 16], strides = [1, 1]} : vector<1536x16xf32> to vector<16x16xf32>
    %cst_117 = arith.constant dense<0.000000e+00> : vector<16x16xf32>
    %297 = tpu.matmul %3, %296, %cst_117 {dimension_numbers = #tpu.dot_dimension_numbers<[1], [0], [0], [1], [0, 0, 1, 1], [], []>} : vector<16x16xf32>, vector<16x16xf32>, vector<16x16xf32> -> vector<16x16xf32>
    %298 = arith.mulf %297, %58 : vector<16x16xf32>
    %299 = arith.addf %295, %298 : vector<16x16xf32>
    %300 = vector.extract_strided_slice %6 {offsets = [704, 0], sizes = [16, 16], strides = [1, 1]} : vector<1536x16xf32> to vector<16x16xf32>
    %cst_118 = arith.constant dense<0.000000e+00> : vector<16x16xf32>
    %301 = tpu.matmul %3, %300, %cst_118 {dimension_numbers = #tpu.dot_dimension_numbers<[1], [0], [0], [1], [0, 0, 1, 1], [], []>} : vector<16x16xf32>, vector<16x16xf32>, vector<16x16xf32> -> vector<16x16xf32>
    %302 = arith.mulf %301, %69 : vector<16x16xf32>
    %303 = arith.addf %299, %302 : vector<16x16xf32>
    %304 = vector.extract_strided_slice %6 {offsets = [720, 0], sizes = [16, 16], strides = [1, 1]} : vector<1536x16xf32> to vector<16x16xf32>
    %cst_119 = arith.constant dense<0.000000e+00> : vector<16x16xf32>
    %305 = tpu.matmul %3, %304, %cst_119 {dimension_numbers = #tpu.dot_dimension_numbers<[1], [0], [0], [1], [0, 0, 1, 1], [], []>} : vector<16x16xf32>, vector<16x16xf32>, vector<16x16xf32> -> vector<16x16xf32>
    %306 = arith.mulf %305, %80 : vector<16x16xf32>
    %307 = arith.addf %303, %306 : vector<16x16xf32>
    %308 = vector.extract_strided_slice %6 {offsets = [736, 0], sizes = [16, 16], strides = [1, 1]} : vector<1536x16xf32> to vector<16x16xf32>
    %cst_120 = arith.constant dense<0.000000e+00> : vector<16x16xf32>
    %309 = tpu.matmul %3, %308, %cst_120 {dimension_numbers = #tpu.dot_dimension_numbers<[1], [0], [0], [1], [0, 0, 1, 1], [], []>} : vector<16x16xf32>, vector<16x16xf32>, vector<16x16xf32> -> vector<16x16xf32>
    %310 = arith.mulf %309, %91 : vector<16x16xf32>
    %311 = arith.addf %307, %310 : vector<16x16xf32>
    %312 = vector.extract_strided_slice %6 {offsets = [752, 0], sizes = [16, 16], strides = [1, 1]} : vector<1536x16xf32> to vector<16x16xf32>
    %cst_121 = arith.constant dense<0.000000e+00> : vector<16x16xf32>
    %313 = tpu.matmul %3, %312, %cst_121 {dimension_numbers = #tpu.dot_dimension_numbers<[1], [0], [0], [1], [0, 0, 1, 1], [], []>} : vector<16x16xf32>, vector<16x16xf32>, vector<16x16xf32> -> vector<16x16xf32>
    %314 = arith.mulf %313, %102 : vector<16x16xf32>
    %315 = arith.addf %311, %314 : vector<16x16xf32>
    %c0_122 = arith.constant 0 : index
    %c5 = arith.constant 5 : index
    %c0_123 = arith.constant 0 : index
    %c0_124 = arith.constant 0 : index
    %316 = vector.load %arg7[%c0_122, %c5, %c0_123, %c0_124] : memref<1x12x16x16xf32, #tpu.memory_space<vmem>>, vector<1x1x16x16xf32>
    %317 = vector.shape_cast %316 : vector<1x1x16x16xf32> to vector<16x16xf32>
    %318 = vector.shape_cast %315 : vector<16x16xf32> to vector<1x1x16x16xf32>
    tpu.vector_store %arg7[%c0_122, %c5, %c0_123, %c0_124], %318 {strides = array<i32>} : memref<1x12x16x16xf32, #tpu.memory_space<vmem>>, vector<1x1x16x16xf32>,
    %cst_125 = arith.constant 0.000000e+00 : f32
    %319 = vector.broadcast %cst_125 : f32 to vector<16x16xf32>
    %320 = vector.extract_strided_slice %6 {offsets = [768, 0], sizes = [16, 16], strides = [1, 1]} : vector<1536x16xf32> to vector<16x16xf32>
    %cst_126 = arith.constant dense<0.000000e+00> : vector<16x16xf32>
    %321 = tpu.matmul %3, %320, %cst_126 {dimension_numbers = #tpu.dot_dimension_numbers<[1], [0], [0], [1], [0, 0, 1, 1], [], []>} : vector<16x16xf32>, vector<16x16xf32>, vector<16x16xf32> -> vector<16x16xf32>
    %322 = arith.mulf %321, %25 : vector<16x16xf32>
    %323 = arith.addf %319, %322 : vector<16x16xf32>
    %324 = vector.extract_strided_slice %6 {offsets = [784, 0], sizes = [16, 16], strides = [1, 1]} : vector<1536x16xf32> to vector<16x16xf32>
    %cst_127 = arith.constant dense<0.000000e+00> : vector<16x16xf32>
    %325 = tpu.matmul %3, %324, %cst_127 {dimension_numbers = #tpu.dot_dimension_numbers<[1], [0], [0], [1], [0, 0, 1, 1], [], []>} : vector<16x16xf32>, vector<16x16xf32>, vector<16x16xf32> -> vector<16x16xf32>
    %326 = arith.mulf %325, %36 : vector<16x16xf32>
    %327 = arith.addf %323, %326 : vector<16x16xf32>
    %328 = vector.extract_strided_slice %6 {offsets = [800, 0], sizes = [16, 16], strides = [1, 1]} : vector<1536x16xf32> to vector<16x16xf32>
    %cst_128 = arith.constant dense<0.000000e+00> : vector<16x16xf32>
    %329 = tpu.matmul %3, %328, %cst_128 {dimension_numbers = #tpu.dot_dimension_numbers<[1], [0], [0], [1], [0, 0, 1, 1], [], []>} : vector<16x16xf32>, vector<16x16xf32>, vector<16x16xf32> -> vector<16x16xf32>
    %330 = arith.mulf %329, %47 : vector<16x16xf32>
    %331 = arith.addf %327, %330 : vector<16x16xf32>
    %332 = vector.extract_strided_slice %6 {offsets = [816, 0], sizes = [16, 16], strides = [1, 1]} : vector<1536x16xf32> to vector<16x16xf32>
    %cst_129 = arith.constant dense<0.000000e+00> : vector<16x16xf32>
    %333 = tpu.matmul %3, %332, %cst_129 {dimension_numbers = #tpu.dot_dimension_numbers<[1], [0], [0], [1], [0, 0, 1, 1], [], []>} : vector<16x16xf32>, vector<16x16xf32>, vector<16x16xf32> -> vector<16x16xf32>
    %334 = arith.mulf %333, %58 : vector<16x16xf32>
    %335 = arith.addf %331, %334 : vector<16x16xf32>
    %336 = vector.extract_strided_slice %6 {offsets = [832, 0], sizes = [16, 16], strides = [1, 1]} : vector<1536x16xf32> to vector<16x16xf32>
    %cst_130 = arith.constant dense<0.000000e+00> : vector<16x16xf32>
    %337 = tpu.matmul %3, %336, %cst_130 {dimension_numbers = #tpu.dot_dimension_numbers<[1], [0], [0], [1], [0, 0, 1, 1], [], []>} : vector<16x16xf32>, vector<16x16xf32>, vector<16x16xf32> -> vector<16x16xf32>
    %338 = arith.mulf %337, %69 : vector<16x16xf32>
    %339 = arith.addf %335, %338 : vector<16x16xf32>
    %340 = vector.extract_strided_slice %6 {offsets = [848, 0], sizes = [16, 16], strides = [1, 1]} : vector<1536x16xf32> to vector<16x16xf32>
    %cst_131 = arith.constant dense<0.000000e+00> : vector<16x16xf32>
    %341 = tpu.matmul %3, %340, %cst_131 {dimension_numbers = #tpu.dot_dimension_numbers<[1], [0], [0], [1], [0, 0, 1, 1], [], []>} : vector<16x16xf32>, vector<16x16xf32>, vector<16x16xf32> -> vector<16x16xf32>
    %342 = arith.mulf %341, %80 : vector<16x16xf32>
    %343 = arith.addf %339, %342 : vector<16x16xf32>
    %344 = vector.extract_strided_slice %6 {offsets = [864, 0], sizes = [16, 16], strides = [1, 1]} : vector<1536x16xf32> to vector<16x16xf32>
    %cst_132 = arith.constant dense<0.000000e+00> : vector<16x16xf32>
    %345 = tpu.matmul %3, %344, %cst_132 {dimension_numbers = #tpu.dot_dimension_numbers<[1], [0], [0], [1], [0, 0, 1, 1], [], []>} : vector<16x16xf32>, vector<16x16xf32>, vector<16x16xf32> -> vector<16x16xf32>
    %346 = arith.mulf %345, %91 : vector<16x16xf32>
    %347 = arith.addf %343, %346 : vector<16x16xf32>
    %348 = vector.extract_strided_slice %6 {offsets = [880, 0], sizes = [16, 16], strides = [1, 1]} : vector<1536x16xf32> to vector<16x16xf32>
    %cst_133 = arith.constant dense<0.000000e+00> : vector<16x16xf32>
    %349 = tpu.matmul %3, %348, %cst_133 {dimension_numbers = #tpu.dot_dimension_numbers<[1], [0], [0], [1], [0, 0, 1, 1], [], []>} : vector<16x16xf32>, vector<16x16xf32>, vector<16x16xf32> -> vector<16x16xf32>
    %350 = arith.mulf %349, %102 : vector<16x16xf32>
    %351 = arith.addf %347, %350 : vector<16x16xf32>
    %c0_134 = arith.constant 0 : index
    %c6 = arith.constant 6 : index
    %c0_135 = arith.constant 0 : index
    %c0_136 = arith.constant 0 : index
    %352 = vector.load %arg7[%c0_134, %c6, %c0_135, %c0_136] : memref<1x12x16x16xf32, #tpu.memory_space<vmem>>, vector<1x1x16x16xf32>
    %353 = vector.shape_cast %352 : vector<1x1x16x16xf32> to vector<16x16xf32>
    %354 = vector.shape_cast %351 : vector<16x16xf32> to vector<1x1x16x16xf32>
    tpu.vector_store %arg7[%c0_134, %c6, %c0_135, %c0_136], %354 {strides = array<i32>} : memref<1x12x16x16xf32, #tpu.memory_space<vmem>>, vector<1x1x16x16xf32>,
    %cst_137 = arith.constant 0.000000e+00 : f32
    %355 = vector.broadcast %cst_137 : f32 to vector<16x16xf32>
    %356 = vector.extract_strided_slice %6 {offsets = [896, 0], sizes = [16, 16], strides = [1, 1]} : vector<1536x16xf32> to vector<16x16xf32>
    %cst_138 = arith.constant dense<0.000000e+00> : vector<16x16xf32>
    %357 = tpu.matmul %3, %356, %cst_138 {dimension_numbers = #tpu.dot_dimension_numbers<[1], [0], [0], [1], [0, 0, 1, 1], [], []>} : vector<16x16xf32>, vector<16x16xf32>, vector<16x16xf32> -> vector<16x16xf32>
    %358 = arith.mulf %357, %25 : vector<16x16xf32>
    %359 = arith.addf %355, %358 : vector<16x16xf32>
    %360 = vector.extract_strided_slice %6 {offsets = [912, 0], sizes = [16, 16], strides = [1, 1]} : vector<1536x16xf32> to vector<16x16xf32>
    %cst_139 = arith.constant dense<0.000000e+00> : vector<16x16xf32>
    %361 = tpu.matmul %3, %360, %cst_139 {dimension_numbers = #tpu.dot_dimension_numbers<[1], [0], [0], [1], [0, 0, 1, 1], [], []>} : vector<16x16xf32>, vector<16x16xf32>, vector<16x16xf32> -> vector<16x16xf32>
    %362 = arith.mulf %361, %36 : vector<16x16xf32>
    %363 = arith.addf %359, %362 : vector<16x16xf32>
    %364 = vector.extract_strided_slice %6 {offsets = [928, 0], sizes = [16, 16], strides = [1, 1]} : vector<1536x16xf32> to vector<16x16xf32>
    %cst_140 = arith.constant dense<0.000000e+00> : vector<16x16xf32>
    %365 = tpu.matmul %3, %364, %cst_140 {dimension_numbers = #tpu.dot_dimension_numbers<[1], [0], [0], [1], [0, 0, 1, 1], [], []>} : vector<16x16xf32>, vector<16x16xf32>, vector<16x16xf32> -> vector<16x16xf32>
    %366 = arith.mulf %365, %47 : vector<16x16xf32>
    %367 = arith.addf %363, %366 : vector<16x16xf32>
    %368 = vector.extract_strided_slice %6 {offsets = [944, 0], sizes = [16, 16], strides = [1, 1]} : vector<1536x16xf32> to vector<16x16xf32>
    %cst_141 = arith.constant dense<0.000000e+00> : vector<16x16xf32>
    %369 = tpu.matmul %3, %368, %cst_141 {dimension_numbers = #tpu.dot_dimension_numbers<[1], [0], [0], [1], [0, 0, 1, 1], [], []>} : vector<16x16xf32>, vector<16x16xf32>, vector<16x16xf32> -> vector<16x16xf32>
    %370 = arith.mulf %369, %58 : vector<16x16xf32>
    %371 = arith.addf %367, %370 : vector<16x16xf32>
    %372 = vector.extract_strided_slice %6 {offsets = [960, 0], sizes = [16, 16], strides = [1, 1]} : vector<1536x16xf32> to vector<16x16xf32>
    %cst_142 = arith.constant dense<0.000000e+00> : vector<16x16xf32>
    %373 = tpu.matmul %3, %372, %cst_142 {dimension_numbers = #tpu.dot_dimension_numbers<[1], [0], [0], [1], [0, 0, 1, 1], [], []>} : vector<16x16xf32>, vector<16x16xf32>, vector<16x16xf32> -> vector<16x16xf32>
    %374 = arith.mulf %373, %69 : vector<16x16xf32>
    %375 = arith.addf %371, %374 : vector<16x16xf32>
    %376 = vector.extract_strided_slice %6 {offsets = [976, 0], sizes = [16, 16], strides = [1, 1]} : vector<1536x16xf32> to vector<16x16xf32>
    %cst_143 = arith.constant dense<0.000000e+00> : vector<16x16xf32>
    %377 = tpu.matmul %3, %376, %cst_143 {dimension_numbers = #tpu.dot_dimension_numbers<[1], [0], [0], [1], [0, 0, 1, 1], [], []>} : vector<16x16xf32>, vector<16x16xf32>, vector<16x16xf32> -> vector<16x16xf32>
    %378 = arith.mulf %377, %80 : vector<16x16xf32>
    %379 = arith.addf %375, %378 : vector<16x16xf32>
    %380 = vector.extract_strided_slice %6 {offsets = [992, 0], sizes = [16, 16], strides = [1, 1]} : vector<1536x16xf32> to vector<16x16xf32>
    %cst_144 = arith.constant dense<0.000000e+00> : vector<16x16xf32>
    %381 = tpu.matmul %3, %380, %cst_144 {dimension_numbers = #tpu.dot_dimension_numbers<[1], [0], [0], [1], [0, 0, 1, 1], [], []>} : vector<16x16xf32>, vector<16x16xf32>, vector<16x16xf32> -> vector<16x16xf32>
    %382 = arith.mulf %381, %91 : vector<16x16xf32>
    %383 = arith.addf %379, %382 : vector<16x16xf32>
    %384 = vector.extract_strided_slice %6 {offsets = [1008, 0], sizes = [16, 16], strides = [1, 1]} : vector<1536x16xf32> to vector<16x16xf32>
    %cst_145 = arith.constant dense<0.000000e+00> : vector<16x16xf32>
    %385 = tpu.matmul %3, %384, %cst_145 {dimension_numbers = #tpu.dot_dimension_numbers<[1], [0], [0], [1], [0, 0, 1, 1], [], []>} : vector<16x16xf32>, vector<16x16xf32>, vector<16x16xf32> -> vector<16x16xf32>
    %386 = arith.mulf %385, %102 : vector<16x16xf32>
    %387 = arith.addf %383, %386 : vector<16x16xf32>
    %c0_146 = arith.constant 0 : index
    %c7 = arith.constant 7 : index
    %c0_147 = arith.constant 0 : index
    %c0_148 = arith.constant 0 : index
    %388 = vector.load %arg7[%c0_146, %c7, %c0_147, %c0_148] : memref<1x12x16x16xf32, #tpu.memory_space<vmem>>, vector<1x1x16x16xf32>
    %389 = vector.shape_cast %388 : vector<1x1x16x16xf32> to vector<16x16xf32>
    %390 = vector.shape_cast %387 : vector<16x16xf32> to vector<1x1x16x16xf32>
    tpu.vector_store %arg7[%c0_146, %c7, %c0_147, %c0_148], %390 {strides = array<i32>} : memref<1x12x16x16xf32, #tpu.memory_space<vmem>>, vector<1x1x16x16xf32>,
    %cst_149 = arith.constant 0.000000e+00 : f32
    %391 = vector.broadcast %cst_149 : f32 to vector<16x16xf32>
    %392 = vector.extract_strided_slice %6 {offsets = [1024, 0], sizes = [16, 16], strides = [1, 1]} : vector<1536x16xf32> to vector<16x16xf32>
    %cst_150 = arith.constant dense<0.000000e+00> : vector<16x16xf32>
    %393 = tpu.matmul %3, %392, %cst_150 {dimension_numbers = #tpu.dot_dimension_numbers<[1], [0], [0], [1], [0, 0, 1, 1], [], []>} : vector<16x16xf32>, vector<16x16xf32>, vector<16x16xf32> -> vector<16x16xf32>
    %394 = arith.mulf %393, %25 : vector<16x16xf32>
    %395 = arith.addf %391, %394 : vector<16x16xf32>
    %396 = vector.extract_strided_slice %6 {offsets = [1040, 0], sizes = [16, 16], strides = [1, 1]} : vector<1536x16xf32> to vector<16x16xf32>
    %cst_151 = arith.constant dense<0.000000e+00> : vector<16x16xf32>
    %397 = tpu.matmul %3, %396, %cst_151 {dimension_numbers = #tpu.dot_dimension_numbers<[1], [0], [0], [1], [0, 0, 1, 1], [], []>} : vector<16x16xf32>, vector<16x16xf32>, vector<16x16xf32> -> vector<16x16xf32>
    %398 = arith.mulf %397, %36 : vector<16x16xf32>
    %399 = arith.addf %395, %398 : vector<16x16xf32>
    %400 = vector.extract_strided_slice %6 {offsets = [1056, 0], sizes = [16, 16], strides = [1, 1]} : vector<1536x16xf32> to vector<16x16xf32>
    %cst_152 = arith.constant dense<0.000000e+00> : vector<16x16xf32>
    %401 = tpu.matmul %3, %400, %cst_152 {dimension_numbers = #tpu.dot_dimension_numbers<[1], [0], [0], [1], [0, 0, 1, 1], [], []>} : vector<16x16xf32>, vector<16x16xf32>, vector<16x16xf32> -> vector<16x16xf32>
    %402 = arith.mulf %401, %47 : vector<16x16xf32>
    %403 = arith.addf %399, %402 : vector<16x16xf32>
    %404 = vector.extract_strided_slice %6 {offsets = [1072, 0], sizes = [16, 16], strides = [1, 1]} : vector<1536x16xf32> to vector<16x16xf32>
    %cst_153 = arith.constant dense<0.000000e+00> : vector<16x16xf32>
    %405 = tpu.matmul %3, %404, %cst_153 {dimension_numbers = #tpu.dot_dimension_numbers<[1], [0], [0], [1], [0, 0, 1, 1], [], []>} : vector<16x16xf32>, vector<16x16xf32>, vector<16x16xf32> -> vector<16x16xf32>
    %406 = arith.mulf %405, %58 : vector<16x16xf32>
    %407 = arith.addf %403, %406 : vector<16x16xf32>
    %408 = vector.extract_strided_slice %6 {offsets = [1088, 0], sizes = [16, 16], strides = [1, 1]} : vector<1536x16xf32> to vector<16x16xf32>
    %cst_154 = arith.constant dense<0.000000e+00> : vector<16x16xf32>
    %409 = tpu.matmul %3, %408, %cst_154 {dimension_numbers = #tpu.dot_dimension_numbers<[1], [0], [0], [1], [0, 0, 1, 1], [], []>} : vector<16x16xf32>, vector<16x16xf32>, vector<16x16xf32> -> vector<16x16xf32>
    %410 = arith.mulf %409, %69 : vector<16x16xf32>
    %411 = arith.addf %407, %410 : vector<16x16xf32>
    %412 = vector.extract_strided_slice %6 {offsets = [1104, 0], sizes = [16, 16], strides = [1, 1]} : vector<1536x16xf32> to vector<16x16xf32>
    %cst_155 = arith.constant dense<0.000000e+00> : vector<16x16xf32>
    %413 = tpu.matmul %3, %412, %cst_155 {dimension_numbers = #tpu.dot_dimension_numbers<[1], [0], [0], [1], [0, 0, 1, 1], [], []>} : vector<16x16xf32>, vector<16x16xf32>, vector<16x16xf32> -> vector<16x16xf32>
    %414 = arith.mulf %413, %80 : vector<16x16xf32>
    %415 = arith.addf %411, %414 : vector<16x16xf32>
    %416 = vector.extract_strided_slice %6 {offsets = [1120, 0], sizes = [16, 16], strides = [1, 1]} : vector<1536x16xf32> to vector<16x16xf32>
    %cst_156 = arith.constant dense<0.000000e+00> : vector<16x16xf32>
    %417 = tpu.matmul %3, %416, %cst_156 {dimension_numbers = #tpu.dot_dimension_numbers<[1], [0], [0], [1], [0, 0, 1, 1], [], []>} : vector<16x16xf32>, vector<16x16xf32>, vector<16x16xf32> -> vector<16x16xf32>
    %418 = arith.mulf %417, %91 : vector<16x16xf32>
    %419 = arith.addf %415, %418 : vector<16x16xf32>
    %420 = vector.extract_strided_slice %6 {offsets = [1136, 0], sizes = [16, 16], strides = [1, 1]} : vector<1536x16xf32> to vector<16x16xf32>
    %cst_157 = arith.constant dense<0.000000e+00> : vector<16x16xf32>
    %421 = tpu.matmul %3, %420, %cst_157 {dimension_numbers = #tpu.dot_dimension_numbers<[1], [0], [0], [1], [0, 0, 1, 1], [], []>} : vector<16x16xf32>, vector<16x16xf32>, vector<16x16xf32> -> vector<16x16xf32>
    %422 = arith.mulf %421, %102 : vector<16x16xf32>
    %423 = arith.addf %419, %422 : vector<16x16xf32>
    %c0_158 = arith.constant 0 : index
    %c8 = arith.constant 8 : index
    %c0_159 = arith.constant 0 : index
    %c0_160 = arith.constant 0 : index
    %424 = vector.load %arg7[%c0_158, %c8, %c0_159, %c0_160] : memref<1x12x16x16xf32, #tpu.memory_space<vmem>>, vector<1x1x16x16xf32>
    %425 = vector.shape_cast %424 : vector<1x1x16x16xf32> to vector<16x16xf32>
    %426 = vector.shape_cast %423 : vector<16x16xf32> to vector<1x1x16x16xf32>
    tpu.vector_store %arg7[%c0_158, %c8, %c0_159, %c0_160], %426 {strides = array<i32>} : memref<1x12x16x16xf32, #tpu.memory_space<vmem>>, vector<1x1x16x16xf32>,
    %cst_161 = arith.constant 0.000000e+00 : f32
    %427 = vector.broadcast %cst_161 : f32 to vector<16x16xf32>
    %428 = vector.extract_strided_slice %6 {offsets = [1152, 0], sizes = [16, 16], strides = [1, 1]} : vector<1536x16xf32> to vector<16x16xf32>
    %cst_162 = arith.constant dense<0.000000e+00> : vector<16x16xf32>
    %429 = tpu.matmul %3, %428, %cst_162 {dimension_numbers = #tpu.dot_dimension_numbers<[1], [0], [0], [1], [0, 0, 1, 1], [], []>} : vector<16x16xf32>, vector<16x16xf32>, vector<16x16xf32> -> vector<16x16xf32>
    %430 = arith.mulf %429, %25 : vector<16x16xf32>
    %431 = arith.addf %427, %430 : vector<16x16xf32>
    %432 = vector.extract_strided_slice %6 {offsets = [1168, 0], sizes = [16, 16], strides = [1, 1]} : vector<1536x16xf32> to vector<16x16xf32>
    %cst_163 = arith.constant dense<0.000000e+00> : vector<16x16xf32>
    %433 = tpu.matmul %3, %432, %cst_163 {dimension_numbers = #tpu.dot_dimension_numbers<[1], [0], [0], [1], [0, 0, 1, 1], [], []>} : vector<16x16xf32>, vector<16x16xf32>, vector<16x16xf32> -> vector<16x16xf32>
    %434 = arith.mulf %433, %36 : vector<16x16xf32>
    %435 = arith.addf %431, %434 : vector<16x16xf32>
    %436 = vector.extract_strided_slice %6 {offsets = [1184, 0], sizes = [16, 16], strides = [1, 1]} : vector<1536x16xf32> to vector<16x16xf32>
    %cst_164 = arith.constant dense<0.000000e+00> : vector<16x16xf32>
    %437 = tpu.matmul %3, %436, %cst_164 {dimension_numbers = #tpu.dot_dimension_numbers<[1], [0], [0], [1], [0, 0, 1, 1], [], []>} : vector<16x16xf32>, vector<16x16xf32>, vector<16x16xf32> -> vector<16x16xf32>
    %438 = arith.mulf %437, %47 : vector<16x16xf32>
    %439 = arith.addf %435, %438 : vector<16x16xf32>
    %440 = vector.extract_strided_slice %6 {offsets = [1200, 0], sizes = [16, 16], strides = [1, 1]} : vector<1536x16xf32> to vector<16x16xf32>
    %cst_165 = arith.constant dense<0.000000e+00> : vector<16x16xf32>
    %441 = tpu.matmul %3, %440, %cst_165 {dimension_numbers = #tpu.dot_dimension_numbers<[1], [0], [0], [1], [0, 0, 1, 1], [], []>} : vector<16x16xf32>, vector<16x16xf32>, vector<16x16xf32> -> vector<16x16xf32>
    %442 = arith.mulf %441, %58 : vector<16x16xf32>
    %443 = arith.addf %439, %442 : vector<16x16xf32>
    %444 = vector.extract_strided_slice %6 {offsets = [1216, 0], sizes = [16, 16], strides = [1, 1]} : vector<1536x16xf32> to vector<16x16xf32>
    %cst_166 = arith.constant dense<0.000000e+00> : vector<16x16xf32>
    %445 = tpu.matmul %3, %444, %cst_166 {dimension_numbers = #tpu.dot_dimension_numbers<[1], [0], [0], [1], [0, 0, 1, 1], [], []>} : vector<16x16xf32>, vector<16x16xf32>, vector<16x16xf32> -> vector<16x16xf32>
    %446 = arith.mulf %445, %69 : vector<16x16xf32>
    %447 = arith.addf %443, %446 : vector<16x16xf32>
    %448 = vector.extract_strided_slice %6 {offsets = [1232, 0], sizes = [16, 16], strides = [1, 1]} : vector<1536x16xf32> to vector<16x16xf32>
    %cst_167 = arith.constant dense<0.000000e+00> : vector<16x16xf32>
    %449 = tpu.matmul %3, %448, %cst_167 {dimension_numbers = #tpu.dot_dimension_numbers<[1], [0], [0], [1], [0, 0, 1, 1], [], []>} : vector<16x16xf32>, vector<16x16xf32>, vector<16x16xf32> -> vector<16x16xf32>
    %450 = arith.mulf %449, %80 : vector<16x16xf32>
    %451 = arith.addf %447, %450 : vector<16x16xf32>
    %452 = vector.extract_strided_slice %6 {offsets = [1248, 0], sizes = [16, 16], strides = [1, 1]} : vector<1536x16xf32> to vector<16x16xf32>
    %cst_168 = arith.constant dense<0.000000e+00> : vector<16x16xf32>
    %453 = tpu.matmul %3, %452, %cst_168 {dimension_numbers = #tpu.dot_dimension_numbers<[1], [0], [0], [1], [0, 0, 1, 1], [], []>} : vector<16x16xf32>, vector<16x16xf32>, vector<16x16xf32> -> vector<16x16xf32>
    %454 = arith.mulf %453, %91 : vector<16x16xf32>
    %455 = arith.addf %451, %454 : vector<16x16xf32>
    %456 = vector.extract_strided_slice %6 {offsets = [1264, 0], sizes = [16, 16], strides = [1, 1]} : vector<1536x16xf32> to vector<16x16xf32>
    %cst_169 = arith.constant dense<0.000000e+00> : vector<16x16xf32>
    %457 = tpu.matmul %3, %456, %cst_169 {dimension_numbers = #tpu.dot_dimension_numbers<[1], [0], [0], [1], [0, 0, 1, 1], [], []>} : vector<16x16xf32>, vector<16x16xf32>, vector<16x16xf32> -> vector<16x16xf32>
    %458 = arith.mulf %457, %102 : vector<16x16xf32>
    %459 = arith.addf %455, %458 : vector<16x16xf32>
    %c0_170 = arith.constant 0 : index
    %c9 = arith.constant 9 : index
    %c0_171 = arith.constant 0 : index
    %c0_172 = arith.constant 0 : index
    %460 = vector.load %arg7[%c0_170, %c9, %c0_171, %c0_172] : memref<1x12x16x16xf32, #tpu.memory_space<vmem>>, vector<1x1x16x16xf32>
    %461 = vector.shape_cast %460 : vector<1x1x16x16xf32> to vector<16x16xf32>
    %462 = vector.shape_cast %459 : vector<16x16xf32> to vector<1x1x16x16xf32>
    tpu.vector_store %arg7[%c0_170, %c9, %c0_171, %c0_172], %462 {strides = array<i32>} : memref<1x12x16x16xf32, #tpu.memory_space<vmem>>, vector<1x1x16x16xf32>,
    %cst_173 = arith.constant 0.000000e+00 : f32
    %463 = vector.broadcast %cst_173 : f32 to vector<16x16xf32>
    %464 = vector.extract_strided_slice %6 {offsets = [1280, 0], sizes = [16, 16], strides = [1, 1]} : vector<1536x16xf32> to vector<16x16xf32>
    %cst_174 = arith.constant dense<0.000000e+00> : vector<16x16xf32>
    %465 = tpu.matmul %3, %464, %cst_174 {dimension_numbers = #tpu.dot_dimension_numbers<[1], [0], [0], [1], [0, 0, 1, 1], [], []>} : vector<16x16xf32>, vector<16x16xf32>, vector<16x16xf32> -> vector<16x16xf32>
    %466 = arith.mulf %465, %25 : vector<16x16xf32>
    %467 = arith.addf %463, %466 : vector<16x16xf32>
    %468 = vector.extract_strided_slice %6 {offsets = [1296, 0], sizes = [16, 16], strides = [1, 1]} : vector<1536x16xf32> to vector<16x16xf32>
    %cst_175 = arith.constant dense<0.000000e+00> : vector<16x16xf32>
    %469 = tpu.matmul %3, %468, %cst_175 {dimension_numbers = #tpu.dot_dimension_numbers<[1], [0], [0], [1], [0, 0, 1, 1], [], []>} : vector<16x16xf32>, vector<16x16xf32>, vector<16x16xf32> -> vector<16x16xf32>
    %470 = arith.mulf %469, %36 : vector<16x16xf32>
    %471 = arith.addf %467, %470 : vector<16x16xf32>
    %472 = vector.extract_strided_slice %6 {offsets = [1312, 0], sizes = [16, 16], strides = [1, 1]} : vector<1536x16xf32> to vector<16x16xf32>
    %cst_176 = arith.constant dense<0.000000e+00> : vector<16x16xf32>
    %473 = tpu.matmul %3, %472, %cst_176 {dimension_numbers = #tpu.dot_dimension_numbers<[1], [0], [0], [1], [0, 0, 1, 1], [], []>} : vector<16x16xf32>, vector<16x16xf32>, vector<16x16xf32> -> vector<16x16xf32>
    %474 = arith.mulf %473, %47 : vector<16x16xf32>
    %475 = arith.addf %471, %474 : vector<16x16xf32>
    %476 = vector.extract_strided_slice %6 {offsets = [1328, 0], sizes = [16, 16], strides = [1, 1]} : vector<1536x16xf32> to vector<16x16xf32>
    %cst_177 = arith.constant dense<0.000000e+00> : vector<16x16xf32>
    %477 = tpu.matmul %3, %476, %cst_177 {dimension_numbers = #tpu.dot_dimension_numbers<[1], [0], [0], [1], [0, 0, 1, 1], [], []>} : vector<16x16xf32>, vector<16x16xf32>, vector<16x16xf32> -> vector<16x16xf32>
    %478 = arith.mulf %477, %58 : vector<16x16xf32>
    %479 = arith.addf %475, %478 : vector<16x16xf32>
    %480 = vector.extract_strided_slice %6 {offsets = [1344, 0], sizes = [16, 16], strides = [1, 1]} : vector<1536x16xf32> to vector<16x16xf32>
    %cst_178 = arith.constant dense<0.000000e+00> : vector<16x16xf32>
    %481 = tpu.matmul %3, %480, %cst_178 {dimension_numbers = #tpu.dot_dimension_numbers<[1], [0], [0], [1], [0, 0, 1, 1], [], []>} : vector<16x16xf32>, vector<16x16xf32>, vector<16x16xf32> -> vector<16x16xf32>
    %482 = arith.mulf %481, %69 : vector<16x16xf32>
    %483 = arith.addf %479, %482 : vector<16x16xf32>
    %484 = vector.extract_strided_slice %6 {offsets = [1360, 0], sizes = [16, 16], strides = [1, 1]} : vector<1536x16xf32> to vector<16x16xf32>
    %cst_179 = arith.constant dense<0.000000e+00> : vector<16x16xf32>
    %485 = tpu.matmul %3, %484, %cst_179 {dimension_numbers = #tpu.dot_dimension_numbers<[1], [0], [0], [1], [0, 0, 1, 1], [], []>} : vector<16x16xf32>, vector<16x16xf32>, vector<16x16xf32> -> vector<16x16xf32>
    %486 = arith.mulf %485, %80 : vector<16x16xf32>
    %487 = arith.addf %483, %486 : vector<16x16xf32>
    %488 = vector.extract_strided_slice %6 {offsets = [1376, 0], sizes = [16, 16], strides = [1, 1]} : vector<1536x16xf32> to vector<16x16xf32>
    %cst_180 = arith.constant dense<0.000000e+00> : vector<16x16xf32>
    %489 = tpu.matmul %3, %488, %cst_180 {dimension_numbers = #tpu.dot_dimension_numbers<[1], [0], [0], [1], [0, 0, 1, 1], [], []>} : vector<16x16xf32>, vector<16x16xf32>, vector<16x16xf32> -> vector<16x16xf32>
    %490 = arith.mulf %489, %91 : vector<16x16xf32>
    %491 = arith.addf %487, %490 : vector<16x16xf32>
    %492 = vector.extract_strided_slice %6 {offsets = [1392, 0], sizes = [16, 16], strides = [1, 1]} : vector<1536x16xf32> to vector<16x16xf32>
    %cst_181 = arith.constant dense<0.000000e+00> : vector<16x16xf32>
    %493 = tpu.matmul %3, %492, %cst_181 {dimension_numbers = #tpu.dot_dimension_numbers<[1], [0], [0], [1], [0, 0, 1, 1], [], []>} : vector<16x16xf32>, vector<16x16xf32>, vector<16x16xf32> -> vector<16x16xf32>
    %494 = arith.mulf %493, %102 : vector<16x16xf32>
    %495 = arith.addf %491, %494 : vector<16x16xf32>
    %c0_182 = arith.constant 0 : index
    %c10 = arith.constant 10 : index
    %c0_183 = arith.constant 0 : index
    %c0_184 = arith.constant 0 : index
    %496 = vector.load %arg7[%c0_182, %c10, %c0_183, %c0_184] : memref<1x12x16x16xf32, #tpu.memory_space<vmem>>, vector<1x1x16x16xf32>
    %497 = vector.shape_cast %496 : vector<1x1x16x16xf32> to vector<16x16xf32>
    %498 = vector.shape_cast %495 : vector<16x16xf32> to vector<1x1x16x16xf32>
    tpu.vector_store %arg7[%c0_182, %c10, %c0_183, %c0_184], %498 {strides = array<i32>} : memref<1x12x16x16xf32, #tpu.memory_space<vmem>>, vector<1x1x16x16xf32>,
    %cst_185 = arith.constant 0.000000e+00 : f32
    %499 = vector.broadcast %cst_185 : f32 to vector<16x16xf32>
    %500 = vector.extract_strided_slice %6 {offsets = [1408, 0], sizes = [16, 16], strides = [1, 1]} : vector<1536x16xf32> to vector<16x16xf32>
    %cst_186 = arith.constant dense<0.000000e+00> : vector<16x16xf32>
    %501 = tpu.matmul %3, %500, %cst_186 {dimension_numbers = #tpu.dot_dimension_numbers<[1], [0], [0], [1], [0, 0, 1, 1], [], []>} : vector<16x16xf32>, vector<16x16xf32>, vector<16x16xf32> -> vector<16x16xf32>
    %502 = arith.mulf %501, %25 : vector<16x16xf32>
    %503 = arith.addf %499, %502 : vector<16x16xf32>
    %504 = vector.extract_strided_slice %6 {offsets = [1424, 0], sizes = [16, 16], strides = [1, 1]} : vector<1536x16xf32> to vector<16x16xf32>
    %cst_187 = arith.constant dense<0.000000e+00> : vector<16x16xf32>
    %505 = tpu.matmul %3, %504, %cst_187 {dimension_numbers = #tpu.dot_dimension_numbers<[1], [0], [0], [1], [0, 0, 1, 1], [], []>} : vector<16x16xf32>, vector<16x16xf32>, vector<16x16xf32> -> vector<16x16xf32>
    %506 = arith.mulf %505, %36 : vector<16x16xf32>
    %507 = arith.addf %503, %506 : vector<16x16xf32>
    %508 = vector.extract_strided_slice %6 {offsets = [1440, 0], sizes = [16, 16], strides = [1, 1]} : vector<1536x16xf32> to vector<16x16xf32>
    %cst_188 = arith.constant dense<0.000000e+00> : vector<16x16xf32>
    %509 = tpu.matmul %3, %508, %cst_188 {dimension_numbers = #tpu.dot_dimension_numbers<[1], [0], [0], [1], [0, 0, 1, 1], [], []>} : vector<16x16xf32>, vector<16x16xf32>, vector<16x16xf32> -> vector<16x16xf32>
    %510 = arith.mulf %509, %47 : vector<16x16xf32>
    %511 = arith.addf %507, %510 : vector<16x16xf32>
    %512 = vector.extract_strided_slice %6 {offsets = [1456, 0], sizes = [16, 16], strides = [1, 1]} : vector<1536x16xf32> to vector<16x16xf32>
    %cst_189 = arith.constant dense<0.000000e+00> : vector<16x16xf32>
    %513 = tpu.matmul %3, %512, %cst_189 {dimension_numbers = #tpu.dot_dimension_numbers<[1], [0], [0], [1], [0, 0, 1, 1], [], []>} : vector<16x16xf32>, vector<16x16xf32>, vector<16x16xf32> -> vector<16x16xf32>
    %514 = arith.mulf %513, %58 : vector<16x16xf32>
    %515 = arith.addf %511, %514 : vector<16x16xf32>
    %516 = vector.extract_strided_slice %6 {offsets = [1472, 0], sizes = [16, 16], strides = [1, 1]} : vector<1536x16xf32> to vector<16x16xf32>
    %cst_190 = arith.constant dense<0.000000e+00> : vector<16x16xf32>
    %517 = tpu.matmul %3, %516, %cst_190 {dimension_numbers = #tpu.dot_dimension_numbers<[1], [0], [0], [1], [0, 0, 1, 1], [], []>} : vector<16x16xf32>, vector<16x16xf32>, vector<16x16xf32> -> vector<16x16xf32>
    %518 = arith.mulf %517, %69 : vector<16x16xf32>
    %519 = arith.addf %515, %518 : vector<16x16xf32>
    %520 = vector.extract_strided_slice %6 {offsets = [1488, 0], sizes = [16, 16], strides = [1, 1]} : vector<1536x16xf32> to vector<16x16xf32>
    %cst_191 = arith.constant dense<0.000000e+00> : vector<16x16xf32>
    %521 = tpu.matmul %3, %520, %cst_191 {dimension_numbers = #tpu.dot_dimension_numbers<[1], [0], [0], [1], [0, 0, 1, 1], [], []>} : vector<16x16xf32>, vector<16x16xf32>, vector<16x16xf32> -> vector<16x16xf32>
    %522 = arith.mulf %521, %80 : vector<16x16xf32>
    %523 = arith.addf %519, %522 : vector<16x16xf32>
    %524 = vector.extract_strided_slice %6 {offsets = [1504, 0], sizes = [16, 16], strides = [1, 1]} : vector<1536x16xf32> to vector<16x16xf32>
    %cst_192 = arith.constant dense<0.000000e+00> : vector<16x16xf32>
    %525 = tpu.matmul %3, %524, %cst_192 {dimension_numbers = #tpu.dot_dimension_numbers<[1], [0], [0], [1], [0, 0, 1, 1], [], []>} : vector<16x16xf32>, vector<16x16xf32>, vector<16x16xf32> -> vector<16x16xf32>
    %526 = arith.mulf %525, %91 : vector<16x16xf32>
    %527 = arith.addf %523, %526 : vector<16x16xf32>
    %528 = vector.extract_strided_slice %6 {offsets = [1520, 0], sizes = [16, 16], strides = [1, 1]} : vector<1536x16xf32> to vector<16x16xf32>
    %cst_193 = arith.constant dense<0.000000e+00> : vector<16x16xf32>
    %529 = tpu.matmul %3, %528, %cst_193 {dimension_numbers = #tpu.dot_dimension_numbers<[1], [0], [0], [1], [0, 0, 1, 1], [], []>} : vector<16x16xf32>, vector<16x16xf32>, vector<16x16xf32> -> vector<16x16xf32>
    %530 = arith.mulf %529, %102 : vector<16x16xf32>
    %531 = arith.addf %527, %530 : vector<16x16xf32>
    %c0_194 = arith.constant 0 : index
    %c11 = arith.constant 11 : index
    %c0_195 = arith.constant 0 : index
    %c0_196 = arith.constant 0 : index
    %532 = vector.load %arg7[%c0_194, %c11, %c0_195, %c0_196] : memref<1x12x16x16xf32, #tpu.memory_space<vmem>>, vector<1x1x16x16xf32>
    %533 = vector.shape_cast %532 : vector<1x1x16x16xf32> to vector<16x16xf32>
    %534 = vector.shape_cast %531 : vector<16x16xf32> to vector<1x1x16x16xf32>
    tpu.vector_store %arg7[%c0_194, %c11, %c0_195, %c0_196], %534 {strides = array<i32>} : memref<1x12x16x16xf32, #tpu.memory_space<vmem>>, vector<1x1x16x16xf32>,
    return
  }
  func.func @transform_0(%arg0: i32, %arg1: i32, %arg2: i32) -> (i32, i32, i32) {
    %c0_i32 = arith.constant 0 : i32
    %c0_i32_0 = arith.constant 0 : i32
    %c0_i32_1 = arith.constant 0 : i32
    return %arg0, %c0_i32, %c0_i32_0 : i32, i32, i32
  }
  func.func @transform_1(%arg0: i32, %arg1: i32, %arg2: i32) -> (i32, i32) {
    %c0_i32 = arith.constant 0 : i32
    %c0_i32_0 = arith.constant 0 : i32
    return %c0_i32, %arg2 : i32, i32
  }
  func.func @transform_2(%arg0: i32, %arg1: i32, %arg2: i32) -> (i32, i32) {
    %c0_i32 = arith.constant 0 : i32
    %c0_i32_0 = arith.constant 0 : i32
    return %arg1, %c0_i32 : i32, i32
  }
  func.func @transform_3(%arg0: i32, %arg1: i32, %arg2: i32) -> (i32, i32, i32) {
    %c0_i32 = arith.constant 0 : i32
    return %arg0, %arg1, %arg2 : i32, i32, i32
  }
  func.func @transform_4(%arg0: i32, %arg1: i32, %arg2: i32) -> (i32, i32, i32, i32) {
    %c0_i32 = arith.constant 0 : i32
    %c0_i32_0 = arith.constant 0 : i32
    return %arg0, %c0_i32, %arg1, %arg2 : i32, i32, i32, i32
  }
}

</mosaic_0001>

<bundles_post_ra>
// kernel: tpu_custom_call.1
= control target key start
LH: loop header
LB: loop body
LE: loop exit
PB: predicated region body
PF: predicated region fallthrough
CT: control target
= control target key end

     0   :  { %9 = vsyncpa [#allocation3], 0  ;;  %s13809_s0 = inlined_call_operand.vmem [shape: f32[2,1536,16], index: 0, kind: input, shape index: {}]   ;;  %s13810_s1 = inlined_call_operand.vmem [shape: f32[16,16], index: 1, kind: input, shape index: {}]   ;;  %s13811_s2 = inlined_call_operand.vmem [shape: f32[16,16], index: 2, kind: input, shape index: {}]   ;;  %s13812_s3 = inlined_call_operand.vmem [shape: f32[2,16,16], index: 3, kind: input, shape index: {}]   ;;  %s13813_s4 = inlined_call_operand.hbm [shape: f32[2,12,16,16], index: 4, kind: output, shape index: {}]  }
   0x1   :  { %11 = vsyncpa [#allocation3 + $0x1], 0  ;;  %s12478_s15 = smov 0   ;;  %s12480_s16 = smov 0  }
   0x2   :  { %s12482_s17 = smov 0   ;;  %s12484_s18 = smov 0  }
   0x3   :  { %s12486_s19 = smov 0   ;;  %s12488_s20 = smov 0  }
   0x4 LB: > { %s9954_s21 = sadd.s32 4294967295, %s12448_s20   ;;  %s9955_s22 = sadd.s32 4294967294, %s12448_s20   ;;  %s12448_s20 = sphi %s12488_s20, %s17_s20   ;;  %s12444_s19 = sphi %s12486_s19, %s13820_s19   ;;  %s12440_s18 = sphi %s12484_s18, %s13819_s18   ;;  %s12436_s17 = sphi %s12482_s17, %s13818_s17   ;;  %s12432_s16 = sphi %s12480_s16, %s13817_s16   ;;  %s12428_s15 = sphi %s12478_s15, %s13816_s15  }
   0x5   : > { %s36_s23 = sadd.s32 1, %s12444_s19  ;;  %s155_s24 = sadd.s32 1, %s12436_s17 }
   0x6   : > { %p38_p0 = scmp.ge.s32.totalorder %s36_s23, 2  ;;  %p165_p1 = scmp.ne.s32.totalorder %s12436_s17, %s12432_s16 }
   0x7   : > { %p166_p2 = scmp.eq.s32.totalorder %s9954_s21, 1  ;;  %p171_p3 = scmp.ne.s32.totalorder %s12432_s16, %s12428_s15 }
   0x8   : > { %s13822_s23 = smov (%p38_p0, %s36_s23), 0  ;;  %p172_p5 = scmp.eq.s32.totalorder %s9955_s22, 1 }
   0x9   : > { %p12518_p4 = por %p166_p2, %p165_p1  ;;  %s148_s26 = ssub.s32 %s12444_s19, %s13822_s23 }
   0xa   : > { %p9960_p6 = scmp.ge.s32.totalorder %s12448_s20, 1  ;;  %p153_p7 = scmp.eq.s32.totalorder %s148_s26, 0 }
   0xb   : > { %p12525_p8 = por %p172_p5, %p171_p3  ;;  %p230_p9 = scmp.lt.s32.totalorder %s12448_s20, 3 }
   0xc   : > { %s12531_s28 = scalar_select %p153_p7, %s12436_s17, %s155_s24  }
   0xd   : > { %p231_p10 = pnand %p9960_p6, %p230_p9 }
   0xe   : > { %v498_v0 = vld [vmem:[%s13810_s1] sm:$0xff] (!%p231_p10)  ;;  %v499_v1 = vld [vmem:[%s13810_s1 + $0x8] sm:$0xff] (!%p231_p10)  ;;  %p277_p11 = scmp.lt.s32.totalorder (!%p231_p10), %s12440_s18, 1  ;;  %vm504_vm0 = vcmask (!%p231_p10), 130048   ;;  %s12308_s21 = smul.u32 (!%p231_p10), 3072, %s12440_s18 }
   0xf   : > { %234 = sbr.rel (%p231_p10) target bundleno = 860 (0x35c), region = 36  ;;  %v11918_v2 = vpack.c.bf16 (!%p231_p10), %v499_v1, %v498_v0  ;;  %v12647_v51 = vld [vmem:[%s13811_s2] sm:$0xff] (!%p231_p10) }
  0x10   : > { %11250 = vmatprep.mubr.msk.f32.mxu1 (!%p231_p10), %vm504_vm0, %v12647_v51  ;;  %s13753_s29 = scalar_lea.hbm (!%p231_p10), %s13813_s4, %s12308_s21 }
  0x11   : > { %11919 = vmatprep.subr.bf16.mxu0 (!%p231_p10), %v11918_v2 }
  0x12   : > { %11921 = vmatpush3.bf16.msra.mxu0 (!%p231_p10), %v11918_v2 }
  0x16   : > { %s12541_s7 = scalar_select %p277_p11, %s12440_s18, 1 }
  0x18   : > { %s12307_s8 = smul.u32 1536, %s12541_s7  ;;  %s10375_s26 = sshll.u32 %s12541_s7, 4 }
  0x19   : > { %s303_s5 = scalar_lea.vmem %s13812_s3, %s10375_s26 }
  0x1a   : > { %s12547_s11 = scalar_lea.vmem %s13809_s0, %s12307_s8  ;;  %s274_s8 = sand.u32 1, %s12432_s16  }
  0x1b   : > { %v306_v3 = vld [vmem:[%s12547_s11] sm:$0xff]  ;;  %v307_v4 = vld [vmem:[%s12547_s11 + $0x8] sm:$0xff]  ;;  %v308_v5 = vld [vmem:[%s12547_s11 + $0x10] sm:$0xff]  ;;  %s12306_s9 = smul.u32 192, %s274_s8  ;;  %s13763_s18 = scalar_lea.sflag [#allocation3], %s274_s8 }
  0x1c   : > { %10958 = vmatprep.mubr.msk.f32.mxu0 %vm504_vm0, %v306_v3  ;;  %v309_v6 = vld [vmem:[%s12547_s11 + $0x18] sm:$0xff]  ;;  %v310_v7 = vld [vmem:[%s12547_s11 + $0x20] sm:$0xff]  ;;  %v311_v8 = vld [vmem:[%s12547_s11 + $0x28] sm:$0xff] }
  0x1d   : > { %10959 = vmatmul.mubr.msk.f32.vlgmr.msra.gmra.mrb[0].mxu0 %vm504_vm0, %v307_v4  ;;  %v312_v9 = vld [vmem:[%s12547_s11 + $0x30] sm:$0xff]  ;;  %v313_v10 = vld [vmem:[%s12547_s11 + $0x38] sm:$0xff]  ;;  %v314_v11 = vld [vmem:[%s12547_s11 + $0x40] sm:$0xff]  ;;  %s13378_s10 = scalar_lea.vmem [#allocation2], %s12306_s9 }
  0x1e   : > { %10961 = vmatprep.mubr.msk.f32.mxu0 %vm504_vm0, %v308_v5  ;;  %v315_v12 = vld [vmem:[%s12547_s11 + $0x48] sm:$0xff]  ;;  %v316_v13 = vld [vmem:[%s12547_s11 + $0x50] sm:$0xff]  ;;  %v317_v14 = vld [vmem:[%s12547_s11 + $0x58] sm:$0xff]  ;;  %s9826_s22 = sshll.u32 %s13378_s10, 4  ;;  %s13755_s22 = int_to_ptr.vmem [resolvable:$true] %s9826_s22 }
  0x1f   : > { %v318_v15 = vld [vmem:[%s12547_s11 + $0x60] sm:$0xff]  ;;  %v319_v16 = vld [vmem:[%s12547_s11 + $0x68] sm:$0xff]  ;;  %v320_v17 = vld [vmem:[%s12547_s11 + $0x70] sm:$0xff]  ;;  %s12370_s30 = scalar_lea.vmem %s13755_s22, 3072 }
  0x20   : > { %v321_v18 = vld [vmem:[%s12547_s11 + $0x78] sm:$0xff]  ;;  %v322_v19 = vld [vmem:[%s12547_s11 + $0x80] sm:$0xff]  ;;  %v323_v20 = vld [vmem:[%s12547_s11 + $0x88] sm:$0xff]  ;;  %p12371_p12 = scmp.ne.s32.totalorder %s13755_s22, %s12370_s30 }
  0x21   : > { %10962 = vmatmul.mubr.msk.f32.gmra.mrb[2].mxu0 %vm504_vm0, %v309_v6  ;;  %v324_v21 = vld [vmem:[%s12547_s11 + $0x90] sm:$0xff]  ;;  %v325_v22 = vld [vmem:[%s12547_s11 + $0x98] sm:$0xff]  ;;  %v326_v23 = vld [vmem:[%s12547_s11 + $0xa0] sm:$0xff] }
  0x22   : > { %10964 = vmatprep.mubr.msk.f32.mxu0 %vm504_vm0, %v310_v7  ;;  %v327_v24 = vld [vmem:[%s12547_s11 + $0xa8] sm:$0xff]  ;;  %v328_v25 = vld [vmem:[%s12547_s11 + $0xb0] sm:$0xff]  ;;  %v329_v26 = vld [vmem:[%s12547_s11 + $0xb8] sm:$0xff]  ;;  %p12372_p13 = pnand %p12371_p12, %p12518_p4 }
  0x23   : > { %v330_v27 = vld [vmem:[%s12547_s11 + $0xc0] sm:$0xff]  ;;  %v331_v28 = vld [vmem:[%s12547_s11 + $0xc8] sm:$0xff]  ;;  %v332_v29 = vld [vmem:[%s12547_s11 + $0xd0] sm:$0xff] }
  0x24   : > { %v333_v30 = vld [vmem:[%s12547_s11 + $0xd8] sm:$0xff]  ;;  %v334_v31 = vld [vmem:[%s12547_s11 + $0xe0] sm:$0xff]  ;;  %v335_v32 = vld [vmem:[%s12547_s11 + $0xe8] sm:$0xff]  ;;  %p12373_p0 = pneg %p12372_p13 }
  0x25   : > { %10965 = vmatmul.mubr.msk.f32.gmra.mrb[4].mxu0 %vm504_vm0, %v311_v8  ;;  %v336_v33 = vld [vmem:[%s12547_s11 + $0xf0] sm:$0xff]  ;;  %v337_v34 = vld [vmem:[%s12547_s11 + $0xf8] sm:$0xff]  ;;  %v338_v35 = vld [vmem:[%s12547_s11 + $0x100] sm:$0xff] }
  0x26   : > { %10967 = vmatprep.mubr.msk.f32.mxu0 %vm504_vm0, %v312_v9  ;;  %v339_v36 = vld [vmem:[%s12547_s11 + $0x108] sm:$0xff]  ;;  %v340_v37 = vld [vmem:[%s12547_s11 + $0x110] sm:$0xff]  ;;  %v341_v38 = vld [vmem:[%s12547_s11 + $0x118] sm:$0xff] }
  0x27   : > { %v342_v39 = vld [vmem:[%s12547_s11 + $0x120] sm:$0xff]  ;;  %v343_v40 = vld [vmem:[%s12547_s11 + $0x128] sm:$0xff]  ;;  %v344_v41 = vld [vmem:[%s12547_s11 + $0x130] sm:$0xff] }
  0x28   : > { %v345_v42 = vld [vmem:[%s12547_s11 + $0x138] sm:$0xff]  ;;  %v346_v43 = vld [vmem:[%s12547_s11 + $0x140] sm:$0xff]  ;;  %v347_v44 = vld [vmem:[%s12547_s11 + $0x148] sm:$0xff] }
  0x29   : > { %10968 = vmatmul.mubr.msk.f32.gmra.mrb[6].mxu0 %vm504_vm0, %v313_v10  ;;  %v348_v45 = vld [vmem:[%s12547_s11 + $0x150] sm:$0xff]  ;;  %v349_v46 = vld [vmem:[%s12547_s11 + $0x158] sm:$0xff]  ;;  %v350_v47 = vld [vmem:[%s12547_s11 + $0x160] sm:$0xff] }
  0x2a   : > { %10970 = vmatprep.mubr.msk.f32.mxu0 %vm504_vm0, %v314_v11  ;;  %v351_v48 = vld [vmem:[%s12547_s11 + $0x168] sm:$0xff]  ;;  %v352_v49 = vld [vmem:[%s12547_s11 + $0x170] sm:$0xff]  ;;  %v353_v50 = vld [vmem:[%s12547_s11 + $0x178] sm:$0xff] }
  0x2b   : > { %v354_v52 = vld [vmem:[%s12547_s11 + $0x180] sm:$0xff]  ;;  %v355_v53 = vld [vmem:[%s12547_s11 + $0x188] sm:$0xff]  ;;  %v356_v54 = vld [vmem:[%s12547_s11 + $0x190] sm:$0xff] }
  0x2c   : > { %v357_v55 = vld [vmem:[%s12547_s11 + $0x198] sm:$0xff]  ;;  %v358_v56 = vld [vmem:[%s12547_s11 + $0x1a0] sm:$0xff]  ;;  %v359_v57 = vld [vmem:[%s12547_s11 + $0x1a8] sm:$0xff] }
  0x2d   : > { %10971 = vmatmul.mubr.msk.f32.gmra.mrb[8].mxu0 %vm504_vm0, %v315_v12  ;;  %v360_v58 = vld [vmem:[%s12547_s11 + $0x1b0] sm:$0xff]  ;;  %v361_v59 = vld [vmem:[%s12547_s11 + $0x1b8] sm:$0xff]  ;;  %v362_v60 = vld [vmem:[%s12547_s11 + $0x1c0] sm:$0xff] }
  0x2e   : > { %10973 = vmatprep.mubr.msk.f32.mxu0 %vm504_vm0, %v316_v13  ;;  %v363_v61 = vld [vmem:[%s12547_s11 + $0x1c8] sm:$0xff]  ;;  %v364_v62 = vld [vmem:[%s12547_s11 + $0x1d0] sm:$0xff]  ;;  %v365_v63 = vld [vmem:[%s12547_s11 + $0x1d8] sm:$0xff] }
  0x2f   : > { %v366_v0 = vld [vmem:[%s12547_s11 + $0x1e0] sm:$0xff]  ;;  %v367_v1 = vld [vmem:[%s12547_s11 + $0x1e8] sm:$0xff]  ;;  %v368_v2 = vld [vmem:[%s12547_s11 + $0x1f0] sm:$0xff] }
  0x30   : > { %v369_v3 = vld [vmem:[%s12547_s11 + $0x1f8] sm:$0xff]  ;;  %v370_v4 = vld [vmem:[%s12547_s11 + $0x200] sm:$0xff]  ;;  %v371_v5 = vld [vmem:[%s12547_s11 + $0x208] sm:$0xff] }
  0x31   : > { %10974 = vmatmul.mubr.msk.f32.gmra.mrb[10].mxu0 %vm504_vm0, %v317_v14  ;;  %v372_v6 = vld [vmem:[%s12547_s11 + $0x210] sm:$0xff]  ;;  %v373_v7 = vld [vmem:[%s12547_s11 + $0x218] sm:$0xff]  ;;  %v374_v8 = vld [vmem:[%s12547_s11 + $0x220] sm:$0xff] }
  0x32   : > { %10976 = vmatprep.mubr.msk.f32.mxu0 %vm504_vm0, %v318_v15  ;;  %v375_v9 = vld [vmem:[%s12547_s11 + $0x228] sm:$0xff]  ;;  %v376_v10 = vld [vmem:[%s12547_s11 + $0x230] sm:$0xff]  ;;  %v377_v11 = vld [vmem:[%s12547_s11 + $0x238] sm:$0xff] }
  0x33   : > { %v378_v12 = vld [vmem:[%s12547_s11 + $0x240] sm:$0xff]  ;;  %v379_v13 = vld [vmem:[%s12547_s11 + $0x248] sm:$0xff]  ;;  %v380_v14 = vld [vmem:[%s12547_s11 + $0x250] sm:$0xff] }
  0x34   : > { %v381_v15 = vld [vmem:[%s12547_s11 + $0x258] sm:$0xff] }
  0x35   : > { %10977 = vmatmul.mubr.msk.f32.gmra.mrb[12].mxu0 %vm504_vm0, %v319_v16  ;;  %v382_v16 = vld [vmem:[%s12547_s11 + $0x260] sm:$0xff] }
  0x36   : > { %10979 = vmatprep.mubr.msk.f32.mxu0 %vm504_vm0, %v320_v17  ;;  %v383_v17 = vld [vmem:[%s12547_s11 + $0x268] sm:$0xff] }
  0x39   : > { %10980 = vmatmul.mubr.msk.f32.gmra.mrb[14].mxu0 %vm504_vm0, %v321_v18  ;;  %v384_v18 = vld [vmem:[%s12547_s11 + $0x270] sm:$0xff] }
  0x3a   : > { %10982 = vmatprep.mubr.msk.f32.mxu0 %vm504_vm0, %v322_v19  ;;  %v385_v19 = vld [vmem:[%s12547_s11 + $0x278] sm:$0xff] }
  0x3d   : > { %10983 = vmatmul.mubr.msk.f32.gmra.mrb[16].mxu0 %vm504_vm0, %v323_v20  ;;  %v386_v20 = vld [vmem:[%s12547_s11 + $0x280] sm:$0xff] }
  0x3e   : > { %10985 = vmatprep.mubr.msk.f32.mxu0 %vm504_vm0, %v324_v21  ;;  %v387_v21 = vld [vmem:[%s12547_s11 + $0x288] sm:$0xff] }
  0x41   : > { %10986 = vmatmul.mubr.msk.f32.gmra.mrb[18].mxu0 %vm504_vm0, %v325_v22  ;;  %v388_v22 = vld [vmem:[%s12547_s11 + $0x290] sm:$0xff] }
  0x42   : > { %10988 = vmatprep.mubr.msk.f32.mxu0 %vm504_vm0, %v326_v23  ;;  %v389_v23 = vld [vmem:[%s12547_s11 + $0x298] sm:$0xff] }
  0x45   : > { %10989 = vmatmul.mubr.msk.f32.gmra.mrb[20].mxu0 %vm504_vm0, %v327_v24  ;;  %v390_v24 = vld [vmem:[%s12547_s11 + $0x2a0] sm:$0xff] }
  0x46   : > { %10991 = vmatprep.mubr.msk.f32.mxu0 %vm504_vm0, %v328_v25  ;;  %v391_v25 = vld [vmem:[%s12547_s11 + $0x2a8] sm:$0xff] }
  0x49   : > { %10992 = vmatmul.mubr.msk.f32.gmra.mrb[22].mxu0 %vm504_vm0, %v329_v26  ;;  %v392_v26 = vld [vmem:[%s12547_s11 + $0x2b0] sm:$0xff] }
  0x4a   : > { %10994 = vmatprep.mubr.msk.f32.mxu0 %vm504_vm0, %v330_v27  ;;  %v393_v27 = vld [vmem:[%s12547_s11 + $0x2b8] sm:$0xff] }
  0x4d   : > { %10995 = vmatmul.mubr.msk.f32.gmra.mrb[24].mxu0 %vm504_vm0, %v331_v28  ;;  %v394_v28 = vld [vmem:[%s12547_s11 + $0x2c0] sm:$0xff] }
  0x4e   : > { %10997 = vmatprep.mubr.msk.f32.mxu0 %vm504_vm0, %v332_v29  ;;  %v395_v29 = vld [vmem:[%s12547_s11 + $0x2c8] sm:$0xff] }
  0x51   : > { %10998 = vmatmul.mubr.msk.f32.gmra.mrb[26].mxu0 %vm504_vm0, %v333_v30  ;;  %v396_v30 = vld [vmem:[%s12547_s11 + $0x2d0] sm:$0xff] }
  0x52   : > { %11000 = vmatprep.mubr.msk.f32.mxu0 %vm504_vm0, %v334_v31  ;;  %v397_v31 = vld [vmem:[%s12547_s11 + $0x2d8] sm:$0xff] }
  0x55   : > { %11001 = vmatmul.mubr.msk.f32.gmra.mrb[28].mxu0 %vm504_vm0, %v335_v32  ;;  %v398_v32 = vld [vmem:[%s12547_s11 + $0x2e0] sm:$0xff] }
  0x56   : > { %11003 = vmatprep.mubr.msk.f32.mxu0 %vm504_vm0, %v336_v33  ;;  %v399_v33 = vld [vmem:[%s12547_s11 + $0x2e8] sm:$0xff] }
  0x59   : > { %11004 = vmatmul.mubr.msk.f32.gmra.mrb[30].mxu0 %vm504_vm0, %v337_v34  ;;  %v400_v34 = vld [vmem:[%s12547_s11 + $0x2f0] sm:$0xff] }
  0x5a   : > { %11006 = vmatprep.mubr.msk.f32.mxu0 %vm504_vm0, %v338_v35  ;;  %v401_v35 = vld [vmem:[%s12547_s11 + $0x2f8] sm:$0xff] }
  0x5d   : > { %11007 = vmatmul.mubr.msk.f32.gmra.mrb[32].mxu0 %vm504_vm0, %v339_v36  ;;  %v402_v36 = vld [vmem:[%s12547_s11 + $0x300] sm:$0xff] }
  0x5e   : > { %11009 = vmatprep.mubr.msk.f32.mxu0 %vm504_vm0, %v340_v37  ;;  %v403_v37 = vld [vmem:[%s12547_s11 + $0x308] sm:$0xff] }
  0x61   : > { %11010 = vmatmul.mubr.msk.f32.gmra.mrb[34].mxu0 %vm504_vm0, %v341_v38  ;;  %v404_v38 = vld [vmem:[%s12547_s11 + $0x310] sm:$0xff] }
  0x62   : > { %11012 = vmatprep.mubr.msk.f32.mxu0 %vm504_vm0, %v342_v39  ;;  %v405_v39 = vld [vmem:[%s12547_s11 + $0x318] sm:$0xff] }
  0x65   : > { %11013 = vmatmul.mubr.msk.f32.gmra.mrb[36].mxu0 %vm504_vm0, %v343_v40  ;;  %v406_v40 = vld [vmem:[%s12547_s11 + $0x320] sm:$0xff] }
  0x66   : > { %11015 = vmatprep.mubr.msk.f32.mxu0 %vm504_vm0, %v344_v41  ;;  %v407_v41 = vld [vmem:[%s12547_s11 + $0x328] sm:$0xff] }
  0x69   : > { %11016 = vmatmul.mubr.msk.f32.gmra.mrb[38].mxu0 %vm504_vm0, %v345_v42  ;;  %v408_v42 = vld [vmem:[%s12547_s11 + $0x330] sm:$0xff] }
  0x6a   : > { %11018 = vmatprep.mubr.msk.f32.mxu0 %vm504_vm0, %v346_v43  ;;  %v409_v43 = vld [vmem:[%s12547_s11 + $0x338] sm:$0xff] }
  0x6d   : > { %11019 = vmatmul.mubr.msk.f32.gmra.mrb[40].mxu0 %vm504_vm0, %v347_v44  ;;  %v410_v44 = vld [vmem:[%s12547_s11 + $0x340] sm:$0xff] }
  0x6e   : > { %11021 = vmatprep.mubr.msk.f32.mxu0 %vm504_vm0, %v348_v45  ;;  %v411_v45 = vld [vmem:[%s12547_s11 + $0x348] sm:$0xff] }
  0x71   : > { %11022 = vmatmul.mubr.msk.f32.gmra.mrb[42].mxu0 %vm504_vm0, %v349_v46  ;;  %v412_v46 = vld [vmem:[%s12547_s11 + $0x350] sm:$0xff] }
  0x72   : > { %11024 = vmatprep.mubr.msk.f32.mxu0 %vm504_vm0, %v350_v47  ;;  %v413_v47 = vld [vmem:[%s12547_s11 + $0x358] sm:$0xff] }
  0x75   : > { %11025 = vmatmul.mubr.msk.f32.gmra.mrb[44].mxu0 %vm504_vm0, %v351_v48  ;;  %v414_v48 = vld [vmem:[%s12547_s11 + $0x360] sm:$0xff] }
  0x76   : > { %11027 = vmatprep.mubr.msk.f32.mxu0 %vm504_vm0, %v352_v49 }
  0x79   : > { %11028 = vmatmul.mubr.msk.f32.gmra.mrb[46].mxu0 %vm504_vm0, %v353_v50 }
  0x7a   : > { %11030 = vmatprep.mubr.msk.f32.mxu0 %vm504_vm0, %v354_v52 }
  0x7d   : > { %11031 = vmatmul.mubr.msk.f32.gmra.mrb[48].mxu0 %vm504_vm0, %v355_v53  ;;  %v415_v53 = vld [vmem:[%s12547_s11 + $0x368] sm:$0xff] }
  0x7e   : > { %11033 = vmatprep.mubr.msk.f32.mxu0 %vm504_vm0, %v356_v54  ;;  %v416_v54 = vld [vmem:[%s12547_s11 + $0x370] sm:$0xff] }
  0x81   : > { %11034 = vmatmul.mubr.msk.f32.gmra.mrb[50].mxu0 %vm504_vm0, %v357_v55 }
  0x82   : > { %11036 = vmatprep.mubr.msk.f32.mxu0 %vm504_vm0, %v358_v56 }
  0x85   : > { %11037 = vmatmul.mubr.msk.f32.gmra.mrb[52].mxu0 %vm504_vm0, %v359_v57  ;;  %v12780_v57 = vld [vmem:[%s13811_s2 + $0x8] sm:$0xff] }
  0x86   : > { %11039 = vmatprep.mubr.msk.f32.mxu0 %vm504_vm0, %v360_v58 }
  0x89   : > { %11040 = vmatmul.mubr.msk.f32.gmra.mrb[54].mxu0 %vm504_vm0, %v361_v59  ;;  %v417_v59 = vld [vmem:[%s12547_s11 + $0x378] sm:$0xff] }
  0x8a   : > { %11042 = vmatprep.mubr.msk.f32.mxu0 %vm504_vm0, %v362_v60  ;;  %v418_v60 = vld [vmem:[%s12547_s11 + $0x380] sm:$0xff] }
  0x8d   : > { %11043 = vmatmul.mubr.msk.f32.gmra.mrb[56].mxu0 %vm504_vm0, %v363_v61 }
  0x8e   : > { %11045 = vmatprep.mubr.msk.f32.mxu0 %vm504_vm0, %v364_v62 }
  0x91   : > { %11046 = vmatmul.mubr.msk.f32.gmra.mrb[58].mxu0 %vm504_vm0, %v365_v63 }
  0x92   : > { %11048 = vmatprep.mubr.msk.f32.mxu0 %vm504_vm0, %v366_v0  ;;  %v419_v0 = vld [vmem:[%s12547_s11 + $0x388] sm:$0xff] }
  0x95   : > { %11049 = vmatmul.mubr.msk.f32.gmra.mrb[60].mxu0 %vm504_vm0, %v367_v1  ;;  %v420_v1 = vld [vmem:[%s12547_s11 + $0x390] sm:$0xff] }
  0x96   : > { %11051 = vmatprep.mubr.msk.f32.mxu0 %vm504_vm0, %v368_v2 }
  0x99   : > { %11052 = vmatmul.mubr.msk.f32.gmra.mrb[62].mxu0 %vm504_vm0, %v369_v3 }
  0x9a   : > { %11054 = vmatprep.mubr.msk.f32.mxu0 %vm504_vm0, %v370_v4 }
  0x9d   : > { %11055 = vmatmul.mubr.msk.f32.gmra.mrb[64].mxu0 %vm504_vm0, %v371_v5  ;;  %v421_v5 = vld [vmem:[%s12547_s11 + $0x398] sm:$0xff] }
  0x9e   : > { %11057 = vmatprep.mubr.msk.f32.mxu0 %vm504_vm0, %v372_v6  ;;  %v422_v6 = vld [vmem:[%s12547_s11 + $0x3a0] sm:$0xff] }
  0xa1   : > { %11058 = vmatmul.mubr.msk.f32.gmra.mrb[66].mxu0 %vm504_vm0, %v373_v7 }
  0xa2   : > { %11060 = vmatprep.mubr.msk.f32.mxu0 %vm504_vm0, %v374_v8 }
  0xa5   : > { %11061 = vmatmul.mubr.msk.f32.gmra.mrb[68].mxu0 %vm504_vm0, %v375_v9 }
  0xa6   : > { %11063 = vmatprep.mubr.msk.f32.mxu0 %vm504_vm0, %v376_v10  ;;  %v423_v10 = vld [vmem:[%s12547_s11 + $0x3a8] sm:$0xff] }
  0xa9   : > { %11064 = vmatmul.mubr.msk.f32.gmra.mrb[70].mxu0 %vm504_vm0, %v377_v11  ;;  %v424_v11 = vld [vmem:[%s12547_s11 + $0x3b0] sm:$0xff] }
  0xaa   : > { %11066 = vmatprep.mubr.msk.f32.mxu0 %vm504_vm0, %v378_v12 }
  0xad   : > { %11067 = vmatmul.mubr.msk.f32.gmra.mrb[72].mxu0 %vm504_vm0, %v379_v13 }
  0xae   : > { %11069 = vmatprep.mubr.msk.f32.mxu0 %vm504_vm0, %v380_v14 }
  0xb1   : > { %11070 = vmatmul.mubr.msk.f32.gmra.mrb[74].mxu0 %vm504_vm0, %v381_v15  ;;  %v425_v15 = vld [vmem:[%s12547_s11 + $0x3b8] sm:$0xff] }
  0xb2   : > { %11072 = vmatprep.mubr.msk.f32.mxu0 %vm504_vm0, %v382_v16  ;;  %v426_v16 = vld [vmem:[%s12547_s11 + $0x3c0] sm:$0xff] }
  0xb5   : > { %11073 = vmatmul.mubr.msk.f32.gmra.mrb[76].mxu0 %vm504_vm0, %v383_v17 }
  0xb6   : > { %11075 = vmatprep.mubr.msk.f32.mxu0 %vm504_vm0, %v384_v18 }
  0xb9   : > { %11076 = vmatmul.mubr.msk.f32.gmra.mrb[78].mxu0 %vm504_vm0, %v385_v19 }
  0xba   : > { %11078 = vmatprep.mubr.msk.f32.mxu0 %vm504_vm0, %v386_v20  ;;  %v427_v20 = vld [vmem:[%s12547_s11 + $0x3c8] sm:$0xff] }
  0xbd   : > { %11079 = vmatmul.mubr.msk.f32.gmra.mrb[80].mxu0 %vm504_vm0, %v387_v21  ;;  %v428_v21 = vld [vmem:[%s12547_s11 + $0x3d0] sm:$0xff] }
  0xbe   : > { %11081 = vmatprep.mubr.msk.f32.mxu0 %vm504_vm0, %v388_v22 }
  0xc1   : > { %11082 = vmatmul.mubr.msk.f32.gmra.mrb[82].mxu0 %vm504_vm0, %v389_v23 }
  0xc2   : > { %11084 = vmatprep.mubr.msk.f32.mxu0 %vm504_vm0, %v390_v24 }
  0xc5   : > { %11085 = vmatmul.mubr.msk.f32.gmra.mrb[84].mxu0 %vm504_vm0, %v391_v25  ;;  %v429_v25 = vld [vmem:[%s12547_s11 + $0x3d8] sm:$0xff] }
  0xc6   : > { %11087 = vmatprep.mubr.msk.f32.mxu0 %vm504_vm0, %v392_v26  ;;  %v430_v26 = vld [vmem:[%s12547_s11 + $0x3e0] sm:$0xff] }
  0xc9   : > { %11088 = vmatmul.mubr.msk.f32.gmra.mrb[86].mxu0 %vm504_vm0, %v393_v27 }
  0xca   : > { %11090 = vmatprep.mubr.msk.f32.mxu0 %vm504_vm0, %v394_v28 }
  0xcd   : > { %11091 = vmatmul.mubr.msk.f32.gmra.mrb[88].mxu0 %vm504_vm0, %v395_v29 }
  0xce   : > { %11093 = vmatprep.mubr.msk.f32.mxu0 %vm504_vm0, %v396_v30  ;;  %v431_v30 = vld [vmem:[%s12547_s11 + $0x3e8] sm:$0xff] }
  0xd1   : > { %11094 = vmatmul.mubr.msk.f32.gmra.mrb[90].mxu0 %vm504_vm0, %v397_v31  ;;  %v432_v31 = vld [vmem:[%s12547_s11 + $0x3f0] sm:$0xff] }
  0xd2   : > { %11096 = vmatprep.mubr.msk.f32.mxu0 %vm504_vm0, %v398_v32 }
  0xd5   : > { %11097 = vmatmul.mubr.msk.f32.gmra.mrb[92].mxu0 %vm504_vm0, %v399_v33 }
  0xd6   : > { %11099 = vmatprep.mubr.msk.f32.mxu0 %vm504_vm0, %v400_v34 }
  0xd9   : > { %11100 = vmatmul.mubr.msk.f32.gmra.mrb[94].mxu0 %vm504_vm0, %v401_v35  ;;  %v433_v35 = vld [vmem:[%s12547_s11 + $0x3f8] sm:$0xff] }
  0xda   : > { %11102 = vmatprep.mubr.msk.f32.mxu0 %vm504_vm0, %v402_v36  ;;  %v434_v36 = vld [vmem:[%s12547_s11 + $0x400] sm:$0xff] }
  0xdd   : > { %11103 = vmatmul.mubr.msk.f32.gmra.mrb[96].mxu0 %vm504_vm0, %v403_v37 }
  0xde   : > { %11105 = vmatprep.mubr.msk.f32.mxu0 %vm504_vm0, %v404_v38 }
  0xe1   : > { %11106 = vmatmul.mubr.msk.f32.gmra.mrb[98].mxu0 %vm504_vm0, %v405_v39 }
  0xe2   : > { %11108 = vmatprep.mubr.msk.f32.mxu0 %vm504_vm0, %v406_v40  ;;  %v435_v40 = vld [vmem:[%s12547_s11 + $0x408] sm:$0xff] }
  0xe5   : > { %11109 = vmatmul.mubr.msk.f32.gmra.mrb[100].mxu0 %vm504_vm0, %v407_v41  ;;  %v436_v41 = vld [vmem:[%s12547_s11 + $0x410] sm:$0xff] }
  0xe6   : > { %11111 = vmatprep.mubr.msk.f32.mxu0 %vm504_vm0, %v408_v42 }
  0xe9   : > { %11112 = vmatmul.mubr.msk.f32.gmra.mrb[102].mxu0 %vm504_vm0, %v409_v43 }
  0xea   : > { %11114 = vmatprep.mubr.msk.f32.mxu0 %vm504_vm0, %v410_v44 }
  0xed   : > { %11115 = vmatmul.mubr.msk.f32.gmra.mrb[104].mxu0 %vm504_vm0, %v411_v45  ;;  %v437_v45 = vld [vmem:[%s12547_s11 + $0x418] sm:$0xff] }
  0xee   : > { %11117 = vmatprep.mubr.msk.f32.mxu0 %vm504_vm0, %v412_v46  ;;  %v438_v46 = vld [vmem:[%s12547_s11 + $0x420] sm:$0xff] }
  0xf0   : > { %v10960_v49 = vpop.f32.mrb[0].mxu0 }
  0xf1   : > { %v1147_v50 = vpop.f32.mrb[1].mxu0  ;;  %11118 = vmatmul.mubr.msk.f32.gmra.mrb[106].mxu0 %vm504_vm0, %v413_v47 }
  0xf2   : > { %v11922_v52 = vpack.c.bf16 %v10960_v49, %v1147_v50  ;;  %11120 = vmatprep.mubr.msk.f32.mxu0 %vm504_vm0, %v414_v48  ;;  %v439_v50 = vld [vmem:[%s12547_s11 + $0x428] sm:$0xff] }
  0xf4   : > { %v10963_v55 = vpop.f32.mrb[2].mxu0  ;;  %11923 = vmatprep.subr.bf16.mxu1 %v11922_v52 }
  0xf5   : > { %v1157_v56 = vpop.f32.mrb[3].mxu0  ;;  %11121 = vmatmul.mubr.msk.f32.gmra.mrb[108].mxu0 %vm504_vm0, %v415_v53  ;;  %11925 = vmatpush3.bf16.msra.mxu1 %v11922_v52  ;;  %v440_v52 = vld [vmem:[%s12547_s11 + $0x430] sm:$0xff] }
  0xf6   : > { %v11926_v58 = vpack.c.bf16 %v10963_v55, %v1157_v56  ;;  %11123 = vmatprep.mubr.msk.f32.mxu0 %vm504_vm0, %v416_v54  ;;  %v441_v56 = vld [vmem:[%s12547_s11 + $0x438] sm:$0xff] }
  0xf8   : > { %v10966_v61 = vpop.f32.mrb[4].mxu0  ;;  %11251 = vmatmul.mubr.msk.f32.vlgmr.msra.gmra.mrb[0].mxu1 %vm504_vm0, %v12780_v57  ;;  %11927 = vmatprep.subr.bf16.mxu1 %v11926_v58 }
  0xf9   : > { %v1167_v62 = vpop.f32.mrb[5].mxu0  ;;  %11124 = vmatmul.mubr.msk.f32.gmra.mrb[110].mxu0 %vm504_vm0, %v417_v59  ;;  %11929 = vmatpush3.bf16.msra.mxu1 %v11926_v58  ;;  %v442_v58 = vld [vmem:[%s12547_s11 + $0x440] sm:$0xff] }
  0xfa   : > { %v11930_v63 = vpack.c.bf16 %v10966_v61, %v1167_v62  ;;  %11257 = vmatprep.mubr.msk.f32.mxu1 %vm504_vm0, %v12647_v51  ;;  %11126 = vmatprep.mubr.msk.f32.mxu0 %vm504_vm0, %v418_v60  ;;  %v443_v62 = vld [vmem:[%s12547_s11 + $0x448] sm:$0xff] }
  0xfc   : > { %v10969_v2 = vpop.f32.mrb[6].mxu0  ;;  %11258 = vmatmul.mubr.msk.f32.vlgmr.msra.gmra.mrb[2].mxu1 %vm504_vm0, %v12780_v57  ;;  %11931 = vmatprep.subr.bf16.mxu1 %v11930_v63 }
  0xfd   : > { %v1177_v3 = vpop.f32.mrb[7].mxu0  ;;  %11127 = vmatmul.mubr.msk.f32.gmra.mrb[112].mxu0 %vm504_vm0, %v419_v0  ;;  %11933 = vmatpush3.bf16.msra.mxu1 %v11930_v63  ;;  %v444_v63 = vld [vmem:[%s12547_s11 + $0x450] sm:$0xff] }
  0xfe   : > { %v11934_v4 = vpack.c.bf16 %v10969_v2, %v1177_v3  ;;  %11264 = vmatprep.mubr.msk.f32.mxu1 %vm504_vm0, %v12647_v51  ;;  %11129 = vmatprep.mubr.msk.f32.mxu0 %vm504_vm0, %v420_v1  ;;  %v445_v3 = vld [vmem:[%s12547_s11 + $0x458] sm:$0xff] }
 0x100   : > { %v10972_v7 = vpop.f32.mrb[8].mxu0  ;;  %11265 = vmatmul.mubr.msk.f32.vlgmr.msra.gmra.mrb[4].mxu1 %vm504_vm0, %v12780_v57  ;;  %11935 = vmatprep.subr.bf16.mxu1 %v11934_v4 }
 0x101   : > { %v1187_v8 = vpop.f32.mrb[9].mxu0  ;;  %11130 = vmatmul.mubr.msk.f32.gmra.mrb[114].mxu0 %vm504_vm0, %v421_v5  ;;  %11937 = vmatpush3.bf16.msra.mxu1 %v11934_v4  ;;  %v446_v4 = vld [vmem:[%s12547_s11 + $0x460] sm:$0xff] }
 0x102   : > { %v11938_v9 = vpack.c.bf16 %v10972_v7, %v1187_v8  ;;  %11271 = vmatprep.mubr.msk.f32.mxu1 %vm504_vm0, %v12647_v51  ;;  %11132 = vmatprep.mubr.msk.f32.mxu0 %vm504_vm0, %v422_v6  ;;  %v447_v8 = vld [vmem:[%s12547_s11 + $0x468] sm:$0xff] }
 0x104   : > { %v10975_v12 = vpop.f32.mrb[10].mxu0  ;;  %11272 = vmatmul.mubr.msk.f32.vlgmr.msra.gmra.mrb[6].mxu1 %vm504_vm0, %v12780_v57  ;;  %11939 = vmatprep.subr.bf16.mxu1 %v11938_v9 }
 0x105   : > { %v1197_v13 = vpop.f32.mrb[11].mxu0  ;;  %11133 = vmatmul.mubr.msk.f32.gmra.mrb[116].mxu0 %vm504_vm0, %v423_v10  ;;  %11941 = vmatpush3.bf16.msra.mxu1 %v11938_v9  ;;  %v448_v9 = vld [vmem:[%s12547_s11 + $0x470] sm:$0xff] }
 0x106   : > { %v11942_v14 = vpack.c.bf16 %v10975_v12, %v1197_v13  ;;  %11278 = vmatprep.mubr.msk.f32.mxu1 %vm504_vm0, %v12647_v51  ;;  %11135 = vmatprep.mubr.msk.f32.mxu0 %vm504_vm0, %v424_v11  ;;  %v449_v13 = vld [vmem:[%s12547_s11 + $0x478] sm:$0xff] }
 0x108   : > { %v10978_v17 = vpop.f32.mrb[12].mxu0  ;;  %11279 = vmatmul.mubr.msk.f32.vlgmr.msra.gmra.mrb[8].mxu1 %vm504_vm0, %v12780_v57  ;;  %11943 = vmatprep.subr.bf16.mxu1 %v11942_v14 }
 0x109   : > { %v1207_v18 = vpop.f32.mrb[13].mxu0  ;;  %11136 = vmatmul.mubr.msk.f32.gmra.mrb[118].mxu0 %vm504_vm0, %v425_v15  ;;  %11945 = vmatpush3.bf16.msra.mxu1 %v11942_v14  ;;  %v450_v14 = vld [vmem:[%s12547_s11 + $0x480] sm:$0xff] }
 0x10a   : > { %v11946_v19 = vpack.c.bf16 %v10978_v17, %v1207_v18  ;;  %11285 = vmatprep.mubr.msk.f32.mxu1 %vm504_vm0, %v12647_v51  ;;  %11138 = vmatprep.mubr.msk.f32.mxu0 %vm504_vm0, %v426_v16  ;;  %v451_v18 = vld [vmem:[%s12547_s11 + $0x488] sm:$0xff] }
 0x10c   : > { %v10981_v22 = vpop.f32.mrb[14].mxu0  ;;  %11286 = vmatmul.mubr.msk.f32.vlgmr.msra.gmra.mrb[10].mxu1 %vm504_vm0, %v12780_v57  ;;  %11947 = vmatprep.subr.bf16.mxu1 %v11946_v19 }
 0x10d   : > { %v1217_v23 = vpop.f32.mrb[15].mxu0  ;;  %11139 = vmatmul.mubr.msk.f32.gmra.mrb[120].mxu0 %vm504_vm0, %v427_v20  ;;  %11949 = vmatpush3.bf16.msra.mxu1 %v11946_v19  ;;  %v452_v19 = vld [vmem:[%s12547_s11 + $0x490] sm:$0xff] }
 0x10e   : > { %v11950_v24 = vpack.c.bf16 %v10981_v22, %v1217_v23  ;;  %11292 = vmatprep.mubr.msk.f32.mxu1 %vm504_vm0, %v12647_v51  ;;  %11141 = vmatprep.mubr.msk.f32.mxu0 %vm504_vm0, %v428_v21  ;;  %v453_v23 = vld [vmem:[%s12547_s11 + $0x498] sm:$0xff] }
 0x110   : > { %v10984_v27 = vpop.f32.mrb[16].mxu0  ;;  %11293 = vmatmul.mubr.msk.f32.vlgmr.msra.gmra.mrb[12].mxu1 %vm504_vm0, %v12780_v57  ;;  %11951 = vmatprep.subr.bf16.mxu1 %v11950_v24 }
 0x111   : > { %v1227_v28 = vpop.f32.mrb[17].mxu0  ;;  %11142 = vmatmul.mubr.msk.f32.gmra.mrb[122].mxu0 %vm504_vm0, %v429_v25  ;;  %11953 = vmatpush3.bf16.msra.mxu1 %v11950_v24  ;;  %v454_v24 = vld [vmem:[%s12547_s11 + $0x4a0] sm:$0xff] }
 0x112   : > { %v11954_v29 = vpack.c.bf16 %v10984_v27, %v1227_v28  ;;  %11299 = vmatprep.mubr.msk.f32.mxu1 %vm504_vm0, %v12647_v51  ;;  %11144 = vmatprep.mubr.msk.f32.mxu0 %vm504_vm0, %v430_v26  ;;  %v455_v28 = vld [vmem:[%s12547_s11 + $0x4a8] sm:$0xff] }
 0x114   : > { %v10987_v32 = vpop.f32.mrb[18].mxu0  ;;  %11300 = vmatmul.mubr.msk.f32.vlgmr.msra.gmra.mrb[14].mxu1 %vm504_vm0, %v12780_v57  ;;  %11955 = vmatprep.subr.bf16.mxu1 %v11954_v29 }
 0x115   : > { %v1237_v33 = vpop.f32.mrb[19].mxu0  ;;  %11145 = vmatmul.mubr.msk.f32.gmra.mrb[124].mxu0 %vm504_vm0, %v431_v30  ;;  %11957 = vmatpush3.bf16.msra.mxu1 %v11954_v29  ;;  %v456_v29 = vld [vmem:[%s12547_s11 + $0x4b0] sm:$0xff] }
 0x116   : > { %v11958_v34 = vpack.c.bf16 %v10987_v32, %v1237_v33  ;;  %11306 = vmatprep.mubr.msk.f32.mxu1 %vm504_vm0, %v12647_v51  ;;  %11147 = vmatprep.mubr.msk.f32.mxu0 %vm504_vm0, %v432_v31  ;;  %v457_v33 = vld [vmem:[%s12547_s11 + $0x4b8] sm:$0xff] }
 0x118   : > { %v10990_v37 = vpop.f32.mrb[20].mxu0  ;;  %11307 = vmatmul.mubr.msk.f32.vlgmr.msra.gmra.mrb[16].mxu1 %vm504_vm0, %v12780_v57  ;;  %11959 = vmatprep.subr.bf16.mxu1 %v11958_v34 }
 0x119   : > { %v1247_v38 = vpop.f32.mrb[21].mxu0  ;;  %11148 = vmatmul.mubr.msk.f32.gmra.mrb[126].mxu0 %vm504_vm0, %v433_v35  ;;  %11961 = vmatpush3.bf16.msra.mxu1 %v11958_v34  ;;  %v458_v34 = vld [vmem:[%s12547_s11 + $0x4c0] sm:$0xff] }
 0x11a   : > { %v11962_v39 = vpack.c.bf16 %v10990_v37, %v1247_v38  ;;  %11313 = vmatprep.mubr.msk.f32.mxu1 %vm504_vm0, %v12647_v51  ;;  %11150 = vmatprep.mubr.msk.f32.mxu0 %vm504_vm0, %v434_v36  ;;  %v459_v38 = vld [vmem:[%s12547_s11 + $0x4c8] sm:$0xff] }
 0x11c   : > { %v10993_v42 = vpop.f32.mrb[22].mxu0  ;;  %11314 = vmatmul.mubr.msk.f32.vlgmr.msra.gmra.mrb[18].mxu1 %vm504_vm0, %v12780_v57  ;;  %11963 = vmatprep.subr.bf16.mxu1 %v11962_v39 }
 0x11d   : > { %v1257_v43 = vpop.f32.mrb[23].mxu0  ;;  %11151 = vmatmul.mubr.msk.f32.gmra.mrb[128].mxu0 %vm504_vm0, %v435_v40  ;;  %11965 = vmatpush3.bf16.msra.mxu1 %v11962_v39  ;;  %v460_v39 = vld [vmem:[%s12547_s11 + $0x4d0] sm:$0xff] }
 0x11e   : > { %v11966_v44 = vpack.c.bf16 %v10993_v42, %v1257_v43  ;;  %11320 = vmatprep.mubr.msk.f32.mxu1 %vm504_vm0, %v12647_v51  ;;  %11153 = vmatprep.mubr.msk.f32.mxu0 %vm504_vm0, %v436_v41  ;;  %v461_v43 = vld [vmem:[%s12547_s11 + $0x4d8] sm:$0xff] }
 0x120   : > { %v10996_v47 = vpop.f32.mrb[24].mxu0  ;;  %11321 = vmatmul.mubr.msk.f32.vlgmr.msra.gmra.mrb[20].mxu1 %vm504_vm0, %v12780_v57  ;;  %11967 = vmatprep.subr.bf16.mxu1 %v11966_v44 }
 0x121   : > { %v1267_v48 = vpop.f32.mrb[25].mxu0  ;;  %11154 = vmatmul.mubr.msk.f32.gmra.mrb[130].mxu0 %vm504_vm0, %v437_v45  ;;  %11969 = vmatpush3.bf16.msra.mxu1 %v11966_v44  ;;  %v462_v44 = vld [vmem:[%s12547_s11 + $0x4e0] sm:$0xff] }
 0x122   : > { %v11970_v49 = vpack.c.bf16 %v10996_v47, %v1267_v48  ;;  %11327 = vmatprep.mubr.msk.f32.mxu1 %vm504_vm0, %v12647_v51  ;;  %11156 = vmatprep.mubr.msk.f32.mxu0 %vm504_vm0, %v438_v46  ;;  %v463_v48 = vld [vmem:[%s12547_s11 + $0x4e8] sm:$0xff] }
 0x124   : > { %v10999_v53 = vpop.f32.mrb[26].mxu0  ;;  %11328 = vmatmul.mubr.msk.f32.vlgmr.msra.gmra.mrb[22].mxu1 %vm504_vm0, %v12780_v57  ;;  %11971 = vmatprep.subr.bf16.mxu1 %v11970_v49 }
 0x125   : > { %v1277_v54 = vpop.f32.mrb[27].mxu0  ;;  %11157 = vmatmul.mubr.msk.f32.gmra.mrb[132].mxu0 %vm504_vm0, %v439_v50  ;;  %11973 = vmatpush3.bf16.msra.mxu1 %v11970_v49  ;;  %v464_v49 = vld [vmem:[%s12547_s11 + $0x4f0] sm:$0xff] }
 0x126   : > { %v11974_v55 = vpack.c.bf16 %v10999_v53, %v1277_v54  ;;  %11334 = vmatprep.mubr.msk.f32.mxu1 %vm504_vm0, %v12647_v51  ;;  %11159 = vmatprep.mubr.msk.f32.mxu0 %vm504_vm0, %v440_v52  ;;  %v465_v54 = vld [vmem:[%s12547_s11 + $0x4f8] sm:$0xff] }
 0x128   : > { %v11002_v59 = vpop.f32.mrb[28].mxu0  ;;  %11335 = vmatmul.mubr.msk.f32.vlgmr.msra.gmra.mrb[24].mxu1 %vm504_vm0, %v12780_v57  ;;  %11975 = vmatprep.subr.bf16.mxu1 %v11974_v55 }
 0x129   : > { %v1287_v60 = vpop.f32.mrb[29].mxu0  ;;  %11160 = vmatmul.mubr.msk.f32.gmra.mrb[134].mxu0 %vm504_vm0, %v441_v56  ;;  %11977 = vmatpush3.bf16.msra.mxu1 %v11974_v55  ;;  %v466_v55 = vld [vmem:[%s12547_s11 + $0x500] sm:$0xff] }
 0x12a   : > { %v11978_v61 = vpack.c.bf16 %v11002_v59, %v1287_v60  ;;  %11341 = vmatprep.mubr.msk.f32.mxu1 %vm504_vm0, %v12647_v51  ;;  %11162 = vmatprep.mubr.msk.f32.mxu0 %vm504_vm0, %v442_v58  ;;  %v467_v60 = vld [vmem:[%s12547_s11 + $0x508] sm:$0xff] }
 0x12c   : > { %v11005_v0 = vpop.f32.mrb[30].mxu0  ;;  %11342 = vmatmul.mubr.msk.f32.vlgmr.msra.gmra.mrb[26].mxu1 %vm504_vm0, %v12780_v57  ;;  %11979 = vmatprep.subr.bf16.mxu1 %v11978_v61 }
 0x12d   : > { %v1297_v1 = vpop.f32.mrb[31].mxu0  ;;  %11163 = vmatmul.mubr.msk.f32.gmra.mrb[136].mxu0 %vm504_vm0, %v443_v62  ;;  %11981 = vmatpush3.bf16.msra.mxu1 %v11978_v61  ;;  %v468_v61 = vld [vmem:[%s12547_s11 + $0x510] sm:$0xff] }
 0x12e   : > { %v11982_v2 = vpack.c.bf16 %v11005_v0, %v1297_v1  ;;  %11348 = vmatprep.mubr.msk.f32.mxu1 %vm504_vm0, %v12647_v51  ;;  %11165 = vmatprep.mubr.msk.f32.mxu0 %vm504_vm0, %v444_v63  ;;  %v469_v1 = vld [vmem:[%s12547_s11 + $0x518] sm:$0xff] }
 0x130   : > { %v11008_v5 = vpop.f32.mrb[32].mxu0  ;;  %11349 = vmatmul.mubr.msk.f32.vlgmr.msra.gmra.mrb[28].mxu1 %vm504_vm0, %v12780_v57  ;;  %11983 = vmatprep.subr.bf16.mxu1 %v11982_v2 }
 0x131   : > { %v1307_v6 = vpop.f32.mrb[33].mxu0  ;;  %11166 = vmatmul.mubr.msk.f32.gmra.mrb[138].mxu0 %vm504_vm0, %v445_v3  ;;  %11985 = vmatpush3.bf16.msra.mxu1 %v11982_v2  ;;  %v470_v2 = vld [vmem:[%s12547_s11 + $0x520] sm:$0xff] }
 0x132   : > { %v11986_v7 = vpack.c.bf16 %v11008_v5, %v1307_v6  ;;  %11355 = vmatprep.mubr.msk.f32.mxu1 %vm504_vm0, %v12647_v51  ;;  %11168 = vmatprep.mubr.msk.f32.mxu0 %vm504_vm0, %v446_v4  ;;  %v471_v6 = vld [vmem:[%s12547_s11 + $0x528] sm:$0xff] }
 0x134   : > { %v11011_v10 = vpop.f32.mrb[34].mxu0  ;;  %11356 = vmatmul.mubr.msk.f32.vlgmr.msra.gmra.mrb[30].mxu1 %vm504_vm0, %v12780_v57  ;;  %11987 = vmatprep.subr.bf16.mxu1 %v11986_v7 }
 0x135   : > { %v1317_v11 = vpop.f32.mrb[35].mxu0  ;;  %11169 = vmatmul.mubr.msk.f32.gmra.mrb[140].mxu0 %vm504_vm0, %v447_v8  ;;  %11989 = vmatpush3.bf16.msra.mxu1 %v11986_v7  ;;  %v472_v7 = vld [vmem:[%s12547_s11 + $0x530] sm:$0xff] }
 0x136   : > { %v11990_v12 = vpack.c.bf16 %v11011_v10, %v1317_v11  ;;  %11362 = vmatprep.mubr.msk.f32.mxu1 %vm504_vm0, %v12647_v51  ;;  %11171 = vmatprep.mubr.msk.f32.mxu0 %vm504_vm0, %v448_v9  ;;  %v473_v11 = vld [vmem:[%s12547_s11 + $0x538] sm:$0xff] }
 0x138   : > { %v11014_v15 = vpop.f32.mrb[36].mxu0  ;;  %11363 = vmatmul.mubr.msk.f32.vlgmr.msra.gmra.mrb[32].mxu1 %vm504_vm0, %v12780_v57  ;;  %11991 = vmatprep.subr.bf16.mxu1 %v11990_v12 }
 0x139   : > { %v1327_v16 = vpop.f32.mrb[37].mxu0  ;;  %11172 = vmatmul.mubr.msk.f32.gmra.mrb[142].mxu0 %vm504_vm0, %v449_v13  ;;  %11993 = vmatpush3.bf16.msra.mxu1 %v11990_v12  ;;  %v474_v12 = vld [vmem:[%s12547_s11 + $0x540] sm:$0xff] }
 0x13a   : > { %v11994_v17 = vpack.c.bf16 %v11014_v15, %v1327_v16  ;;  %11369 = vmatprep.mubr.msk.f32.mxu1 %vm504_vm0, %v12647_v51  ;;  %11174 = vmatprep.mubr.msk.f32.mxu0 %vm504_vm0, %v450_v14  ;;  %v475_v16 = vld [vmem:[%s12547_s11 + $0x548] sm:$0xff] }
 0x13c   : > { %v11017_v20 = vpop.f32.mrb[38].mxu0  ;;  %11370 = vmatmul.mubr.msk.f32.vlgmr.msra.gmra.mrb[34].mxu1 %vm504_vm0, %v12780_v57  ;;  %11995 = vmatprep.subr.bf16.mxu1 %v11994_v17 }
 0x13d   : > { %v1337_v21 = vpop.f32.mrb[39].mxu0  ;;  %11175 = vmatmul.mubr.msk.f32.gmra.mrb[144].mxu0 %vm504_vm0, %v451_v18  ;;  %11997 = vmatpush3.bf16.msra.mxu1 %v11994_v17  ;;  %v476_v17 = vld [vmem:[%s12547_s11 + $0x550] sm:$0xff] }
 0x13e   : > { %v11998_v22 = vpack.c.bf16 %v11017_v20, %v1337_v21  ;;  %11376 = vmatprep.mubr.msk.f32.mxu1 %vm504_vm0, %v12647_v51  ;;  %11177 = vmatprep.mubr.msk.f32.mxu0 %vm504_vm0, %v452_v19  ;;  %v477_v21 = vld [vmem:[%s12547_s11 + $0x558] sm:$0xff] }
 0x140   : > { %v11020_v25 = vpop.f32.mrb[40].mxu0  ;;  %11377 = vmatmul.mubr.msk.f32.vlgmr.msra.gmra.mrb[36].mxu1 %vm504_vm0, %v12780_v57  ;;  %11999 = vmatprep.subr.bf16.mxu1 %v11998_v22 }
 0x141   : > { %v1347_v26 = vpop.f32.mrb[41].mxu0  ;;  %11178 = vmatmul.mubr.msk.f32.gmra.mrb[146].mxu0 %vm504_vm0, %v453_v23  ;;  %12001 = vmatpush3.bf16.msra.mxu1 %v11998_v22  ;;  %v478_v22 = vld [vmem:[%s12547_s11 + $0x560] sm:$0xff] }
 0x142   : > { %v12002_v27 = vpack.c.bf16 %v11020_v25, %v1347_v26  ;;  %11383 = vmatprep.mubr.msk.f32.mxu1 %vm504_vm0, %v12647_v51  ;;  %11180 = vmatprep.mubr.msk.f32.mxu0 %vm504_vm0, %v454_v24  ;;  %v479_v26 = vld [vmem:[%s12547_s11 + $0x568] sm:$0xff] }
 0x144   : > { %v11023_v30 = vpop.f32.mrb[42].mxu0  ;;  %11384 = vmatmul.mubr.msk.f32.vlgmr.msra.gmra.mrb[38].mxu1 %vm504_vm0, %v12780_v57  ;;  %12003 = vmatprep.subr.bf16.mxu1 %v12002_v27 }
 0x145   : > { %v1357_v31 = vpop.f32.mrb[43].mxu0  ;;  %11181 = vmatmul.mubr.msk.f32.gmra.mrb[148].mxu0 %vm504_vm0, %v455_v28  ;;  %12005 = vmatpush3.bf16.msra.mxu1 %v12002_v27  ;;  %v480_v27 = vld [vmem:[%s12547_s11 + $0x570] sm:$0xff] }
 0x146   : > { %v12006_v32 = vpack.c.bf16 %v11023_v30, %v1357_v31  ;;  %11390 = vmatprep.mubr.msk.f32.mxu1 %vm504_vm0, %v12647_v51  ;;  %11183 = vmatprep.mubr.msk.f32.mxu0 %vm504_vm0, %v456_v29  ;;  %v481_v31 = vld [vmem:[%s12547_s11 + $0x578] sm:$0xff] }
 0x148   : > { %v11026_v35 = vpop.f32.mrb[44].mxu0  ;;  %11391 = vmatmul.mubr.msk.f32.vlgmr.msra.gmra.mrb[40].mxu1 %vm504_vm0, %v12780_v57  ;;  %12007 = vmatprep.subr.bf16.mxu1 %v12006_v32 }
 0x149   : > { %v1367_v36 = vpop.f32.mrb[45].mxu0  ;;  %11184 = vmatmul.mubr.msk.f32.gmra.mrb[150].mxu0 %vm504_vm0, %v457_v33  ;;  %12009 = vmatpush3.bf16.msra.mxu1 %v12006_v32  ;;  %v482_v32 = vld [vmem:[%s12547_s11 + $0x580] sm:$0xff] }
 0x14a   : > { %v12010_v37 = vpack.c.bf16 %v11026_v35, %v1367_v36  ;;  %11397 = vmatprep.mubr.msk.f32.mxu1 %vm504_vm0, %v12647_v51  ;;  %11186 = vmatprep.mubr.msk.f32.mxu0 %vm504_vm0, %v458_v34  ;;  %v483_v36 = vld [vmem:[%s12547_s11 + $0x588] sm:$0xff] }
 0x14c   : > { %v11029_v40 = vpop.f32.mrb[46].mxu0  ;;  %11398 = vmatmul.mubr.msk.f32.vlgmr.msra.gmra.mrb[42].mxu1 %vm504_vm0, %v12780_v57  ;;  %12011 = vmatprep.subr.bf16.mxu1 %v12010_v37 }
 0x14d   : > { %v1377_v41 = vpop.f32.mrb[47].mxu0  ;;  %11187 = vmatmul.mubr.msk.f32.gmra.mrb[152].mxu0 %vm504_vm0, %v459_v38  ;;  %12013 = vmatpush3.bf16.msra.mxu1 %v12010_v37  ;;  %v484_v37 = vld [vmem:[%s12547_s11 + $0x590] sm:$0xff] }
 0x14e   : > { %v12014_v42 = vpack.c.bf16 %v11029_v40, %v1377_v41  ;;  %11404 = vmatprep.mubr.msk.f32.mxu1 %vm504_vm0, %v12647_v51  ;;  %11189 = vmatprep.mubr.msk.f32.mxu0 %vm504_vm0, %v460_v39  ;;  %v485_v41 = vld [vmem:[%s12547_s11 + $0x598] sm:$0xff] }
 0x150   : > { %v11032_v45 = vpop.f32.mrb[48].mxu0  ;;  %11405 = vmatmul.mubr.msk.f32.vlgmr.msra.gmra.mrb[44].mxu1 %vm504_vm0, %v12780_v57  ;;  %12015 = vmatprep.subr.bf16.mxu1 %v12014_v42 }
 0x151   : > { %v1387_v46 = vpop.f32.mrb[49].mxu0  ;;  %11190 = vmatmul.mubr.msk.f32.gmra.mrb[154].mxu0 %vm504_vm0, %v461_v43  ;;  %12017 = vmatpush3.bf16.msra.mxu1 %v12014_v42  ;;  %v486_v42 = vld [vmem:[%s12547_s11 + $0x5a0] sm:$0xff] }
 0x152   : > { %v12018_v47 = vpack.c.bf16 %v11032_v45, %v1387_v46  ;;  %11411 = vmatprep.mubr.msk.f32.mxu1 %vm504_vm0, %v12647_v51  ;;  %11192 = vmatprep.mubr.msk.f32.mxu0 %vm504_vm0, %v462_v44  ;;  %v487_v46 = vld [vmem:[%s12547_s11 + $0x5a8] sm:$0xff] }
 0x154   : > { %v11035_v50 = vpop.f32.mrb[50].mxu0  ;;  %11412 = vmatmul.mubr.msk.f32.vlgmr.msra.gmra.mrb[46].mxu1 %vm504_vm0, %v12780_v57  ;;  %12019 = vmatprep.subr.bf16.mxu1 %v12018_v47 }
 0x155   : > { %v1397_v52 = vpop.f32.mrb[51].mxu0  ;;  %11193 = vmatmul.mubr.msk.f32.gmra.mrb[156].mxu0 %vm504_vm0, %v463_v48  ;;  %12021 = vmatpush3.bf16.msra.mxu1 %v12018_v47  ;;  %v488_v47 = vld [vmem:[%s12547_s11 + $0x5b0] sm:$0xff] }
 0x156   : > { %v12022_v53 = vpack.c.bf16 %v11035_v50, %v1397_v52  ;;  %11418 = vmatprep.mubr.msk.f32.mxu1 %vm504_vm0, %v12647_v51  ;;  %11195 = vmatprep.mubr.msk.f32.mxu0 %vm504_vm0, %v464_v49  ;;  %v489_v52 = vld [vmem:[%s12547_s11 + $0x5b8] sm:$0xff] }
 0x158   : > { %v11038_v56 = vpop.f32.mrb[52].mxu0  ;;  %11419 = vmatmul.mubr.msk.f32.vlgmr.msra.gmra.mrb[48].mxu1 %vm504_vm0, %v12780_v57  ;;  %12023 = vmatprep.subr.bf16.mxu1 %v12022_v53 }
 0x159   : > { %v1407_v58 = vpop.f32.mrb[53].mxu0  ;;  %11196 = vmatmul.mubr.msk.f32.gmra.mrb[158].mxu0 %vm504_vm0, %v465_v54  ;;  %12025 = vmatpush3.bf16.msra.mxu1 %v12022_v53  ;;  %v490_v53 = vld [vmem:[%s12547_s11 + $0x5c0] sm:$0xff] }
 0x15a   : > { %v12026_v59 = vpack.c.bf16 %v11038_v56, %v1407_v58  ;;  %11425 = vmatprep.mubr.msk.f32.mxu1 %vm504_vm0, %v12647_v51  ;;  %11198 = vmatprep.mubr.msk.f32.mxu0 %vm504_vm0, %v466_v55  ;;  %v491_v58 = vld [vmem:[%s12547_s11 + $0x5c8] sm:$0xff] }
 0x15c   : > { %v11041_v62 = vpop.f32.mrb[54].mxu0  ;;  %11426 = vmatmul.mubr.msk.f32.vlgmr.msra.gmra.mrb[50].mxu1 %vm504_vm0, %v12780_v57  ;;  %12027 = vmatprep.subr.bf16.mxu1 %v12026_v59 }
 0x15d   : > { %v1417_v63 = vpop.f32.mrb[55].mxu0  ;;  %11199 = vmatmul.mubr.msk.f32.gmra.mrb[160].mxu0 %vm504_vm0, %v467_v60  ;;  %12029 = vmatpush3.bf16.msra.mxu1 %v12026_v59  ;;  %v492_v59 = vld [vmem:[%s12547_s11 + $0x5d0] sm:$0xff] }
 0x15e   : > { %v12030_v0 = vpack.c.bf16 %v11041_v62, %v1417_v63  ;;  %11432 = vmatprep.mubr.msk.f32.mxu1 %vm504_vm0, %v12647_v51  ;;  %11201 = vmatprep.mubr.msk.f32.mxu0 %vm504_vm0, %v468_v61  ;;  %v493_v63 = vld [vmem:[%s12547_s11 + $0x5d8] sm:$0xff] }
 0x160   : > { %v11044_v3 = vpop.f32.mrb[56].mxu0  ;;  %11433 = vmatmul.mubr.msk.f32.vlgmr.msra.gmra.mrb[52].mxu1 %vm504_vm0, %v12780_v57  ;;  %12031 = vmatprep.subr.bf16.mxu1 %v12030_v0 }
 0x161   : > { %v1427_v4 = vpop.f32.mrb[57].mxu0  ;;  %11202 = vmatmul.mubr.msk.f32.gmra.mrb[162].mxu0 %vm504_vm0, %v469_v1  ;;  %12033 = vmatpush3.bf16.msra.mxu1 %v12030_v0  ;;  %v494_v0 = vld [vmem:[%s12547_s11 + $0x5e0] sm:$0xff] }
 0x162   : > { %v12034_v5 = vpack.c.bf16 %v11044_v3, %v1427_v4  ;;  %11439 = vmatprep.mubr.msk.f32.mxu1 %vm504_vm0, %v12647_v51  ;;  %11204 = vmatprep.mubr.msk.f32.mxu0 %vm504_vm0, %v470_v2  ;;  %v495_v4 = vld [vmem:[%s12547_s11 + $0x5e8] sm:$0xff] }
 0x164   : > { %v11047_v8 = vpop.f32.mrb[58].mxu0  ;;  %11440 = vmatmul.mubr.msk.f32.vlgmr.msra.gmra.mrb[54].mxu1 %vm504_vm0, %v12780_v57  ;;  %12035 = vmatprep.subr.bf16.mxu1 %v12034_v5 }
 0x165   : > { %v1437_v9 = vpop.f32.mrb[59].mxu0  ;;  %11205 = vmatmul.mubr.msk.f32.gmra.mrb[164].mxu0 %vm504_vm0, %v471_v6  ;;  %12037 = vmatpush3.bf16.msra.mxu1 %v12034_v5  ;;  %v496_v5 = vld [vmem:[%s12547_s11 + $0x5f0] sm:$0xff] }
 0x166   : > { %v12038_v10 = vpack.c.bf16 %v11047_v8, %v1437_v9  ;;  %11446 = vmatprep.mubr.msk.f32.mxu1 %vm504_vm0, %v12647_v51  ;;  %11207 = vmatprep.mubr.msk.f32.mxu0 %vm504_vm0, %v472_v7  ;;  %v497_v9 = vld [vmem:[%s12547_s11 + $0x5f8] sm:$0xff] }
 0x168   : > { %v11050_v13 = vpop.f32.mrb[60].mxu0  ;;  %11447 = vmatmul.mubr.msk.f32.vlgmr.msra.gmra.mrb[56].mxu1 %vm504_vm0, %v12780_v57  ;;  %12039 = vmatprep.subr.bf16.mxu1 %v12038_v10 }
 0x169   : > { %v1447_v14 = vpop.f32.mrb[61].mxu0  ;;  %11208 = vmatmul.mubr.msk.f32.gmra.mrb[166].mxu0 %vm504_vm0, %v473_v11  ;;  %12041 = vmatpush3.bf16.msra.mxu1 %v12038_v10 }
 0x16a   : > { %v12042_v15 = vpack.c.bf16 %v11050_v13, %v1447_v14  ;;  %11453 = vmatprep.mubr.msk.f32.mxu1 %vm504_vm0, %v12647_v51  ;;  %11210 = vmatprep.mubr.msk.f32.mxu0 %vm504_vm0, %v474_v12 }
 0x16c   : > { %v11053_v18 = vpop.f32.mrb[62].mxu0  ;;  %11454 = vmatmul.mubr.msk.f32.vlgmr.msra.gmra.mrb[58].mxu1 %vm504_vm0, %v12780_v57  ;;  %12043 = vmatprep.subr.bf16.mxu1 %v12042_v15 }
 0x16d   : > { %v1457_v19 = vpop.f32.mrb[63].mxu0  ;;  %11211 = vmatmul.mubr.msk.f32.gmra.mrb[168].mxu0 %vm504_vm0, %v475_v16  ;;  %12045 = vmatpush3.bf16.msra.mxu1 %v12042_v15 }
 0x16e   : > { %v12046_v20 = vpack.c.bf16 %v11053_v18, %v1457_v19  ;;  %11460 = vmatprep.mubr.msk.f32.mxu1 %vm504_vm0, %v12647_v51  ;;  %11213 = vmatprep.mubr.msk.f32.mxu0 %vm504_vm0, %v476_v17 }
 0x170   : > { %v11056_v23 = vpop.f32.mrb[64].mxu0  ;;  %11461 = vmatmul.mubr.msk.f32.vlgmr.msra.gmra.mrb[60].mxu1 %vm504_vm0, %v12780_v57  ;;  %12047 = vmatprep.subr.bf16.mxu1 %v12046_v20 }
 0x171   : > { %v1467_v24 = vpop.f32.mrb[65].mxu0  ;;  %11214 = vmatmul.mubr.msk.f32.gmra.mrb[170].mxu0 %vm504_vm0, %v477_v21  ;;  %12049 = vmatpush3.bf16.msra.mxu1 %v12046_v20 }
 0x172   : > { %v12050_v25 = vpack.c.bf16 %v11056_v23, %v1467_v24  ;;  %11467 = vmatprep.mubr.msk.f32.mxu1 %vm504_vm0, %v12647_v51  ;;  %11216 = vmatprep.mubr.msk.f32.mxu0 %vm504_vm0, %v478_v22 }
 0x174   : > { %v11059_v28 = vpop.f32.mrb[66].mxu0  ;;  %11468 = vmatmul.mubr.msk.f32.vlgmr.msra.gmra.mrb[62].mxu1 %vm504_vm0, %v12780_v57  ;;  %12051 = vmatprep.subr.bf16.mxu1 %v12050_v25 }
 0x175   : > { %v1477_v29 = vpop.f32.mrb[67].mxu0  ;;  %11217 = vmatmul.mubr.msk.f32.gmra.mrb[172].mxu0 %vm504_vm0, %v479_v26  ;;  %12053 = vmatpush3.bf16.msra.mxu1 %v12050_v25  ;;  %v503_v26 = vld [vmem:[%s303_s5 + $0x8] sm:$0xff] }
 0x176   : > { %v12054_v30 = vpack.c.bf16 %v11059_v28, %v1477_v29  ;;  %11474 = vmatprep.mubr.msk.f32.mxu1 %vm504_vm0, %v12647_v51  ;;  %11219 = vmatprep.mubr.msk.f32.mxu0 %vm504_vm0, %v480_v27  ;;  %v502_v29 = vld [vmem:[%s303_s5] sm:$0xff]  ;;  %s12450_s5 = smov [#allocation2]  }
 0x177   : > { %s12374_s6 = sshll.u32 %s12450_s5, 4  ;;  %s12375_s6 = int_to_ptr.vmem [resolvable:$false] %s12374_s6 }
 0x178   : > { %v11062_v33 = vpop.f32.mrb[68].mxu0  ;;  %11475 = vmatmul.mubr.msk.f32.vlgmr.msra.gmra.mrb[64].mxu1 %vm504_vm0, %v12780_v57  ;;  %12055 = vmatprep.subr.bf16.mxu1 %v12054_v30  ;;  %s12376_s7 = scalar_lea.vmem %s12375_s6, 6144  ;;  %p12377_p1 = scmp.lt.s32.totalorder %s13755_s22, %s12375_s6 }
 0x179   : > { %v1487_v34 = vpop.f32.mrb[69].mxu0  ;;  %11220 = vmatmul.mubr.msk.f32.gmra.mrb[174].mxu0 %vm504_vm0, %v481_v31  ;;  %12057 = vmatpush3.bf16.msra.mxu1 %v12054_v30  ;;  %v2107_v30 = vadd.f32 1.0, %v503_v26  ;;  %p12378_p2 = scmp.lt.s32.totalorder %s12376_s7, %s12370_s30 }
 0x17a   : > { %v12058_v35 = vpack.c.bf16 %v11062_v33, %v1487_v34  ;;  %11481 = vmatprep.mubr.msk.f32.mxu1 %vm504_vm0, %v12647_v51  ;;  %11222 = vmatprep.mubr.msk.f32.mxu0 %vm504_vm0, %v482_v32  ;;  %v2106_v33 = vadd.f32 1.0, %v502_v29 }
 0x17b   : > { %p12379_p3 = por %p12378_p2, %p12377_p1 }
 0x17c   : > { %v11065_v38 = vpop.f32.mrb[70].mxu0  ;;  %11482 = vmatmul.mubr.msk.f32.vlgmr.msra.gmra.mrb[66].mxu1 %vm504_vm0, %v12780_v57  ;;  %12059 = vmatprep.subr.bf16.mxu1 %v12058_v35 }
 0x17d   : > { %v1497_v39 = vpop.f32.mrb[71].mxu0  ;;  %11223 = vmatmul.mubr.msk.f32.gmra.mrb[176].mxu0 %vm504_vm0, %v483_v36  ;;  %12061 = vmatpush3.bf16.msra.mxu1 %v12058_v35  ;;  %v2109_v35 = vmul.f32 4.0, %v2107_v30  ;;  %p12380_p5 = pnand %p12379_p3, %p12373_p0 }
 0x17e   : > { %v12062_v40 = vpack.c.bf16 %v11065_v38, %v1497_v39  ;;  %11488 = vmatprep.mubr.msk.f32.mxu1 %vm504_vm0, %v12647_v51  ;;  %11225 = vmatprep.mubr.msk.f32.mxu0 %vm504_vm0, %v484_v37  ;;  %v13063_v51 = vld [vmem:[%s13811_s2] sm:$0xff]  ;;  %v2108_v38 = vmul.f32 4.0, %v2106_v33 }
 0x180   : > { %v11068_v43 = vpop.f32.mrb[72].mxu0  ;;  %11489 = vmatmul.mubr.msk.f32.vlgmr.msra.gmra.mrb[68].mxu1 %vm504_vm0, %v12780_v57  ;;  %12063 = vmatprep.subr.bf16.mxu1 %v12062_v40 }
 0x181   : > { %v1507_v44 = vpop.f32.mrb[73].mxu0  ;;  %11226 = vmatmul.mubr.msk.f32.gmra.mrb[178].mxu0 %vm504_vm0, %v485_v41  ;;  %12065 = vmatpush3.bf16.msra.mxu1 %v12062_v40  ;;  %v10157_v40 = vadd.f32 -0.5, %v2109_v35 }
 0x182   : > { %v12066_v45 = vpack.c.bf16 %v11068_v43, %v1507_v44  ;;  %11495 = vmatprep.mubr.msk.f32.mxu1 %vm504_vm0, %v13063_v51  ;;  %11228 = vmatprep.mubr.msk.f32.mxu0 %vm504_vm0, %v486_v42  ;;  %v10156_v43 = vadd.f32 -0.5, %v2108_v38 }
 0x184   : > { %v11071_v48 = vpop.f32.mrb[74].mxu0  ;;  %11496 = vmatmul.mubr.msk.f32.vlgmr.msra.gmra.mrb[70].mxu1 %vm504_vm0, %v12780_v57  ;;  %12067 = vmatprep.subr.bf16.mxu1 %v12066_v45 }
 0x185   : > { %v1517_v49 = vpop.f32.mrb[75].mxu0  ;;  %11229 = vmatmul.mubr.msk.f32.gmra.mrb[180].mxu0 %vm504_vm0, %v487_v46  ;;  %12069 = vmatpush3.bf16.msra.mxu1 %v12066_v45  ;;  %v13150_v45 = vfloor.f32 %v10157_v40 }
 0x186   : > { %v12070_v50 = vpack.c.bf16 %v11071_v48, %v1517_v49  ;;  %11502 = vmatprep.mubr.msk.f32.mxu1 %vm504_vm0, %v13063_v51  ;;  %11231 = vmatprep.mubr.msk.f32.mxu0 %vm504_vm0, %v488_v47  ;;  %v13155_v47 = vld [vmem:[%s13811_s2 + $0x8] sm:$0xff]  ;;  %v13161_v48 = vfloor.f32 %v10156_v43 }
 0x187   : > { %vm2117_vm1 = vcmp.eq.f32.partialorder %v13150_v45, 0.0  ;;  %vm2123_vm2 = vcmp.eq.f32.partialorder %v13150_v45, -1.0  ;;  %vm2129_vm3 = vcmp.eq.f32.partialorder %v13150_v45, 1.0  ;;  %vm2137_vm7 = vcmp.eq.f32.partialorder %v13150_v45, 2.0 }
 0x188   : > { %v11074_v54 = vpop.f32.mrb[76].mxu0  ;;  %11503 = vmatmul.mubr.msk.f32.vlgmr.msra.gmra.mrb[72].mxu1 %vm504_vm0, %v12780_v57  ;;  %12071 = vmatprep.subr.bf16.mxu1 %v12070_v50  ;;  %vm2116_vm4 = vcmp.eq.f32.partialorder %v13161_v48, 0.0  ;;  %vm2122_vm5 = vcmp.eq.f32.partialorder %v13161_v48, -1.0  ;;  %vm2128_vm6 = vcmp.eq.f32.partialorder %v13161_v48, 1.0  ;;  %vm2136_vm8 = vcmp.eq.f32.partialorder %v13161_v48, 2.0 }
 0x189   : > { %v1527_v55 = vpop.f32.mrb[77].mxu0  ;;  %11232 = vmatmul.mubr.msk.f32.gmra.mrb[182].mxu0 %vm504_vm0, %v489_v52  ;;  %12073 = vmatpush3.bf16.msra.mxu1 %v12070_v50  ;;  %v13164_v50 = vsub.f32 %v10157_v40, %v13150_v45  ;;  %vm2145_vm9 = vcmp.eq.f32.partialorder %v13150_v45, 3.0  ;;  %vm2144_vm10 = vcmp.eq.f32.partialorder %v13161_v48, 3.0  ;;  %vm2153_vm11 = vcmp.eq.f32.partialorder %v13150_v45, 4.0 }
 0x18a   : > { %v12074_v56 = vpack.c.bf16 %v11074_v54, %v1527_v55  ;;  %11509 = vmatprep.mubr.msk.f32.mxu1 %vm504_vm0, %v13063_v51  ;;  %11234 = vmatprep.mubr.msk.f32.mxu0 %vm504_vm0, %v490_v53  ;;  %v13171_v54 = vsub.f32 %v10156_v43, %v13161_v48  ;;  %vm2152_vm12 = vcmp.eq.f32.partialorder %v13161_v48, 4.0  ;;  %vm2161_vm13 = vcmp.eq.f32.partialorder %v13150_v45, 5.0 }
 0x18b   : > { %v2149_v30 = vsel %vm2137_vm7, %v13164_v50, 0.0  ;;  %vm2160_vm14 = vcmp.eq.f32.partialorder %v13161_v48, 5.0  ;;  %vm2169_vm15 = vcmp.eq.f32.partialorder %v13150_v45, 6.0 }
 0x18c   : > { %v11077_v60 = vpop.f32.mrb[78].mxu0  ;;  %11510 = vmatmul.mubr.msk.f32.vlgmr.msra.gmra.mrb[74].mxu1 %vm504_vm0, %v12780_v57  ;;  %12075 = vmatprep.subr.bf16.mxu1 %v12074_v56  ;;  %v2148_v35 = vsel %vm2136_vm8, %v13171_v54, 0.0 }
 0x18d   : > { %v1537_v61 = vpop.f32.mrb[79].mxu0  ;;  %11235 = vmatmul.mubr.msk.f32.gmra.mrb[184].mxu0 %vm504_vm0, %v491_v58  ;;  %12077 = vmatpush3.bf16.msra.mxu1 %v12074_v56  ;;  %v13174_v56 = vsub.f32 1.0, %v13164_v50 }
 0x18e   : > { %v12078_v62 = vpack.c.bf16 %v11077_v60, %v1537_v61  ;;  %11516 = vmatprep.mubr.msk.f32.mxu1 %vm504_vm0, %v13063_v51  ;;  %11237 = vmatprep.mubr.msk.f32.mxu0 %vm504_vm0, %v492_v59  ;;  %v13183_v60 = vsub.f32 1.0, %v13171_v54 }
 0x190   : > { %v11080_v1 = vpop.f32.mrb[80].mxu0  ;;  %11517 = vmatmul.mubr.msk.f32.vlgmr.msra.gmra.mrb[76].mxu1 %vm504_vm0, %v12780_v57  ;;  %12079 = vmatprep.subr.bf16.mxu1 %v12078_v62 }
 0x191   : > { %v1547_v2 = vpop.f32.mrb[81].mxu0  ;;  %11238 = vmatmul.mubr.msk.f32.gmra.mrb[186].mxu0 %vm504_vm0, %v493_v63  ;;  %12081 = vmatpush3.bf16.msra.mxu1 %v12078_v62  ;;  %v2121_v62 = vsel %vm2117_vm1, %v13174_v56, 0.0 }
 0x192   : > { %v12082_v3 = vpack.c.bf16 %v11080_v1, %v1547_v2  ;;  %11523 = vmatprep.mubr.msk.f32.mxu1 %vm504_vm0, %v13063_v51  ;;  %11240 = vmatprep.mubr.msk.f32.mxu0 %vm504_vm0, %v494_v0  ;;  %v2125_v0 = vsel %vm2123_vm2, %v13164_v50, 0.0  ;;  %v2131_v1 = vsel %vm2129_vm3, %v13174_v56, 0.0  ;;  %v2133_v2 = vsel %vm2117_vm1, %v13164_v50, 0.0 }
 0x193   : > { %vm2168_vm1 = vcmp.eq.f32.partialorder %v13161_v48, 6.0  ;;  %vm2177_vm2 = vcmp.eq.f32.partialorder %v13150_v45, 7.0 }
 0x194   : > { %v11083_v6 = vpop.f32.mrb[82].mxu0  ;;  %11524 = vmatmul.mubr.msk.f32.vlgmr.msra.gmra.mrb[78].mxu1 %vm504_vm0, %v12780_v57  ;;  %12083 = vmatprep.subr.bf16.mxu1 %v12082_v3 }
 0x195   : > { %v1557_v7 = vpop.f32.mrb[83].mxu0  ;;  %11241 = vmatmul.mubr.msk.f32.gmra.mrb[188].mxu0 %vm504_vm0, %v495_v4  ;;  %12085 = vmatpush3.bf16.msra.mxu1 %v12082_v3  ;;  %v2120_v4 = vsel %vm2116_vm4, %v13183_v60, 0.0 }
 0x196   : > { %v12086_v8 = vpack.c.bf16 %v11083_v6, %v1557_v7  ;;  %11530 = vmatprep.mubr.msk.f32.mxu1 %vm504_vm0, %v13063_v51  ;;  %11243 = vmatprep.mubr.msk.f32.mxu0 %vm504_vm0, %v496_v5  ;;  %v2124_v6 = vsel %vm2122_vm5, %v13171_v54, 0.0  ;;  %v2130_v7 = vsel %vm2128_vm6, %v13183_v60, 0.0 }
 0x198   : > { %v11086_v10 = vpop.f32.mrb[84].mxu0  ;;  %11531 = vmatmul.mubr.msk.f32.vlgmr.msra.gmra.mrb[80].mxu1 %vm504_vm0, %v12780_v57  ;;  %12087 = vmatprep.subr.bf16.mxu1 %v12086_v8 }
 0x199   : > { %v1567_v11 = vpop.f32.mrb[85].mxu0  ;;  %11244 = vmatmul.mubr.msk.f32.gmra.mrb[190].mxu0 %vm504_vm0, %v497_v9  ;;  %12089 = vmatpush3.bf16.msra.mxu1 %v12086_v8  ;;  %v2132_v8 = vsel %vm2116_vm4, %v13171_v54, 0.0  ;;  %v13215_v9 = vadd.f32 %v2125_v0, %v2121_v62 }
 0x19a   : > { %v12090_v12 = vpack.c.bf16 %v11086_v10, %v1567_v11  ;;  %11537 = vmatprep.mubr.msk.f32.mxu1 %vm504_vm0, %v13063_v51  ;;  %v13217_v11 = vadd.f32 %v2133_v2, %v2131_v1 }
 0x19c   : > { %v11089_v13 = vpop.f32.mrb[86].mxu0  ;;  %11538 = vmatmul.mubr.msk.f32.vlgmr.msra.gmra.mrb[82].mxu1 %vm504_vm0, %v12780_v57  ;;  %12091 = vmatprep.subr.bf16.mxu1 %v12090_v12 }
 0x19d   : > { %v1577_v14 = vpop.f32.mrb[87].mxu0  ;;  %12093 = vmatpush3.bf16.msra.mxu1 %v12090_v12  ;;  %11544 = vmatprep.mubr.msk.f32.mxu1 %vm504_vm0, %v13063_v51  ;;  %v2139_v12 = vsel %vm2137_vm7, %v13174_v56, 0.0 }
 0x19e   : > { %v12094_v15 = vpack.c.bf16 %v11089_v13, %v1577_v14 }
 0x1a0   : > { %v11092_v16 = vpop.f32.mrb[88].mxu0  ;;  %11545 = vmatmul.mubr.msk.f32.vlgmr.msra.gmra.mrb[84].mxu1 %vm504_vm0, %v12780_v57  ;;  %12095 = vmatprep.subr.bf16.mxu1 %v12094_v15 }
 0x1a1   : > { %v1587_v17 = vpop.f32.mrb[89].mxu0  ;;  %12097 = vmatpush3.bf16.msra.mxu1 %v12094_v15  ;;  %11551 = vmatprep.mubr.msk.f32.mxu1 %vm504_vm0, %v13063_v51  ;;  %v2141_v15 = vsel %vm2129_vm3, %v13164_v50, 0.0  ;;  %vm2176_vm3 = vcmp.eq.f32.partialorder %v13161_v48, 7.0 }
 0x1a2   : > { %v12098_v18 = vpack.c.bf16 %v11092_v16, %v1587_v17  ;;  %v2138_v16 = vsel %vm2136_vm8, %v13183_v60, 0.0  ;;  %v2140_v17 = vsel %vm2128_vm6, %v13171_v54, 0.0 }
 0x1a4   : > { %v11095_v19 = vpop.f32.mrb[90].mxu0  ;;  %11552 = vmatmul.mubr.msk.f32.vlgmr.msra.gmra.mrb[86].mxu1 %vm504_vm0, %v12780_v57  ;;  %12099 = vmatprep.subr.bf16.mxu1 %v12098_v18 }
 0x1a5   : > { %v1597_v20 = vpop.f32.mrb[91].mxu0  ;;  %12101 = vmatpush3.bf16.msra.mxu1 %v12098_v18  ;;  %11558 = vmatprep.mubr.msk.f32.mxu1 %vm504_vm0, %v13063_v51  ;;  %v13234_v18 = vadd.f32 %v2124_v6, %v2120_v4  ;;  %v2163_v4 = vsel %vm2161_vm13, %v13174_v56, 0.0 }
 0x1a6   : > { %v12102_v21 = vpack.c.bf16 %v11095_v19, %v1597_v20  ;;  %v13238_v20 = vadd.f32 %v2132_v8, %v2130_v7  ;;  %v2165_v7 = vsel %vm2153_vm11, %v13164_v50, 0.0  ;;  %v2162_v8 = vsel %vm2160_vm14, %v13183_v60, 0.0 }
 0x1a8   : > { %v11098_v22 = vpop.f32.mrb[92].mxu0  ;;  %11559 = vmatmul.mubr.msk.f32.vlgmr.msra.gmra.mrb[88].mxu1 %vm504_vm0, %v12780_v57  ;;  %12103 = vmatprep.subr.bf16.mxu1 %v12102_v21 }
 0x1a9   : > { %v1607_v23 = vpop.f32.mrb[93].mxu0  ;;  %12105 = vmatpush3.bf16.msra.mxu1 %v12102_v21  ;;  %11565 = vmatprep.mubr.msk.f32.mxu1 %vm504_vm0, %v13063_v51 }
 0x1aa   : > { %v12106_v24 = vpack.c.bf16 %v11098_v22, %v1607_v23  ;;  %v13241_v23 = vadd.f32 %v2141_v15, %v2139_v12 }
 0x1ac   : > { %v11101_v25 = vpop.f32.mrb[94].mxu0  ;;  %11566 = vmatmul.mubr.msk.f32.vlgmr.msra.gmra.mrb[90].mxu1 %vm504_vm0, %v12780_v57  ;;  %12107 = vmatprep.subr.bf16.mxu1 %v12106_v24 }
 0x1ad   : > { %v1617_v27 = vpop.f32.mrb[95].mxu0  ;;  %12109 = vmatpush3.bf16.msra.mxu1 %v12106_v24  ;;  %11572 = vmatprep.mubr.msk.f32.mxu1 %vm504_vm0, %v13063_v51  ;;  %v13243_v24 = vadd.f32 %v2140_v17, %v2138_v16 }
 0x1ae   : > { %v12110_v28 = vpack.c.bf16 %v11101_v25, %v1617_v27  ;;  %v2147_v25 = vsel %vm2145_vm9, %v13174_v56, 0.0 }
 0x1af   : > { %v13267_v40 = vadd.f32 %v2149_v30, %v2147_v25 }
 0x1b0   : > { %v11104_v31 = vpop.f32.mrb[96].mxu0  ;;  %11573 = vmatmul.mubr.msk.f32.vlgmr.msra.gmra.mrb[92].mxu1 %vm504_vm0, %v12780_v57  ;;  %12111 = vmatprep.subr.bf16.mxu1 %v12110_v28 }
 0x1b1   : > { %v1627_v32 = vpop.f32.mrb[97].mxu0  ;;  %12113 = vmatpush3.bf16.msra.mxu1 %v12110_v28  ;;  %11579 = vmatprep.mubr.msk.f32.mxu1 %vm504_vm0, %v13063_v51 }
 0x1b2   : > { %v12114_v34 = vpack.c.bf16 %v11104_v31, %v1627_v32  ;;  %v2146_v31 = vsel %vm2144_vm10, %v13183_v60, 0.0 }
 0x1b4   : > { %v11107_v36 = vpop.f32.mrb[98].mxu0  ;;  %11580 = vmatmul.mubr.msk.f32.vlgmr.msra.gmra.mrb[94].mxu1 %vm504_vm0, %v12780_v57  ;;  %12115 = vmatprep.subr.bf16.mxu1 %v12114_v34 }
 0x1b5   : > { %v1637_v37 = vpop.f32.mrb[99].mxu0  ;;  %12117 = vmatpush3.bf16.msra.mxu1 %v12114_v34  ;;  %11586 = vmatprep.mubr.msk.f32.mxu1 %vm504_vm0, %v13063_v51 }
 0x1b6   : > { %v12118_v39 = vpack.c.bf16 %v11107_v36, %v1637_v37 }
 0x1b8   : > { %v11110_v41 = vpop.f32.mrb[100].mxu0  ;;  %11587 = vmatmul.mubr.msk.f32.vlgmr.msra.gmra.mrb[96].mxu1 %vm504_vm0, %v12780_v57  ;;  %12119 = vmatprep.subr.bf16.mxu1 %v12118_v39 }
 0x1b9   : > { %v1647_v42 = vpop.f32.mrb[101].mxu0  ;;  %12121 = vmatpush3.bf16.msra.mxu1 %v12118_v39  ;;  %11593 = vmatprep.mubr.msk.f32.mxu1 %vm504_vm0, %v13063_v51 }
 0x1ba   : > { %v12122_v44 = vpack.c.bf16 %v11110_v41, %v1647_v42 }
 0x1bc   : > { %v11113_v46 = vpop.f32.mrb[102].mxu0  ;;  %11594 = vmatmul.mubr.msk.f32.vlgmr.msra.gmra.mrb[98].mxu1 %vm504_vm0, %v13155_v47  ;;  %12123 = vmatprep.subr.bf16.mxu1 %v12122_v44 }
 0x1bd   : > { %v1657_v57 = vpop.f32.mrb[103].mxu0  ;;  %12125 = vmatpush3.bf16.msra.mxu1 %v12122_v44  ;;  %11600 = vmatprep.mubr.msk.f32.mxu1 %vm504_vm0, %v13063_v51  ;;  %v13272_v44 = vadd.f32 %v2148_v35, %v2146_v31 }
 0x1be   : > { %v12126_v49 = vpack.c.bf16 %v11113_v46, %v1657_v57  ;;  %v2155_v46 = vsel %vm2153_vm11, %v13174_v56, 0.0  ;;  %v2157_v57 = vsel %vm2145_vm9, %v13164_v50, 0.0 }
 0x1bf   : > { %v13294_v2 = vadd.f32 %v2157_v57, %v2155_v46  ;;  %v2181_v46 = vsel %vm2169_vm15, %v13164_v50, 0.0 }
 0x1c0   : > { %v11116_v52 = vpop.f32.mrb[104].mxu0  ;;  %11601 = vmatmul.mubr.msk.f32.vlgmr.msra.gmra.mrb[100].mxu1 %vm504_vm0, %v13155_v47  ;;  %12127 = vmatprep.subr.bf16.mxu1 %v12126_v49 }
 0x1c1   : > { %v1667_v53 = vpop.f32.mrb[105].mxu0  ;;  %12129 = vmatpush3.bf16.msra.mxu1 %v12126_v49  ;;  %11607 = vmatprep.mubr.msk.f32.mxu1 %vm504_vm0, %v13063_v51 }
 0x1c2   : > { %v12130_v55 = vpack.c.bf16 %v11116_v52, %v1667_v53  ;;  %v2154_v53 = vsel %vm2152_vm12, %v13183_v60, 0.0 }
 0x1c4   : > { %v11119_v58 = vpop.f32.mrb[106].mxu0  ;;  %11608 = vmatmul.mubr.msk.f32.vlgmr.msra.gmra.mrb[102].mxu1 %vm504_vm0, %v13155_v47  ;;  %12131 = vmatprep.subr.bf16.mxu1 %v12130_v55 }
 0x1c5   : > { %v1677_v59 = vpop.f32.mrb[107].mxu0  ;;  %12133 = vmatpush3.bf16.msra.mxu1 %v12130_v55  ;;  %11614 = vmatprep.mubr.msk.f32.mxu1 %vm504_vm0, %v13063_v51  ;;  %v2156_v55 = vsel %vm2144_vm10, %v13171_v54, 0.0 }
 0x1c6   : > { %v12134_v61 = vpack.c.bf16 %v11119_v58, %v1677_v59 }
 0x1c8   : > { %v11122_v63 = vpop.f32.mrb[108].mxu0  ;;  %11615 = vmatmul.mubr.msk.f32.vlgmr.msra.gmra.mrb[104].mxu1 %vm504_vm0, %v13155_v47  ;;  %12135 = vmatprep.subr.bf16.mxu1 %v12134_v61 }
 0x1c9   : > { %v1687_v3 = vpop.f32.mrb[109].mxu0  ;;  %12137 = vmatpush3.bf16.msra.mxu1 %v12134_v61  ;;  %11621 = vmatprep.mubr.msk.f32.mxu1 %vm504_vm0, %v13063_v51 }
 0x1ca   : > { %v12138_v5 = vpack.c.bf16 %v11122_v63, %v1687_v3  ;;  %v13296_v3 = vadd.f32 %v2156_v55, %v2154_v53  ;;  %v2180_v53 = vsel %vm2168_vm1, %v13171_v54, 0.0 }
 0x1cb   : > { %v11252_v10 = vpop.f32.mrb[0].mxu1 }
 0x1cc   : > { %v11125_v13 = vpop.f32.mrb[110].mxu0  ;;  %v2256_v14 = vpop.f32.mrb[1].mxu1  ;;  %11622 = vmatmul.mubr.msk.f32.vlgmr.msra.gmra.mrb[106].mxu1 %vm504_vm0, %v13155_v47  ;;  %12139 = vmatprep.subr.bf16.mxu1 %v12138_v5  ;;  %v2266_v26 = vmul.f32 %v11252_v10, %v13215_v9  ;;  %v2164_v10 = vsel %vm2152_vm12, %v13171_v54, 0.0 }
 0x1cd   : > { %v1697_v19 = vpop.f32.mrb[111].mxu0  ;;  %12141 = vmatpush3.bf16.msra.mxu1 %v12138_v5  ;;  %11628 = vmatprep.mubr.msk.f32.mxu1 %vm504_vm0, %v13063_v51  ;;  %v2265_v32 = vmul.f32 %v2256_v14, %v13234_v18 }
 0x1ce   : > { %v12142_v21 = vpack.c.bf16 %v11125_v13, %v1697_v19 }
 0x1cf   : > { %v11259_v22 = vpop.f32.mrb[2].mxu1 }
 0x1d0   : > { %v2345_v27 = vmul.f32 %v11259_v22, %v13217_v11  ;;  %v11128_v28 = vpop.f32.mrb[112].mxu0  ;;  %v2335_v29 = vpop.f32.mrb[3].mxu1  ;;  %11629 = vmatmul.mubr.msk.f32.vlgmr.msra.gmra.mrb[108].mxu1 %vm504_vm0, %v13155_v47  ;;  %12143 = vmatprep.subr.bf16.mxu1 %v12142_v21  ;;  %v13320_v22 = vadd.f32 %v2164_v10, %v2162_v8 }
 0x1d1   : > { %v2344_v33 = vmul.f32 %v2335_v29, %v13238_v20  ;;  %v1707_v34 = vpop.f32.mrb[113].mxu0  ;;  %12145 = vmatpush3.bf16.msra.mxu1 %v12142_v21  ;;  %11635 = vmatprep.mubr.msk.f32.mxu1 %vm504_vm0, %v13063_v51  ;;  %v13318_v21 = vadd.f32 %v2165_v7, %v2163_v4  ;;  %v2170_v29 = vsel %vm2168_vm1, %v13183_v60, 0.0 }
 0x1d2   : > { %v2347_v36 = vadd.f32 %v2345_v27, %v2266_v26  ;;  %v12146_v37 = vpack.c.bf16 %v11128_v28, %v1707_v34  ;;  %v2171_v27 = vsel %vm2169_vm15, %v13174_v56, 0.0  ;;  %v2173_v28 = vsel %vm2161_vm13, %v13164_v50, 0.0 }
 0x1d3   : > { %v2346_v38 = vadd.f32 %v2344_v33, %v2265_v32  ;;  %v11266_v39 = vpop.f32.mrb[4].mxu1  ;;  %v2172_v32 = vsel %vm2160_vm14, %v13171_v54, 0.0 }
 0x1d4   : > { %v2424_v41 = vmul.f32 %v11266_v39, %v13241_v23  ;;  %v11131_v42 = vpop.f32.mrb[114].mxu0  ;;  %v2414_v43 = vpop.f32.mrb[5].mxu1  ;;  %11636 = vmatmul.mubr.msk.f32.vlgmr.msra.gmra.mrb[110].mxu1 %vm504_vm0, %v13155_v47  ;;  %12147 = vmatprep.subr.bf16.mxu1 %v12146_v37 }
 0x1d5   : > { %v2423_v49 = vmul.f32 %v2414_v43, %v13243_v24  ;;  %v1717_v52 = vpop.f32.mrb[115].mxu0  ;;  %12149 = vmatpush3.bf16.msra.mxu1 %v12146_v37  ;;  %11642 = vmatprep.mubr.msk.f32.mxu1 %vm504_vm0, %v13063_v51  ;;  %v2179_v43 = vsel %vm2177_vm2, %v13174_v56, 0.0 }
 0x1d6   : > { %v2426_v58 = vadd.f32 %v2424_v41, %v2347_v36  ;;  %v12150_v59 = vpack.c.bf16 %v11131_v42, %v1717_v52  ;;  %v13347_v42 = vadd.f32 %v2172_v32, %v2170_v29  ;;  %v2178_v52 = vsel %vm2176_vm3, %v13183_v60, 0.0 }
 0x1d7   : > { %v2425_v61 = vadd.f32 %v2423_v49, %v2346_v38  ;;  %v11273_v62 = vpop.f32.mrb[6].mxu1  ;;  %v13342_v38 = vadd.f32 %v2173_v28, %v2171_v27  ;;  %v13363_v45 = vadd.f32 %v2181_v46, %v2179_v43  ;;  %v13370_v48 = vadd.f32 %v2180_v53, %v2178_v52 }
 0x1d8   : > { %v2503_v63 = vmul.f32 %v11273_v62, %v13267_v40  ;;  %v11134_v0 = vpop.f32.mrb[116].mxu0  ;;  %v2493_v1 = vpop.f32.mrb[7].mxu1  ;;  %11643 = vmatmul.mubr.msk.f32.vlgmr.msra.gmra.mrb[112].mxu1 %vm504_vm0, %v13155_v47  ;;  %12151 = vmatprep.subr.bf16.mxu1 %v12150_v59 }
 0x1d9   : > { %v2502_v5 = vmul.f32 %v2493_v1, %v13272_v44  ;;  %v1727_v6 = vpop.f32.mrb[117].mxu0  ;;  %12153 = vmatpush3.bf16.msra.mxu1 %v12150_v59  ;;  %11649 = vmatprep.mubr.msk.f32.mxu1 %vm504_vm0, %v13063_v51 }
 0x1da   : > { %v2505_v12 = vadd.f32 %v2503_v63, %v2426_v58  ;;  %v12154_v13 = vpack.c.bf16 %v11134_v0, %v1727_v6 }
 0x1db   : > { %v2504_v14 = vadd.f32 %v2502_v5, %v2425_v61  ;;  %v11280_v15 = vpop.f32.mrb[8].mxu1 }
 0x1dc   : > { %v2582_v16 = vmul.f32 %v11280_v15, %v13294_v2  ;;  %v11137_v17 = vpop.f32.mrb[118].mxu0  ;;  %v2572_v19 = vpop.f32.mrb[9].mxu1  ;;  %11650 = vmatmul.mubr.msk.f32.vlgmr.msra.gmra.mrb[114].mxu1 %vm504_vm0, %v13155_v47  ;;  %12155 = vmatprep.subr.bf16.mxu1 %v12154_v13 }
 0x1dd   : > { %v2581_v25 = vmul.f32 %v2572_v19, %v13296_v3  ;;  %v1737_v26 = vpop.f32.mrb[119].mxu0  ;;  %12157 = vmatpush3.bf16.msra.mxu1 %v12154_v13  ;;  %11656 = vmatprep.mubr.msk.f32.mxu1 %vm504_vm0, %v13063_v51 }
 0x1de   : > { %v2584_v30 = vadd.f32 %v2582_v16, %v2505_v12  ;;  %v12158_v31 = vpack.c.bf16 %v11137_v17, %v1737_v26 }
 0x1df   : > { %v2583_v33 = vadd.f32 %v2581_v25, %v2504_v14  ;;  %v11287_v34 = vpop.f32.mrb[10].mxu1 }
 0x1e0   : > { %v2661_v35 = vmul.f32 %v11287_v34, %v13318_v21  ;;  %v11140_v36 = vpop.f32.mrb[120].mxu0  ;;  %v2651_v37 = vpop.f32.mrb[11].mxu1  ;;  %11657 = vmatmul.mubr.msk.f32.vlgmr.msra.gmra.mrb[116].mxu1 %vm504_vm0, %v13155_v47  ;;  %12159 = vmatprep.subr.bf16.mxu1 %v12158_v31 }
 0x1e1   : > { %v2660_v39 = vmul.f32 %v2651_v37, %v13320_v22  ;;  %v1747_v41 = vpop.f32.mrb[121].mxu0  ;;  %12161 = vmatpush3.bf16.msra.mxu1 %v12158_v31  ;;  %11663 = vmatprep.mubr.msk.f32.mxu1 %vm504_vm0, %v13063_v51 }
 0x1e2   : > { %v2663_v57 = vadd.f32 %v2661_v35, %v2584_v30  ;;  %v12162_v49 = vpack.c.bf16 %v11140_v36, %v1747_v41 }
 0x1e3   : > { %v2662_v55 = vadd.f32 %v2660_v39, %v2583_v33  ;;  %v11294_v58 = vpop.f32.mrb[12].mxu1 }
 0x1e4   : > { %v2740_v56 = vmul.f32 %v11294_v58, %v13342_v38  ;;  %v11143_v59 = vpop.f32.mrb[122].mxu0  ;;  %v2730_v61 = vpop.f32.mrb[13].mxu1  ;;  %11664 = vmatmul.mubr.msk.f32.vlgmr.msra.gmra.mrb[118].mxu1 %vm504_vm0, %v13155_v47  ;;  %12163 = vmatprep.subr.bf16.mxu1 %v12162_v49 }
 0x1e5   : > { %v2739_v50 = vmul.f32 %v2730_v61, %v13347_v42  ;;  %v1757_v62 = vpop.f32.mrb[123].mxu0  ;;  %12165 = vmatpush3.bf16.msra.mxu1 %v12162_v49  ;;  %11670 = vmatprep.mubr.msk.f32.mxu1 %vm504_vm0, %v13063_v51 }
 0x1e6   : > { %v2742_v54 = vadd.f32 %v2740_v56, %v2663_v57  ;;  %v12166_v60 = vpack.c.bf16 %v11143_v59, %v1757_v62 }
 0x1e7   : > { %v2741_v63 = vadd.f32 %v2739_v50, %v2662_v55  ;;  %v11301_v0 = vpop.f32.mrb[14].mxu1 }
 0x1e8   : > { %v2819_v1 = vmul.f32 %v11301_v0, %v13363_v45  ;;  %v11146_v4 = vpop.f32.mrb[124].mxu0  ;;  %v2809_v5 = vpop.f32.mrb[15].mxu1  ;;  %11671 = vmatmul.mubr.msk.f32.vlgmr.msra.gmra.mrb[120].mxu1 %vm504_vm0, %v13155_v47  ;;  %12167 = vmatprep.subr.bf16.mxu1 %v12166_v60 }
 0x1e9   : > { %v2818_v6 = vmul.f32 %v2809_v5, %v13370_v48  ;;  %v1767_v7 = vpop.f32.mrb[125].mxu0  ;;  %12169 = vmatpush3.bf16.msra.mxu1 %v12166_v60  ;;  %11677 = vmatprep.mubr.msk.f32.mxu1 %vm504_vm0, %v13063_v51 }
 0x1ea   : > { %v2821_v8 = vadd.f32 %v2819_v1, %v2742_v54  ;;  %v12170_v10 = vpack.c.bf16 %v11146_v4, %v1767_v7 }
 0x1eb   : > { %v2820_v12 = vadd.f32 %v2818_v6, %v2741_v63  ;;  %v11308_v13 = vpop.f32.mrb[16].mxu1 }
 0x1ec   : > { %2823 = vst.msk [vmem:[%s13378_s10 + $0x8] sm:$0xff] %vm504_vm0, %v2821_v8  ;;  %v11149_v14 = vpop.f32.mrb[126].mxu0  ;;  %v2890_v15 = vpop.f32.mrb[17].mxu1  ;;  %11678 = vmatmul.mubr.msk.f32.vlgmr.msra.gmra.mrb[122].mxu1 %vm504_vm0, %v13155_v47  ;;  %12171 = vmatprep.subr.bf16.mxu1 %v12170_v10  ;;  %v2900_v25 = vmul.f32 %v11308_v13, %v13215_v9 }
 0x1ed   : > { %2822 = vst.msk [vmem:[%s13378_s10] sm:$0xff] %vm504_vm0, %v2820_v12  ;;  %v1777_v16 = vpop.f32.mrb[127].mxu0  ;;  %12173 = vmatpush3.bf16.msra.mxu1 %v12170_v10  ;;  %11684 = vmatprep.mubr.msk.f32.mxu1 %vm504_vm0, %v13063_v51  ;;  %v2899_v29 = vmul.f32 %v2890_v15, %v13234_v18 }
 0x1ee   : > { %v12174_v17 = vpack.c.bf16 %v11149_v14, %v1777_v16 }
 0x1ef   : > { %v11315_v19 = vpop.f32.mrb[18].mxu1 }
 0x1f0   : > { %v2979_v26 = vmul.f32 %v11315_v19, %v13217_v11  ;;  %v11152_v27 = vpop.f32.mrb[128].mxu0  ;;  %v2969_v28 = vpop.f32.mrb[19].mxu1  ;;  %11685 = vmatmul.mubr.msk.f32.vlgmr.msra.gmra.mrb[124].mxu1 %vm504_vm0, %v13155_v47  ;;  %12175 = vmatprep.subr.bf16.mxu1 %v12174_v17 }
 0x1f1   : > { %v2978_v30 = vmul.f32 %v2969_v28, %v13238_v20  ;;  %v1787_v31 = vpop.f32.mrb[129].mxu0  ;;  %12177 = vmatpush3.bf16.msra.mxu1 %v12174_v17  ;;  %11691 = vmatprep.mubr.msk.f32.mxu1 %vm504_vm0, %v13063_v51 }
 0x1f2   : > { %v2981_v32 = vadd.f32 %v2979_v26, %v2900_v25  ;;  %v12178_v33 = vpack.c.bf16 %v11152_v27, %v1787_v31 }
 0x1f3   : > { %v2980_v34 = vadd.f32 %v2978_v30, %v2899_v29  ;;  %v11322_v35 = vpop.f32.mrb[20].mxu1 }
 0x1f4   : > { %v3058_v36 = vmul.f32 %v11322_v35, %v13241_v23  ;;  %v11155_v37 = vpop.f32.mrb[130].mxu0  ;;  %v3048_v39 = vpop.f32.mrb[21].mxu1  ;;  %11692 = vmatmul.mubr.msk.f32.vlgmr.msra.gmra.mrb[126].mxu1 %vm504_vm0, %v13155_v47  ;;  %12179 = vmatprep.subr.bf16.mxu1 %v12178_v33 }
 0x1f5   : > { %v3057_v41 = vmul.f32 %v3048_v39, %v13243_v24  ;;  %v1797_v43 = vpop.f32.mrb[131].mxu0  ;;  %12181 = vmatpush3.bf16.msra.mxu1 %v12178_v33  ;;  %11698 = vmatprep.mubr.msk.f32.mxu1 %vm504_vm0, %v13063_v51 }
 0x1f6   : > { %v3060_v46 = vadd.f32 %v3058_v36, %v2981_v32  ;;  %v12182_v57 = vpack.c.bf16 %v11155_v37, %v1797_v43 }
 0x1f7   : > { %v3059_v49 = vadd.f32 %v3057_v41, %v2980_v34  ;;  %v11329_v52 = vpop.f32.mrb[22].mxu1 }
 0x1f8   : > { %v3137_v53 = vmul.f32 %v11329_v52, %v13267_v40  ;;  %v11158_v55 = vpop.f32.mrb[132].mxu0  ;;  %v3127_v58 = vpop.f32.mrb[23].mxu1  ;;  %11699 = vmatmul.mubr.msk.f32.vlgmr.msra.gmra.mrb[128].mxu1 %vm504_vm0, %v13155_v47  ;;  %12183 = vmatprep.subr.bf16.mxu1 %v12182_v57 }
 0x1f9   : > { %v3136_v56 = vmul.f32 %v3127_v58, %v13272_v44  ;;  %v1807_v59 = vpop.f32.mrb[133].mxu0  ;;  %12185 = vmatpush3.bf16.msra.mxu1 %v12182_v57  ;;  %11705 = vmatprep.mubr.msk.f32.mxu1 %vm504_vm0, %v13063_v51 }
 0x1fa   : > { %v3139_v61 = vadd.f32 %v3137_v53, %v3060_v46  ;;  %v12186_v50 = vpack.c.bf16 %v11158_v55, %v1807_v59 }
 0x1fb   : > { %v3138_v62 = vadd.f32 %v3136_v56, %v3059_v49  ;;  %v11336_v54 = vpop.f32.mrb[24].mxu1 }
 0x1fc   : > { %v3216_v60 = vmul.f32 %v11336_v54, %v13294_v2  ;;  %v11161_v63 = vpop.f32.mrb[134].mxu0  ;;  %v3206_v0 = vpop.f32.mrb[25].mxu1  ;;  %11706 = vmatmul.mubr.msk.f32.vlgmr.msra.gmra.mrb[130].mxu1 %vm504_vm0, %v13155_v47  ;;  %12187 = vmatprep.subr.bf16.mxu1 %v12186_v50 }
 0x1fd   : > { %v3215_v1 = vmul.f32 %v3206_v0, %v13296_v3  ;;  %v1817_v4 = vpop.f32.mrb[135].mxu0  ;;  %12189 = vmatpush3.bf16.msra.mxu1 %v12186_v50  ;;  %11712 = vmatprep.mubr.msk.f32.mxu1 %vm504_vm0, %v13063_v51 }
 0x1fe   : > { %v3218_v5 = vadd.f32 %v3216_v60, %v3139_v61  ;;  %v12190_v6 = vpack.c.bf16 %v11161_v63, %v1817_v4 }
 0x1ff   : > { %v3217_v7 = vadd.f32 %v3215_v1, %v3138_v62  ;;  %v11343_v8 = vpop.f32.mrb[26].mxu1 }
 0x200   : > { %v3295_v10 = vmul.f32 %v11343_v8, %v13318_v21  ;;  %v11164_v12 = vpop.f32.mrb[136].mxu0  ;;  %v3285_v13 = vpop.f32.mrb[27].mxu1  ;;  %11713 = vmatmul.mubr.msk.f32.vlgmr.msra.gmra.mrb[132].mxu1 %vm504_vm0, %v13155_v47  ;;  %12191 = vmatprep.subr.bf16.mxu1 %v12190_v6 }
 0x201   : > { %v3294_v14 = vmul.f32 %v3285_v13, %v13320_v22  ;;  %v1827_v15 = vpop.f32.mrb[137].mxu0  ;;  %12193 = vmatpush3.bf16.msra.mxu1 %v12190_v6  ;;  %11719 = vmatprep.mubr.msk.f32.mxu1 %vm504_vm0, %v13063_v51 }
 0x202   : > { %v3297_v16 = vadd.f32 %v3295_v10, %v3218_v5  ;;  %v12194_v17 = vpack.c.bf16 %v11164_v12, %v1827_v15 }
 0x203   : > { %v3296_v19 = vadd.f32 %v3294_v14, %v3217_v7  ;;  %v11350_v25 = vpop.f32.mrb[28].mxu1 }
 0x204   : > { %v3374_v26 = vmul.f32 %v11350_v25, %v13342_v38  ;;  %v11167_v27 = vpop.f32.mrb[138].mxu0  ;;  %v3364_v28 = vpop.f32.mrb[29].mxu1  ;;  %11720 = vmatmul.mubr.msk.f32.vlgmr.msra.gmra.mrb[134].mxu1 %vm504_vm0, %v13155_v47  ;;  %12195 = vmatprep.subr.bf16.mxu1 %v12194_v17 }
 0x205   : > { %v3373_v29 = vmul.f32 %v3364_v28, %v13347_v42  ;;  %v1837_v30 = vpop.f32.mrb[139].mxu0  ;;  %12197 = vmatpush3.bf16.msra.mxu1 %v12194_v17  ;;  %11726 = vmatprep.mubr.msk.f32.mxu1 %vm504_vm0, %v13063_v51 }
 0x206   : > { %v3376_v31 = vadd.f32 %v3374_v26, %v3297_v16  ;;  %v12198_v32 = vpack.c.bf16 %v11167_v27, %v1837_v30 }
 0x207   : > { %v3375_v33 = vadd.f32 %v3373_v29, %v3296_v19  ;;  %v11357_v34 = vpop.f32.mrb[30].mxu1 }
 0x208   : > { %v3453_v35 = vmul.f32 %v11357_v34, %v13363_v45  ;;  %v11170_v36 = vpop.f32.mrb[140].mxu0  ;;  %v3443_v37 = vpop.f32.mrb[31].mxu1  ;;  %11727 = vmatmul.mubr.msk.f32.vlgmr.msra.gmra.mrb[136].mxu1 %vm504_vm0, %v13155_v47  ;;  %12199 = vmatprep.subr.bf16.mxu1 %v12198_v32 }
 0x209   : > { %v3452_v39 = vmul.f32 %v3443_v37, %v13370_v48  ;;  %v1847_v41 = vpop.f32.mrb[141].mxu0  ;;  %12201 = vmatpush3.bf16.msra.mxu1 %v12198_v32  ;;  %11733 = vmatprep.mubr.msk.f32.mxu1 %vm504_vm0, %v13063_v51 }
 0x20a   : > { %v3455_v43 = vadd.f32 %v3453_v35, %v3376_v31  ;;  %v12202_v46 = vpack.c.bf16 %v11170_v36, %v1847_v41 }
 0x20b   : > { %v3454_v57 = vadd.f32 %v3452_v39, %v3375_v33  ;;  %v11364_v49 = vpop.f32.mrb[32].mxu1 }
 0x20c   : > { %10191 = vst.msk [vmem:[%s13378_s10 + $0x18] sm:$0xff] %vm504_vm0, %v3455_v43  ;;  %v11173_v52 = vpop.f32.mrb[142].mxu0  ;;  %v3525_v53 = vpop.f32.mrb[33].mxu1  ;;  %11734 = vmatmul.mubr.msk.f32.vlgmr.msra.gmra.mrb[138].mxu1 %vm504_vm0, %v13155_v47  ;;  %12203 = vmatprep.subr.bf16.mxu1 %v12202_v46  ;;  %v3535_v59 = vmul.f32 %v11364_v49, %v13215_v9 }
 0x20d   : > { %10190 = vst.msk [vmem:[%s13378_s10 + $0x10] sm:$0xff] %vm504_vm0, %v3454_v57  ;;  %v1857_v55 = vpop.f32.mrb[143].mxu0  ;;  %12205 = vmatpush3.bf16.msra.mxu1 %v12202_v46  ;;  %11740 = vmatprep.mubr.msk.f32.mxu1 %vm504_vm0, %v13063_v51  ;;  %v3534_v54 = vmul.f32 %v3525_v53, %v13234_v18 }
 0x20e   : > { %v12206_v58 = vpack.c.bf16 %v11173_v52, %v1857_v55 }
 0x20f   : > { %v11371_v56 = vpop.f32.mrb[34].mxu1 }
 0x210   : > { %v3614_v61 = vmul.f32 %v11371_v56, %v13217_v11  ;;  %v11176_v50 = vpop.f32.mrb[144].mxu0  ;;  %v3604_v62 = vpop.f32.mrb[35].mxu1  ;;  %11741 = vmatmul.mubr.msk.f32.vlgmr.msra.gmra.mrb[140].mxu1 %vm504_vm0, %v13155_v47  ;;  %12207 = vmatprep.subr.bf16.mxu1 %v12206_v58 }
 0x211   : > { %v3613_v60 = vmul.f32 %v3604_v62, %v13238_v20  ;;  %v1867_v63 = vpop.f32.mrb[145].mxu0  ;;  %12209 = vmatpush3.bf16.msra.mxu1 %v12206_v58  ;;  %11747 = vmatprep.mubr.msk.f32.mxu1 %vm504_vm0, %v13063_v51 }
 0x212   : > { %v3616_v0 = vadd.f32 %v3614_v61, %v3535_v59  ;;  %v12210_v1 = vpack.c.bf16 %v11176_v50, %v1867_v63 }
 0x213   : > { %v3615_v4 = vadd.f32 %v3613_v60, %v3534_v54  ;;  %v11378_v5 = vpop.f32.mrb[36].mxu1 }
 0x214   : > { %v3693_v6 = vmul.f32 %v11378_v5, %v13241_v23  ;;  %v11179_v7 = vpop.f32.mrb[146].mxu0  ;;  %v3683_v8 = vpop.f32.mrb[37].mxu1  ;;  %11748 = vmatmul.mubr.msk.f32.vlgmr.msra.gmra.mrb[142].mxu1 %vm504_vm0, %v13155_v47  ;;  %12211 = vmatprep.subr.bf16.mxu1 %v12210_v1 }
 0x215   : > { %v3692_v10 = vmul.f32 %v3683_v8, %v13243_v24  ;;  %v1877_v12 = vpop.f32.mrb[147].mxu0  ;;  %12213 = vmatpush3.bf16.msra.mxu1 %v12210_v1  ;;  %11754 = vmatprep.mubr.msk.f32.mxu1 %vm504_vm0, %v13063_v51 }
 0x216   : > { %v3695_v13 = vadd.f32 %v3693_v6, %v3616_v0  ;;  %v12214_v14 = vpack.c.bf16 %v11179_v7, %v1877_v12 }
 0x217   : > { %v3694_v15 = vadd.f32 %v3692_v10, %v3615_v4  ;;  %v11385_v16 = vpop.f32.mrb[38].mxu1 }
 0x218   : > { %v3772_v17 = vmul.f32 %v11385_v16, %v13267_v40  ;;  %v11182_v19 = vpop.f32.mrb[148].mxu0  ;;  %v3762_v25 = vpop.f32.mrb[39].mxu1  ;;  %11755 = vmatmul.mubr.msk.f32.vlgmr.msra.gmra.mrb[144].mxu1 %vm504_vm0, %v13155_v47  ;;  %12215 = vmatprep.subr.bf16.mxu1 %v12214_v14 }
 0x219   : > { %v3771_v26 = vmul.f32 %v3762_v25, %v13272_v44  ;;  %v1887_v27 = vpop.f32.mrb[149].mxu0  ;;  %12217 = vmatpush3.bf16.msra.mxu1 %v12214_v14  ;;  %11761 = vmatprep.mubr.msk.f32.mxu1 %vm504_vm0, %v13063_v51 }
 0x21a   : > { %v3774_v28 = vadd.f32 %v3772_v17, %v3695_v13  ;;  %v12218_v29 = vpack.c.bf16 %v11182_v19, %v1887_v27 }
 0x21b   : > { %v3773_v30 = vadd.f32 %v3771_v26, %v3694_v15  ;;  %v11392_v31 = vpop.f32.mrb[40].mxu1 }
 0x21c   : > { %v3851_v32 = vmul.f32 %v11392_v31, %v13294_v2  ;;  %v11185_v33 = vpop.f32.mrb[150].mxu0  ;;  %v3841_v34 = vpop.f32.mrb[41].mxu1  ;;  %11762 = vmatmul.mubr.msk.f32.vlgmr.msra.gmra.mrb[146].mxu1 %vm504_vm0, %v13155_v47  ;;  %12219 = vmatprep.subr.bf16.mxu1 %v12218_v29 }
 0x21d   : > { %v3850_v35 = vmul.f32 %v3841_v34, %v13296_v3  ;;  %v1897_v36 = vpop.f32.mrb[151].mxu0  ;;  %12221 = vmatpush3.bf16.msra.mxu1 %v12218_v29  ;;  %11768 = vmatprep.mubr.msk.f32.mxu1 %vm504_vm0, %v13063_v51  ;;  %v13473_v51 = vld [vmem:[%s13811_s2] sm:$0xff] }
 0x21e   : > { %v3853_v37 = vadd.f32 %v3851_v32, %v3774_v28  ;;  %v12222_v39 = vpack.c.bf16 %v11185_v33, %v1897_v36 }
 0x21f   : > { %v3852_v41 = vadd.f32 %v3850_v35, %v3773_v30  ;;  %v11399_v43 = vpop.f32.mrb[42].mxu1 }
 0x220   : > { %v3930_v46 = vmul.f32 %v11399_v43, %v13318_v21  ;;  %v11188_v57 = vpop.f32.mrb[152].mxu0  ;;  %v3920_v49 = vpop.f32.mrb[43].mxu1  ;;  %11769 = vmatmul.mubr.msk.f32.vlgmr.msra.gmra.mrb[148].mxu1 %vm504_vm0, %v13155_v47  ;;  %12223 = vmatprep.subr.bf16.mxu1 %v12222_v39 }
 0x221   : > { %v3929_v52 = vmul.f32 %v3920_v49, %v13320_v22  ;;  %v1907_v53 = vpop.f32.mrb[153].mxu0  ;;  %12225 = vmatpush3.bf16.msra.mxu1 %v12222_v39  ;;  %11775 = vmatprep.mubr.msk.f32.mxu1 %vm504_vm0, %v13473_v51 }
 0x222   : > { %v3932_v55 = vadd.f32 %v3930_v46, %v3853_v37  ;;  %v12226_v58 = vpack.c.bf16 %v11188_v57, %v1907_v53 }
 0x223   : > { %v3931_v56 = vadd.f32 %v3929_v52, %v3852_v41  ;;  %v11406_v59 = vpop.f32.mrb[44].mxu1 }
 0x224   : > { %v4009_v61 = vmul.f32 %v11406_v59, %v13342_v38  ;;  %v11191_v50 = vpop.f32.mrb[154].mxu0  ;;  %v3999_v62 = vpop.f32.mrb[45].mxu1  ;;  %11776 = vmatmul.mubr.msk.f32.vlgmr.msra.gmra.mrb[150].mxu1 %vm504_vm0, %v13155_v47  ;;  %12227 = vmatprep.subr.bf16.mxu1 %v12226_v58 }
 0x225   : > { %v4008_v54 = vmul.f32 %v3999_v62, %v13347_v42  ;;  %v1917_v60 = vpop.f32.mrb[155].mxu0  ;;  %12229 = vmatpush3.bf16.msra.mxu1 %v12226_v58  ;;  %11782 = vmatprep.mubr.msk.f32.mxu1 %vm504_vm0, %v13473_v51 }
 0x226   : > { %v4011_v63 = vadd.f32 %v4009_v61, %v3932_v55  ;;  %v12230_v0 = vpack.c.bf16 %v11191_v50, %v1917_v60 }
 0x227   : > { %v4010_v1 = vadd.f32 %v4008_v54, %v3931_v56  ;;  %v11413_v4 = vpop.f32.mrb[46].mxu1 }
 0x228   : > { %v4088_v5 = vmul.f32 %v11413_v4, %v13363_v45  ;;  %v11194_v6 = vpop.f32.mrb[156].mxu0  ;;  %v4078_v7 = vpop.f32.mrb[47].mxu1  ;;  %11783 = vmatmul.mubr.msk.f32.vlgmr.msra.gmra.mrb[152].mxu1 %vm504_vm0, %v13155_v47  ;;  %12231 = vmatprep.subr.bf16.mxu1 %v12230_v0 }
 0x229   : > { %v4087_v8 = vmul.f32 %v4078_v7, %v13370_v48  ;;  %v1927_v10 = vpop.f32.mrb[157].mxu0  ;;  %12233 = vmatpush3.bf16.msra.mxu1 %v12230_v0  ;;  %11789 = vmatprep.mubr.msk.f32.mxu1 %vm504_vm0, %v13473_v51 }
 0x22a   : > { %v4090_v12 = vadd.f32 %v4088_v5, %v4011_v63  ;;  %v12234_v13 = vpack.c.bf16 %v11194_v6, %v1927_v10 }
 0x22b   : > { %v4089_v14 = vadd.f32 %v4087_v8, %v4010_v1  ;;  %v11420_v15 = vpop.f32.mrb[48].mxu1 }
 0x22c   : > { %10209 = vst.msk [vmem:[%s13378_s10 + $0x28] sm:$0xff] %vm504_vm0, %v4090_v12  ;;  %v11197_v16 = vpop.f32.mrb[158].mxu0  ;;  %v4160_v17 = vpop.f32.mrb[49].mxu1  ;;  %11790 = vmatmul.mubr.msk.f32.vlgmr.msra.gmra.mrb[154].mxu1 %vm504_vm0, %v13155_v47  ;;  %12235 = vmatprep.subr.bf16.mxu1 %v12234_v13  ;;  %v4170_v27 = vmul.f32 %v11420_v15, %v13215_v9 }
 0x22d   : > { %10208 = vst.msk [vmem:[%s13378_s10 + $0x20] sm:$0xff] %vm504_vm0, %v4089_v14  ;;  %v1937_v19 = vpop.f32.mrb[159].mxu0  ;;  %12237 = vmatpush3.bf16.msra.mxu1 %v12234_v13  ;;  %11796 = vmatprep.mubr.msk.f32.mxu1 %vm504_vm0, %v13473_v51  ;;  %v4169_v31 = vmul.f32 %v4160_v17, %v13234_v18 }
 0x22e   : > { %v12238_v25 = vpack.c.bf16 %v11197_v16, %v1937_v19 }
 0x22f   : > { %v11427_v26 = vpop.f32.mrb[50].mxu1 }
 0x230   : > { %v4249_v28 = vmul.f32 %v11427_v26, %v13217_v11  ;;  %v11200_v29 = vpop.f32.mrb[160].mxu0  ;;  %v4239_v30 = vpop.f32.mrb[51].mxu1  ;;  %11797 = vmatmul.mubr.msk.f32.vlgmr.msra.gmra.mrb[156].mxu1 %vm504_vm0, %v13155_v47  ;;  %12239 = vmatprep.subr.bf16.mxu1 %v12238_v25 }
 0x231   : > { %v4248_v32 = vmul.f32 %v4239_v30, %v13238_v20  ;;  %v1947_v33 = vpop.f32.mrb[161].mxu0  ;;  %12241 = vmatpush3.bf16.msra.mxu1 %v12238_v25  ;;  %11803 = vmatprep.mubr.msk.f32.mxu1 %vm504_vm0, %v13473_v51 }
 0x232   : > { %v4251_v34 = vadd.f32 %v4249_v28, %v4170_v27  ;;  %v12242_v35 = vpack.c.bf16 %v11200_v29, %v1947_v33 }
 0x233   : > { %v4250_v36 = vadd.f32 %v4248_v32, %v4169_v31  ;;  %v11434_v37 = vpop.f32.mrb[52].mxu1 }
 0x234   : > { %v4328_v39 = vmul.f32 %v11434_v37, %v13241_v23  ;;  %v11203_v41 = vpop.f32.mrb[162].mxu0  ;;  %v4318_v43 = vpop.f32.mrb[53].mxu1  ;;  %11804 = vmatmul.mubr.msk.f32.vlgmr.msra.gmra.mrb[158].mxu1 %vm504_vm0, %v13155_v47  ;;  %12243 = vmatprep.subr.bf16.mxu1 %v12242_v35 }
 0x235   : > { %v4327_v46 = vmul.f32 %v4318_v43, %v13243_v24  ;;  %v1957_v57 = vpop.f32.mrb[163].mxu0  ;;  %12245 = vmatpush3.bf16.msra.mxu1 %v12242_v35  ;;  %11810 = vmatprep.mubr.msk.f32.mxu1 %vm504_vm0, %v13473_v51 }
 0x236   : > { %v4330_v49 = vadd.f32 %v4328_v39, %v4251_v34  ;;  %v12246_v52 = vpack.c.bf16 %v11203_v41, %v1957_v57 }
 0x237   : > { %v4329_v53 = vadd.f32 %v4327_v46, %v4250_v36  ;;  %v11441_v55 = vpop.f32.mrb[54].mxu1 }
 0x238   : > { %v4407_v58 = vmul.f32 %v11441_v55, %v13267_v40  ;;  %v11206_v56 = vpop.f32.mrb[164].mxu0  ;;  %v4397_v59 = vpop.f32.mrb[55].mxu1  ;;  %11811 = vmatmul.mubr.msk.f32.vlgmr.msra.gmra.mrb[160].mxu1 %vm504_vm0, %v13155_v47  ;;  %12247 = vmatprep.subr.bf16.mxu1 %v12246_v52 }
 0x239   : > { %v4406_v61 = vmul.f32 %v4397_v59, %v13272_v44  ;;  %v1967_v50 = vpop.f32.mrb[165].mxu0  ;;  %12249 = vmatpush3.bf16.msra.mxu1 %v12246_v52  ;;  %11817 = vmatprep.mubr.msk.f32.mxu1 %vm504_vm0, %v13473_v51 }
 0x23a   : > { %v4409_v62 = vadd.f32 %v4407_v58, %v4330_v49  ;;  %v12250_v54 = vpack.c.bf16 %v11206_v56, %v1967_v50 }
 0x23b   : > { %v4408_v60 = vadd.f32 %v4406_v61, %v4329_v53  ;;  %v11448_v63 = vpop.f32.mrb[56].mxu1 }
 0x23c   : > { %v4486_v0 = vmul.f32 %v11448_v63, %v13294_v2  ;;  %v11209_v1 = vpop.f32.mrb[166].mxu0  ;;  %v4476_v4 = vpop.f32.mrb[57].mxu1  ;;  %11818 = vmatmul.mubr.msk.f32.vlgmr.msra.gmra.mrb[162].mxu1 %vm504_vm0, %v13155_v47  ;;  %12251 = vmatprep.subr.bf16.mxu1 %v12250_v54 }
 0x23d   : > { %v4485_v5 = vmul.f32 %v4476_v4, %v13296_v3  ;;  %v1977_v6 = vpop.f32.mrb[167].mxu0  ;;  %12253 = vmatpush3.bf16.msra.mxu1 %v12250_v54  ;;  %11824 = vmatprep.mubr.msk.f32.mxu1 %vm504_vm0, %v13473_v51 }
 0x23e   : > { %v4488_v7 = vadd.f32 %v4486_v0, %v4409_v62  ;;  %v12254_v8 = vpack.c.bf16 %v11209_v1, %v1977_v6 }
 0x23f   : > { %v4487_v10 = vadd.f32 %v4485_v5, %v4408_v60  ;;  %v11455_v12 = vpop.f32.mrb[58].mxu1 }
 0x240   : > { %v4565_v13 = vmul.f32 %v11455_v12, %v13318_v21  ;;  %v11212_v14 = vpop.f32.mrb[168].mxu0  ;;  %v4555_v15 = vpop.f32.mrb[59].mxu1  ;;  %11825 = vmatmul.mubr.msk.f32.vlgmr.msra.gmra.mrb[164].mxu1 %vm504_vm0, %v13155_v47  ;;  %12255 = vmatprep.subr.bf16.mxu1 %v12254_v8 }
 0x241   : > { %v4564_v16 = vmul.f32 %v4555_v15, %v13320_v22  ;;  %v1987_v17 = vpop.f32.mrb[169].mxu0  ;;  %12257 = vmatpush3.bf16.msra.mxu1 %v12254_v8  ;;  %11831 = vmatprep.mubr.msk.f32.mxu1 %vm504_vm0, %v13473_v51 }
 0x242   : > { %v4567_v19 = vadd.f32 %v4565_v13, %v4488_v7  ;;  %v12258_v25 = vpack.c.bf16 %v11212_v14, %v1987_v17 }
 0x243   : > { %v4566_v26 = vadd.f32 %v4564_v16, %v4487_v10  ;;  %v11462_v27 = vpop.f32.mrb[60].mxu1 }
 0x244   : > { %v4644_v28 = vmul.f32 %v11462_v27, %v13342_v38  ;;  %v11215_v29 = vpop.f32.mrb[170].mxu0  ;;  %v4634_v30 = vpop.f32.mrb[61].mxu1  ;;  %11832 = vmatmul.mubr.msk.f32.vlgmr.msra.gmra.mrb[166].mxu1 %vm504_vm0, %v13155_v47  ;;  %12259 = vmatprep.subr.bf16.mxu1 %v12258_v25 }
 0x245   : > { %v4643_v31 = vmul.f32 %v4634_v30, %v13347_v42  ;;  %v1997_v32 = vpop.f32.mrb[171].mxu0  ;;  %12261 = vmatpush3.bf16.msra.mxu1 %v12258_v25  ;;  %11838 = vmatprep.mubr.msk.f32.mxu1 %vm504_vm0, %v13473_v51 }
 0x246   : > { %v4646_v33 = vadd.f32 %v4644_v28, %v4567_v19  ;;  %v12262_v34 = vpack.c.bf16 %v11215_v29, %v1997_v32 }
 0x247   : > { %v4645_v35 = vadd.f32 %v4643_v31, %v4566_v26  ;;  %v11469_v36 = vpop.f32.mrb[62].mxu1 }
 0x248   : > { %v4723_v37 = vmul.f32 %v11469_v36, %v13363_v45  ;;  %v11218_v39 = vpop.f32.mrb[172].mxu0  ;;  %v4713_v41 = vpop.f32.mrb[63].mxu1  ;;  %11839 = vmatmul.mubr.msk.f32.vlgmr.msra.gmra.mrb[168].mxu1 %vm504_vm0, %v13155_v47  ;;  %12263 = vmatprep.subr.bf16.mxu1 %v12262_v34  ;;  %v13546_v47 = vld [vmem:[%s13811_s2 + $0x8] sm:$0xff] }
 0x249   : > { %v4722_v43 = vmul.f32 %v4713_v41, %v13370_v48  ;;  %v2007_v46 = vpop.f32.mrb[173].mxu0  ;;  %12265 = vmatpush3.bf16.msra.mxu1 %v12262_v34  ;;  %11845 = vmatprep.mubr.msk.f32.mxu1 %vm504_vm0, %v13473_v51 }
 0x24a   : > { %v4725_v57 = vadd.f32 %v4723_v37, %v4646_v33  ;;  %v12266_v49 = vpack.c.bf16 %v11218_v39, %v2007_v46 }
 0x24b   : > { %v4724_v52 = vadd.f32 %v4722_v43, %v4645_v35  ;;  %v11476_v53 = vpop.f32.mrb[64].mxu1 }
 0x24c   : > { %10227 = vst.msk [vmem:[%s13378_s10 + $0x38] sm:$0xff] %vm504_vm0, %v4725_v57  ;;  %v11221_v55 = vpop.f32.mrb[174].mxu0  ;;  %v4795_v58 = vpop.f32.mrb[65].mxu1  ;;  %11846 = vmatmul.mubr.msk.f32.vlgmr.msra.gmra.mrb[170].mxu1 %vm504_vm0, %v13546_v47  ;;  %12267 = vmatprep.subr.bf16.mxu1 %v12266_v49  ;;  %v4805_v50 = vmul.f32 %v11476_v53, %v13215_v9 }
 0x24d   : > { %10226 = vst.msk [vmem:[%s13378_s10 + $0x30] sm:$0xff] %vm504_vm0, %v4724_v52  ;;  %v2017_v56 = vpop.f32.mrb[175].mxu0  ;;  %12269 = vmatpush3.bf16.msra.mxu1 %v12266_v49  ;;  %11852 = vmatprep.mubr.msk.f32.mxu1 %vm504_vm0, %v13473_v51  ;;  %v4804_v63 = vmul.f32 %v4795_v58, %v13234_v18 }
 0x24e   : > { %v12270_v59 = vpack.c.bf16 %v11221_v55, %v2017_v56 }
 0x24f   : > { %v11483_v61 = vpop.f32.mrb[66].mxu1 }
 0x250   : > { %v4884_v62 = vmul.f32 %v11483_v61, %v13217_v11  ;;  %v11224_v54 = vpop.f32.mrb[176].mxu0  ;;  %v4874_v60 = vpop.f32.mrb[67].mxu1  ;;  %11853 = vmatmul.mubr.msk.f32.vlgmr.msra.gmra.mrb[172].mxu1 %vm504_vm0, %v13546_v47  ;;  %12271 = vmatprep.subr.bf16.mxu1 %v12270_v59 }
 0x251   : > { %v4883_v0 = vmul.f32 %v4874_v60, %v13238_v20  ;;  %v2027_v1 = vpop.f32.mrb[177].mxu0  ;;  %12273 = vmatpush3.bf16.msra.mxu1 %v12270_v59  ;;  %11859 = vmatprep.mubr.msk.f32.mxu1 %vm504_vm0, %v13473_v51 }
 0x252   : > { %v4886_v4 = vadd.f32 %v4884_v62, %v4805_v50  ;;  %v12274_v5 = vpack.c.bf16 %v11224_v54, %v2027_v1 }
 0x253   : > { %v4885_v6 = vadd.f32 %v4883_v0, %v4804_v63  ;;  %v11490_v7 = vpop.f32.mrb[68].mxu1 }
 0x254   : > { %v4963_v8 = vmul.f32 %v11490_v7, %v13241_v23  ;;  %v11227_v10 = vpop.f32.mrb[178].mxu0  ;;  %v4953_v12 = vpop.f32.mrb[69].mxu1  ;;  %11860 = vmatmul.mubr.msk.f32.vlgmr.msra.gmra.mrb[174].mxu1 %vm504_vm0, %v13546_v47  ;;  %12275 = vmatprep.subr.bf16.mxu1 %v12274_v5 }
 0x255   : > { %v4962_v13 = vmul.f32 %v4953_v12, %v13243_v24  ;;  %v2037_v14 = vpop.f32.mrb[179].mxu0  ;;  %12277 = vmatpush3.bf16.msra.mxu1 %v12274_v5  ;;  %11866 = vmatprep.mubr.msk.f32.mxu1 %vm504_vm0, %v13473_v51 }
 0x256   : > { %v4965_v15 = vadd.f32 %v4963_v8, %v4886_v4  ;;  %v12278_v16 = vpack.c.bf16 %v11227_v10, %v2037_v14 }
 0x257   : > { %v4964_v17 = vadd.f32 %v4962_v13, %v4885_v6  ;;  %v11497_v19 = vpop.f32.mrb[70].mxu1 }
 0x258   : > { %v5042_v25 = vmul.f32 %v11497_v19, %v13267_v40  ;;  %v11230_v26 = vpop.f32.mrb[180].mxu0  ;;  %v5032_v27 = vpop.f32.mrb[71].mxu1  ;;  %11867 = vmatmul.mubr.msk.f32.vlgmr.msra.gmra.mrb[176].mxu1 %vm504_vm0, %v13546_v47  ;;  %12279 = vmatprep.subr.bf16.mxu1 %v12278_v16 }
 0x259   : > { %v5041_v28 = vmul.f32 %v5032_v27, %v13272_v44  ;;  %v2047_v29 = vpop.f32.mrb[181].mxu0  ;;  %12281 = vmatpush3.bf16.msra.mxu1 %v12278_v16  ;;  %11873 = vmatprep.mubr.msk.f32.mxu1 %vm504_vm0, %v13473_v51 }
 0x25a   : > { %v5044_v30 = vadd.f32 %v5042_v25, %v4965_v15  ;;  %v12282_v31 = vpack.c.bf16 %v11230_v26, %v2047_v29 }
 0x25b   : > { %v5043_v32 = vadd.f32 %v5041_v28, %v4964_v17  ;;  %v11504_v33 = vpop.f32.mrb[72].mxu1 }
 0x25c   : > { %v5121_v34 = vmul.f32 %v11504_v33, %v13294_v2  ;;  %v11233_v35 = vpop.f32.mrb[182].mxu0  ;;  %v5111_v36 = vpop.f32.mrb[73].mxu1  ;;  %11874 = vmatmul.mubr.msk.f32.vlgmr.msra.gmra.mrb[178].mxu1 %vm504_vm0, %v13546_v47  ;;  %12283 = vmatprep.subr.bf16.mxu1 %v12282_v31 }
 0x25d   : > { %v5120_v37 = vmul.f32 %v5111_v36, %v13296_v3  ;;  %v2057_v39 = vpop.f32.mrb[183].mxu0  ;;  %12285 = vmatpush3.bf16.msra.mxu1 %v12282_v31  ;;  %11880 = vmatprep.mubr.msk.f32.mxu1 %vm504_vm0, %v13473_v51 }
 0x25e   : > { %v5123_v41 = vadd.f32 %v5121_v34, %v5044_v30  ;;  %v12286_v43 = vpack.c.bf16 %v11233_v35, %v2057_v39 }
 0x25f   : > { %v5122_v46 = vadd.f32 %v5120_v37, %v5043_v32  ;;  %v11511_v57 = vpop.f32.mrb[74].mxu1 }
 0x260   : > { %v5200_v49 = vmul.f32 %v11511_v57, %v13318_v21  ;;  %v11236_v52 = vpop.f32.mrb[184].mxu0  ;;  %v5190_v53 = vpop.f32.mrb[75].mxu1  ;;  %11881 = vmatmul.mubr.msk.f32.vlgmr.msra.gmra.mrb[180].mxu1 %vm504_vm0, %v13546_v47  ;;  %12287 = vmatprep.subr.bf16.mxu1 %v12286_v43 }
 0x261   : > { %v5199_v55 = vmul.f32 %v5190_v53, %v13320_v22  ;;  %v2067_v58 = vpop.f32.mrb[185].mxu0  ;;  %12289 = vmatpush3.bf16.msra.mxu1 %v12286_v43  ;;  %11887 = vmatprep.mubr.msk.f32.mxu1 %vm504_vm0, %v13473_v51 }
 0x262   : > { %v5202_v56 = vadd.f32 %v5200_v49, %v5123_v41  ;;  %v12290_v59 = vpack.c.bf16 %v11236_v52, %v2067_v58 }
 0x263   : > { %v5201_v61 = vadd.f32 %v5199_v55, %v5122_v46  ;;  %v11518_v50 = vpop.f32.mrb[76].mxu1 }
 0x264   : > { %v5279_v62 = vmul.f32 %v11518_v50, %v13342_v38  ;;  %v11239_v54 = vpop.f32.mrb[186].mxu0  ;;  %v5269_v60 = vpop.f32.mrb[77].mxu1  ;;  %11888 = vmatmul.mubr.msk.f32.vlgmr.msra.gmra.mrb[182].mxu1 %vm504_vm0, %v13546_v47  ;;  %12291 = vmatprep.subr.bf16.mxu1 %v12290_v59 }
 0x265   : > { %v5278_v63 = vmul.f32 %v5269_v60, %v13347_v42  ;;  %v2077_v0 = vpop.f32.mrb[187].mxu0  ;;  %12293 = vmatpush3.bf16.msra.mxu1 %v12290_v59  ;;  %11894 = vmatprep.mubr.msk.f32.mxu1 %vm504_vm0, %v13473_v51 }
 0x266   : > { %v5281_v1 = vadd.f32 %v5279_v62, %v5202_v56  ;;  %v12294_v4 = vpack.c.bf16 %v11239_v54, %v2077_v0 }
 0x267   : > { %v5280_v5 = vadd.f32 %v5278_v63, %v5201_v61  ;;  %v11525_v6 = vpop.f32.mrb[78].mxu1 }
 0x268   : > { %v5358_v7 = vmul.f32 %v11525_v6, %v13363_v45  ;;  %v11242_v8 = vpop.f32.mrb[188].mxu0  ;;  %v5348_v10 = vpop.f32.mrb[79].mxu1  ;;  %11895 = vmatmul.mubr.msk.f32.vlgmr.msra.gmra.mrb[184].mxu1 %vm504_vm0, %v13546_v47  ;;  %12295 = vmatprep.subr.bf16.mxu1 %v12294_v4 }
 0x269   : > { %v5357_v12 = vmul.f32 %v5348_v10, %v13370_v48  ;;  %v2087_v13 = vpop.f32.mrb[189].mxu0  ;;  %12297 = vmatpush3.bf16.msra.mxu1 %v12294_v4  ;;  %11901 = vmatprep.mubr.msk.f32.mxu1 %vm504_vm0, %v13473_v51 }
 0x26a   : > { %v5360_v14 = vadd.f32 %v5358_v7, %v5281_v1  ;;  %v12298_v15 = vpack.c.bf16 %v11242_v8, %v2087_v13 }
 0x26b   : > { %v5359_v16 = vadd.f32 %v5357_v12, %v5280_v5  ;;  %v11532_v17 = vpop.f32.mrb[80].mxu1 }
 0x26c   : > { %10245 = vst.msk [vmem:[%s13378_s10 + $0x48] sm:$0xff] %vm504_vm0, %v5360_v14  ;;  %v11245_v19 = vpop.f32.mrb[190].mxu0  ;;  %v5430_v25 = vpop.f32.mrb[81].mxu1  ;;  %11902 = vmatmul.mubr.msk.f32.vlgmr.msra.gmra.mrb[186].mxu1 %vm504_vm0, %v13546_v47  ;;  %12299 = vmatprep.subr.bf16.mxu1 %v12298_v15  ;;  %v5440_v29 = vmul.f32 %v11532_v17, %v13215_v9 }
 0x26d   : > { %10244 = vst.msk [vmem:[%s13378_s10 + $0x40] sm:$0xff] %vm504_vm0, %v5359_v16  ;;  %v2097_v26 = vpop.f32.mrb[191].mxu0  ;;  %12301 = vmatpush3.bf16.msra.mxu1 %v12298_v15  ;;  %11908 = vmatprep.mubr.msk.f32.mxu1 %vm504_vm0, %v13473_v51  ;;  %v5439_v32 = vmul.f32 %v5430_v25, %v13234_v18 }
 0x26e   : > { %v12302_v27 = vpack.c.bf16 %v11245_v19, %v2097_v26 }
 0x26f   : > { %v11539_v28 = vpop.f32.mrb[82].mxu1 }
 0x270   : > { %v5519_v30 = vmul.f32 %v11539_v28, %v13217_v11  ;;  %v5509_v31 = vpop.f32.mrb[83].mxu1  ;;  %11909 = vmatmul.mubr.msk.f32.vlgmr.msra.gmra.mrb[188].mxu1 %vm504_vm0, %v13546_v47  ;;  %12303 = vmatprep.subr.bf16.mxu1 %v12302_v27 }
 0x271   : > { %v5518_v33 = vmul.f32 %v5509_v31, %v13238_v20  ;;  %12305 = vmatpush3.bf16.msra.mxu1 %v12302_v27  ;;  %11915 = vmatprep.mubr.msk.f32.mxu1 %vm504_vm0, %v13473_v51 }
 0x272   : > { %v5521_v34 = vadd.f32 %v5519_v30, %v5440_v29 }
 0x273   : > { %v5520_v35 = vadd.f32 %v5518_v33, %v5439_v32  ;;  %v11546_v36 = vpop.f32.mrb[84].mxu1 }
 0x274   : > { %v5598_v37 = vmul.f32 %v11546_v36, %v13241_v23  ;;  %v5588_v39 = vpop.f32.mrb[85].mxu1  ;;  %11916 = vmatmul.mubr.msk.f32.vlgmr.msra.gmra.mrb[190].mxu1 %vm504_vm0, %v13546_v47 }
 0x275   : > { %v5597_v41 = vmul.f32 %v5588_v39, %v13243_v24 }
 0x276   : > { %v5600_v43 = vadd.f32 %v5598_v37, %v5521_v34 }
 0x277   : > { %v5599_v46 = vadd.f32 %v5597_v41, %v5520_v35  ;;  %v11553_v57 = vpop.f32.mrb[86].mxu1 }
 0x278   : > { %v5677_v49 = vmul.f32 %v11553_v57, %v13267_v40  ;;  %v5667_v52 = vpop.f32.mrb[87].mxu1 }
 0x279   : > { %v5676_v53 = vmul.f32 %v5667_v52, %v13272_v44 }
 0x27a   : > { %v5679_v51 = vadd.f32 %v5677_v49, %v5600_v43 }
 0x27b   : > { %v5678_v55 = vadd.f32 %v5676_v53, %v5599_v46  ;;  %v11560_v58 = vpop.f32.mrb[88].mxu1 }
 0x27c   : > { %v5756_v56 = vmul.f32 %v11560_v58, %v13294_v2  ;;  %v5746_v59 = vpop.f32.mrb[89].mxu1 }
 0x27d   : > { %v5755_v61 = vmul.f32 %v5746_v59, %v13296_v3 }
 0x27e   : > { %v5758_v50 = vadd.f32 %v5756_v56, %v5679_v51 }
 0x27f   : > { %v5757_v47 = vadd.f32 %v5755_v61, %v5678_v55  ;;  %v11567_v62 = vpop.f32.mrb[90].mxu1 }
 0x280   : > { %v5835_v54 = vmul.f32 %v11567_v62, %v13318_v21  ;;  %v5825_v60 = vpop.f32.mrb[91].mxu1 }
 0x281   : > { %v5834_v63 = vmul.f32 %v5825_v60, %v13320_v22 }
 0x282   : > { %v5837_v0 = vadd.f32 %v5835_v54, %v5758_v50 }
 0x283   : > { %v5836_v1 = vadd.f32 %v5834_v63, %v5757_v47  ;;  %v11574_v4 = vpop.f32.mrb[92].mxu1 }
 0x284   : > { %v5914_v5 = vmul.f32 %v11574_v4, %v13342_v38  ;;  %v5904_v6 = vpop.f32.mrb[93].mxu1 }
 0x285   : > { %v5913_v7 = vmul.f32 %v5904_v6, %v13347_v42 }
 0x286   : > { %v5916_v8 = vadd.f32 %v5914_v5, %v5837_v0 }
 0x287   : > { %v5915_v10 = vadd.f32 %v5913_v7, %v5836_v1  ;;  %v11581_v12 = vpop.f32.mrb[94].mxu1 }
 0x288   : > { %v5993_v13 = vmul.f32 %v11581_v12, %v13363_v45  ;;  %v5983_v14 = vpop.f32.mrb[95].mxu1 }
 0x289   : > { %v5992_v15 = vmul.f32 %v5983_v14, %v13370_v48 }
 0x28a   : > { %v5995_v16 = vadd.f32 %v5993_v13, %v5916_v8 }
 0x28b   : > { %v5994_v17 = vadd.f32 %v5992_v15, %v5915_v10  ;;  %v11588_v19 = vpop.f32.mrb[96].mxu1 }
 0x28c   : > { %10263 = vst.msk [vmem:[%s13378_s10 + $0x58] sm:$0xff] %vm504_vm0, %v5995_v16  ;;  %v6065_v25 = vpop.f32.mrb[97].mxu1  ;;  %v6075_v27 = vmul.f32 %v11588_v19, %v13215_v9 }
 0x28d   : > { %10262 = vst.msk [vmem:[%s13378_s10 + $0x50] sm:$0xff] %vm504_vm0, %v5994_v17  ;;  %v6074_v30 = vmul.f32 %v6065_v25, %v13234_v18 }
 0x28f   : > { %v11595_v26 = vpop.f32.mrb[98].mxu1 }
 0x290   : > { %v6154_v28 = vmul.f32 %v11595_v26, %v13217_v11  ;;  %v6144_v29 = vpop.f32.mrb[99].mxu1 }
 0x291   : > { %v6153_v31 = vmul.f32 %v6144_v29, %v13238_v20 }
 0x292   : > { %v6156_v32 = vadd.f32 %v6154_v28, %v6075_v27 }
 0x293   : > { %v6155_v33 = vadd.f32 %v6153_v31, %v6074_v30  ;;  %v11602_v34 = vpop.f32.mrb[100].mxu1 }
 0x294   : > { %v6233_v35 = vmul.f32 %v11602_v34, %v13241_v23  ;;  %v6223_v36 = vpop.f32.mrb[101].mxu1 }
 0x295   : > { %v6232_v37 = vmul.f32 %v6223_v36, %v13243_v24 }
 0x296   : > { %v6235_v39 = vadd.f32 %v6233_v35, %v6156_v32 }
 0x297   : > { %v6234_v41 = vadd.f32 %v6232_v37, %v6155_v33  ;;  %v11609_v43 = vpop.f32.mrb[102].mxu1 }
 0x298   : > { %v6312_v46 = vmul.f32 %v11609_v43, %v13267_v40  ;;  %v6302_v57 = vpop.f32.mrb[103].mxu1 }
 0x299   : > { %v6311_v49 = vmul.f32 %v6302_v57, %v13272_v44 }
 0x29a   : > { %v6314_v52 = vadd.f32 %v6312_v46, %v6235_v39 }
 0x29b   : > { %v6313_v53 = vadd.f32 %v6311_v49, %v6234_v41  ;;  %v11616_v51 = vpop.f32.mrb[104].mxu1 }
 0x29c   : > { %v6391_v55 = vmul.f32 %v11616_v51, %v13294_v2  ;;  %v6381_v58 = vpop.f32.mrb[105].mxu1 }
 0x29d   : > { %v6390_v56 = vmul.f32 %v6381_v58, %v13296_v3 }
 0x29e   : > { %v6393_v59 = vadd.f32 %v6391_v55, %v6314_v52 }
 0x29f   : > { %v6392_v61 = vadd.f32 %v6390_v56, %v6313_v53  ;;  %v11623_v50 = vpop.f32.mrb[106].mxu1 }
 0x2a0   : > { %v6470_v47 = vmul.f32 %v11623_v50, %v13318_v21  ;;  %v6460_v62 = vpop.f32.mrb[107].mxu1 }
 0x2a1   : > { %v6469_v54 = vmul.f32 %v6460_v62, %v13320_v22 }
 0x2a2   : > { %v6472_v60 = vadd.f32 %v6470_v47, %v6393_v59 }
 0x2a3   : > { %v6471_v63 = vadd.f32 %v6469_v54, %v6392_v61  ;;  %v11630_v0 = vpop.f32.mrb[108].mxu1 }
 0x2a4   : > { %v6549_v1 = vmul.f32 %v11630_v0, %v13342_v38  ;;  %v6539_v4 = vpop.f32.mrb[109].mxu1 }
 0x2a5   : > { %v6548_v5 = vmul.f32 %v6539_v4, %v13347_v42 }
 0x2a6   : > { %v6551_v6 = vadd.f32 %v6549_v1, %v6472_v60 }
 0x2a7   : > { %v6550_v7 = vadd.f32 %v6548_v5, %v6471_v63  ;;  %v11637_v8 = vpop.f32.mrb[110].mxu1 }
 0x2a8   : > { %v6628_v10 = vmul.f32 %v11637_v8, %v13363_v45  ;;  %v6618_v12 = vpop.f32.mrb[111].mxu1 }
 0x2a9   : > { %v6627_v13 = vmul.f32 %v6618_v12, %v13370_v48 }
 0x2aa   : > { %v6630_v14 = vadd.f32 %v6628_v10, %v6551_v6 }
 0x2ab   : > { %v6629_v15 = vadd.f32 %v6627_v13, %v6550_v7  ;;  %v11644_v16 = vpop.f32.mrb[112].mxu1 }
 0x2ac   : > { %10281 = vst.msk [vmem:[%s13378_s10 + $0x68] sm:$0xff] %vm504_vm0, %v6630_v14  ;;  %v6700_v17 = vpop.f32.mrb[113].mxu1  ;;  %v6710_v25 = vmul.f32 %v11644_v16, %v13215_v9 }
 0x2ad   : > { %10280 = vst.msk [vmem:[%s13378_s10 + $0x60] sm:$0xff] %vm504_vm0, %v6629_v15  ;;  %v6709_v28 = vmul.f32 %v6700_v17, %v13234_v18 }
 0x2af   : > { %v11651_v19 = vpop.f32.mrb[114].mxu1 }
 0x2b0   : > { %v6789_v26 = vmul.f32 %v11651_v19, %v13217_v11  ;;  %v6779_v27 = vpop.f32.mrb[115].mxu1 }
 0x2b1   : > { %v6788_v29 = vmul.f32 %v6779_v27, %v13238_v20 }
 0x2b2   : > { %v6791_v30 = vadd.f32 %v6789_v26, %v6710_v25 }
 0x2b3   : > { %v6790_v31 = vadd.f32 %v6788_v29, %v6709_v28  ;;  %v11658_v32 = vpop.f32.mrb[116].mxu1 }
 0x2b4   : > { %v6868_v33 = vmul.f32 %v11658_v32, %v13241_v23  ;;  %v6858_v34 = vpop.f32.mrb[117].mxu1 }
 0x2b5   : > { %v6867_v35 = vmul.f32 %v6858_v34, %v13243_v24 }
 0x2b6   : > { %v6870_v36 = vadd.f32 %v6868_v33, %v6791_v30 }
 0x2b7   : > { %v6869_v37 = vadd.f32 %v6867_v35, %v6790_v31  ;;  %v11665_v39 = vpop.f32.mrb[118].mxu1 }
 0x2b8   : > { %v6947_v41 = vmul.f32 %v11665_v39, %v13267_v40  ;;  %v6937_v43 = vpop.f32.mrb[119].mxu1 }
 0x2b9   : > { %v6946_v46 = vmul.f32 %v6937_v43, %v13272_v44 }
 0x2ba   : > { %v6949_v57 = vadd.f32 %v6947_v41, %v6870_v36 }
 0x2bb   : > { %v6948_v49 = vadd.f32 %v6946_v46, %v6869_v37  ;;  %v11672_v52 = vpop.f32.mrb[120].mxu1 }
 0x2bc   : > { %v7026_v53 = vmul.f32 %v11672_v52, %v13294_v2  ;;  %v7016_v51 = vpop.f32.mrb[121].mxu1 }
 0x2bd   : > { %v7025_v55 = vmul.f32 %v7016_v51, %v13296_v3 }
 0x2be   : > { %v7028_v58 = vadd.f32 %v7026_v53, %v6949_v57 }
 0x2bf   : > { %v7027_v56 = vadd.f32 %v7025_v55, %v6948_v49  ;;  %v11679_v59 = vpop.f32.mrb[122].mxu1 }
 0x2c0   : > { %v7105_v61 = vmul.f32 %v11679_v59, %v13318_v21  ;;  %v7095_v50 = vpop.f32.mrb[123].mxu1 }
 0x2c1   : > { %v7104_v47 = vmul.f32 %v7095_v50, %v13320_v22 }
 0x2c2   : > { %v7107_v62 = vadd.f32 %v7105_v61, %v7028_v58 }
 0x2c3   : > { %v7106_v54 = vadd.f32 %v7104_v47, %v7027_v56  ;;  %v11686_v60 = vpop.f32.mrb[124].mxu1 }
 0x2c4   : > { %v7184_v63 = vmul.f32 %v11686_v60, %v13342_v38  ;;  %v7174_v0 = vpop.f32.mrb[125].mxu1 }
 0x2c5   : > { %v7183_v1 = vmul.f32 %v7174_v0, %v13347_v42 }
 0x2c6   : > { %v7186_v4 = vadd.f32 %v7184_v63, %v7107_v62 }
 0x2c7   : > { %v7185_v5 = vadd.f32 %v7183_v1, %v7106_v54  ;;  %v11693_v6 = vpop.f32.mrb[126].mxu1 }
 0x2c8   : > { %v7263_v7 = vmul.f32 %v11693_v6, %v13363_v45  ;;  %v7253_v8 = vpop.f32.mrb[127].mxu1 }
 0x2c9   : > { %v7262_v10 = vmul.f32 %v7253_v8, %v13370_v48 }
 0x2ca   : > { %v7265_v12 = vadd.f32 %v7263_v7, %v7186_v4 }
 0x2cb   : > { %v7264_v13 = vadd.f32 %v7262_v10, %v7185_v5  ;;  %v11700_v14 = vpop.f32.mrb[128].mxu1 }
 0x2cc   : > { %10299 = vst.msk [vmem:[%s13378_s10 + $0x78] sm:$0xff] %vm504_vm0, %v7265_v12  ;;  %v7335_v15 = vpop.f32.mrb[129].mxu1  ;;  %v7345_v17 = vmul.f32 %v11700_v14, %v13215_v9 }
 0x2cd   : > { %10298 = vst.msk [vmem:[%s13378_s10 + $0x70] sm:$0xff] %vm504_vm0, %v7264_v13  ;;  %v7344_v26 = vmul.f32 %v7335_v15, %v13234_v18 }
 0x2cf   : > { %v11707_v16 = vpop.f32.mrb[130].mxu1 }
 0x2d0   : > { %v7424_v19 = vmul.f32 %v11707_v16, %v13217_v11  ;;  %v7414_v25 = vpop.f32.mrb[131].mxu1 }
 0x2d1   : > { %v7423_v27 = vmul.f32 %v7414_v25, %v13238_v20 }
 0x2d2   : > { %v7426_v28 = vadd.f32 %v7424_v19, %v7345_v17 }
 0x2d3   : > { %v7425_v29 = vadd.f32 %v7423_v27, %v7344_v26  ;;  %v11714_v30 = vpop.f32.mrb[132].mxu1 }
 0x2d4   : > { %v7503_v31 = vmul.f32 %v11714_v30, %v13241_v23  ;;  %v7493_v32 = vpop.f32.mrb[133].mxu1 }
 0x2d5   : > { %v7502_v33 = vmul.f32 %v7493_v32, %v13243_v24 }
 0x2d6   : > { %v7505_v34 = vadd.f32 %v7503_v31, %v7426_v28 }
 0x2d7   : > { %v7504_v35 = vadd.f32 %v7502_v33, %v7425_v29  ;;  %v11721_v36 = vpop.f32.mrb[134].mxu1 }
 0x2d8   : > { %v7582_v37 = vmul.f32 %v11721_v36, %v13267_v40  ;;  %v7572_v39 = vpop.f32.mrb[135].mxu1 }
 0x2d9   : > { %v7581_v41 = vmul.f32 %v7572_v39, %v13272_v44 }
 0x2da   : > { %v7584_v43 = vadd.f32 %v7582_v37, %v7505_v34 }
 0x2db   : > { %v7583_v46 = vadd.f32 %v7581_v41, %v7504_v35  ;;  %v11728_v57 = vpop.f32.mrb[136].mxu1 }
 0x2dc   : > { %v7661_v49 = vmul.f32 %v11728_v57, %v13294_v2  ;;  %v7651_v52 = vpop.f32.mrb[137].mxu1 }
 0x2dd   : > { %v7660_v53 = vmul.f32 %v7651_v52, %v13296_v3 }
 0x2de   : > { %v7663_v51 = vadd.f32 %v7661_v49, %v7584_v43 }
 0x2df   : > { %v7662_v55 = vadd.f32 %v7660_v53, %v7583_v46  ;;  %v11735_v58 = vpop.f32.mrb[138].mxu1 }
 0x2e0   : > { %v7740_v56 = vmul.f32 %v11735_v58, %v13318_v21  ;;  %v7730_v59 = vpop.f32.mrb[139].mxu1 }
 0x2e1   : > { %v7739_v61 = vmul.f32 %v7730_v59, %v13320_v22 }
 0x2e2   : > { %v7742_v50 = vadd.f32 %v7740_v56, %v7663_v51 }
 0x2e3   : > { %v7741_v47 = vadd.f32 %v7739_v61, %v7662_v55  ;;  %v11742_v62 = vpop.f32.mrb[140].mxu1 }
 0x2e4   : > { %v7819_v54 = vmul.f32 %v11742_v62, %v13342_v38  ;;  %v7809_v60 = vpop.f32.mrb[141].mxu1 }
 0x2e5   : > { %v7818_v63 = vmul.f32 %v7809_v60, %v13347_v42 }
 0x2e6   : > { %v7821_v0 = vadd.f32 %v7819_v54, %v7742_v50 }
 0x2e7   : > { %v7820_v1 = vadd.f32 %v7818_v63, %v7741_v47  ;;  %v11749_v4 = vpop.f32.mrb[142].mxu1 }
 0x2e8   : > { %v7898_v5 = vmul.f32 %v11749_v4, %v13363_v45  ;;  %v7888_v6 = vpop.f32.mrb[143].mxu1 }
 0x2e9   : > { %v7897_v7 = vmul.f32 %v7888_v6, %v13370_v48 }
 0x2ea   : > { %v7900_v8 = vadd.f32 %v7898_v5, %v7821_v0 }
 0x2eb   : > { %v7899_v10 = vadd.f32 %v7897_v7, %v7820_v1  ;;  %v11756_v12 = vpop.f32.mrb[144].mxu1 }
 0x2ec   : > { %10317 = vst.msk [vmem:[%s13378_s10 + $0x88] sm:$0xff] %vm504_vm0, %v7900_v8  ;;  %v7970_v13 = vpop.f32.mrb[145].mxu1  ;;  %v7980_v15 = vmul.f32 %v11756_v12, %v13215_v9 }
 0x2ed   : > { %10316 = vst.msk [vmem:[%s13378_s10 + $0x80] sm:$0xff] %vm504_vm0, %v7899_v10  ;;  %v7979_v19 = vmul.f32 %v7970_v13, %v13234_v18 }
 0x2ef   : > { %v11763_v14 = vpop.f32.mrb[146].mxu1 }
 0x2f0   : > { %v8059_v16 = vmul.f32 %v11763_v14, %v13217_v11  ;;  %v8049_v17 = vpop.f32.mrb[147].mxu1 }
 0x2f1   : > { %v8058_v25 = vmul.f32 %v8049_v17, %v13238_v20 }
 0x2f2   : > { %v8061_v26 = vadd.f32 %v8059_v16, %v7980_v15 }
 0x2f3   : > { %v8060_v27 = vadd.f32 %v8058_v25, %v7979_v19  ;;  %v11770_v28 = vpop.f32.mrb[148].mxu1 }
 0x2f4   : > { %v8138_v29 = vmul.f32 %v11770_v28, %v13241_v23  ;;  %v8128_v30 = vpop.f32.mrb[149].mxu1 }
 0x2f5   : > { %v8137_v31 = vmul.f32 %v8128_v30, %v13243_v24 }
 0x2f6   : > { %v8140_v32 = vadd.f32 %v8138_v29, %v8061_v26 }
 0x2f7   : > { %v8139_v33 = vadd.f32 %v8137_v31, %v8060_v27  ;;  %v11777_v34 = vpop.f32.mrb[150].mxu1 }
 0x2f8   : > { %v8217_v35 = vmul.f32 %v11777_v34, %v13267_v40  ;;  %v8207_v36 = vpop.f32.mrb[151].mxu1 }
 0x2f9   : > { %v8216_v37 = vmul.f32 %v8207_v36, %v13272_v44 }
 0x2fa   : > { %v8219_v39 = vadd.f32 %v8217_v35, %v8140_v32 }
 0x2fb   : > { %v8218_v41 = vadd.f32 %v8216_v37, %v8139_v33  ;;  %v11784_v43 = vpop.f32.mrb[152].mxu1 }
 0x2fc   : > { %v8296_v46 = vmul.f32 %v11784_v43, %v13294_v2  ;;  %v8286_v57 = vpop.f32.mrb[153].mxu1 }
 0x2fd   : > { %v8295_v49 = vmul.f32 %v8286_v57, %v13296_v3 }
 0x2fe   : > { %v8298_v52 = vadd.f32 %v8296_v46, %v8219_v39 }
 0x2ff   : > { %v8297_v53 = vadd.f32 %v8295_v49, %v8218_v41  ;;  %v11791_v51 = vpop.f32.mrb[154].mxu1 }
 0x300   : > { %v8375_v55 = vmul.f32 %v11791_v51, %v13318_v21  ;;  %v8365_v58 = vpop.f32.mrb[155].mxu1 }
 0x301   : > { %v8374_v56 = vmul.f32 %v8365_v58, %v13320_v22 }
 0x302   : > { %v8377_v59 = vadd.f32 %v8375_v55, %v8298_v52 }
 0x303   : > { %v8376_v61 = vadd.f32 %v8374_v56, %v8297_v53  ;;  %v11798_v50 = vpop.f32.mrb[156].mxu1 }
 0x304   : > { %v8454_v47 = vmul.f32 %v11798_v50, %v13342_v38  ;;  %v8444_v62 = vpop.f32.mrb[157].mxu1 }
 0x305   : > { %v8453_v54 = vmul.f32 %v8444_v62, %v13347_v42 }
 0x306   : > { %v8456_v60 = vadd.f32 %v8454_v47, %v8377_v59 }
 0x307   : > { %v8455_v63 = vadd.f32 %v8453_v54, %v8376_v61  ;;  %v11805_v0 = vpop.f32.mrb[158].mxu1 }
 0x308   : > { %v8533_v1 = vmul.f32 %v11805_v0, %v13363_v45  ;;  %v8523_v4 = vpop.f32.mrb[159].mxu1 }
 0x309   : > { %v8532_v5 = vmul.f32 %v8523_v4, %v13370_v48 }
 0x30a   : > { %v8535_v6 = vadd.f32 %v8533_v1, %v8456_v60 }
 0x30b   : > { %v8534_v7 = vadd.f32 %v8532_v5, %v8455_v63  ;;  %v11812_v8 = vpop.f32.mrb[160].mxu1 }
 0x30c   : > { %10335 = vst.msk [vmem:[%s13378_s10 + $0x98] sm:$0xff] %vm504_vm0, %v8535_v6  ;;  %v8605_v10 = vpop.f32.mrb[161].mxu1  ;;  %v8615_v13 = vmul.f32 %v11812_v8, %v13215_v9 }
 0x30d   : > { %10334 = vst.msk [vmem:[%s13378_s10 + $0x90] sm:$0xff] %vm504_vm0, %v8534_v7  ;;  %v8614_v16 = vmul.f32 %v8605_v10, %v13234_v18 }
 0x30f   : > { %v11819_v12 = vpop.f32.mrb[162].mxu1 }
 0x310   : > { %v8694_v14 = vmul.f32 %v11819_v12, %v13217_v11  ;;  %v8684_v15 = vpop.f32.mrb[163].mxu1 }
 0x311   : > { %v8693_v17 = vmul.f32 %v8684_v15, %v13238_v20 }
 0x312   : > { %v8696_v19 = vadd.f32 %v8694_v14, %v8615_v13 }
 0x313   : > { %v8695_v25 = vadd.f32 %v8693_v17, %v8614_v16  ;;  %v11826_v26 = vpop.f32.mrb[164].mxu1 }
 0x314   : > { %v8773_v27 = vmul.f32 %v11826_v26, %v13241_v23  ;;  %v8763_v28 = vpop.f32.mrb[165].mxu1 }
 0x315   : > { %v8772_v29 = vmul.f32 %v8763_v28, %v13243_v24 }
 0x316   : > { %v8775_v30 = vadd.f32 %v8773_v27, %v8696_v19 }
 0x317   : > { %v8774_v31 = vadd.f32 %v8772_v29, %v8695_v25  ;;  %v11833_v32 = vpop.f32.mrb[166].mxu1 }
 0x318   : > { %v8852_v33 = vmul.f32 %v11833_v32, %v13267_v40  ;;  %v8842_v34 = vpop.f32.mrb[167].mxu1 }
 0x319   : > { %v8851_v35 = vmul.f32 %v8842_v34, %v13272_v44 }
 0x31a   : > { %v8854_v36 = vadd.f32 %v8852_v33, %v8775_v30 }
 0x31b   : > { %v8853_v37 = vadd.f32 %v8851_v35, %v8774_v31  ;;  %v11840_v39 = vpop.f32.mrb[168].mxu1 }
 0x31c   : > { %v8931_v41 = vmul.f32 %v11840_v39, %v13294_v2  ;;  %v8921_v43 = vpop.f32.mrb[169].mxu1 }
 0x31d   : > { %v8930_v46 = vmul.f32 %v8921_v43, %v13296_v3 }
 0x31e   : > { %v8933_v57 = vadd.f32 %v8931_v41, %v8854_v36 }
 0x31f   : > { %v8932_v49 = vadd.f32 %v8930_v46, %v8853_v37  ;;  %v11847_v52 = vpop.f32.mrb[170].mxu1 }
 0x320   : > { %v9010_v53 = vmul.f32 %v11847_v52, %v13318_v21  ;;  %v9000_v51 = vpop.f32.mrb[171].mxu1 }
 0x321   : > { %v9009_v55 = vmul.f32 %v9000_v51, %v13320_v22 }
 0x322   : > { %v9012_v58 = vadd.f32 %v9010_v53, %v8933_v57 }
 0x323   : > { %v9011_v56 = vadd.f32 %v9009_v55, %v8932_v49  ;;  %v11854_v59 = vpop.f32.mrb[172].mxu1 }
 0x324   : > { %v9089_v61 = vmul.f32 %v11854_v59, %v13342_v38  ;;  %v9079_v50 = vpop.f32.mrb[173].mxu1 }
 0x325   : > { %v9088_v47 = vmul.f32 %v9079_v50, %v13347_v42 }
 0x326   : > { %v9091_v62 = vadd.f32 %v9089_v61, %v9012_v58 }
 0x327   : > { %v9090_v54 = vadd.f32 %v9088_v47, %v9011_v56  ;;  %v11861_v60 = vpop.f32.mrb[174].mxu1 }
 0x328   : > { %v9168_v63 = vmul.f32 %v11861_v60, %v13363_v45  ;;  %v9158_v0 = vpop.f32.mrb[175].mxu1 }
 0x329   : > { %v9167_v1 = vmul.f32 %v9158_v0, %v13370_v48 }
 0x32a   : > { %v9170_v4 = vadd.f32 %v9168_v63, %v9091_v62 }
 0x32b   : > { %v9169_v5 = vadd.f32 %v9167_v1, %v9090_v54  ;;  %v11868_v6 = vpop.f32.mrb[176].mxu1 }
 0x32c   : > { %10353 = vst.msk [vmem:[%s13378_s10 + $0xa8] sm:$0xff] %vm504_vm0, %v9170_v4  ;;  %v9240_v7 = vpop.f32.mrb[177].mxu1  ;;  %v9250_v10 = vmul.f32 %v11868_v6, %v13215_v9 }
 0x32d   : > { %10352 = vst.msk [vmem:[%s13378_s10 + $0xa0] sm:$0xff] %vm504_vm0, %v9169_v5  ;;  %v9249_v14 = vmul.f32 %v9240_v7, %v13234_v18 }
 0x32f   : > { %v11875_v8 = vpop.f32.mrb[178].mxu1 }
 0x330   : > { %v9329_v12 = vmul.f32 %v11875_v8, %v13217_v11  ;;  %v9319_v13 = vpop.f32.mrb[179].mxu1 }
 0x331   : > { %v9328_v15 = vmul.f32 %v9319_v13, %v13238_v20 }
 0x332   : > { %v9331_v16 = vadd.f32 %v9329_v12, %v9250_v10 }
 0x333   : > { %v9330_v17 = vadd.f32 %v9328_v15, %v9249_v14  ;;  %v11882_v19 = vpop.f32.mrb[180].mxu1 }
 0x334   : > { %v9408_v25 = vmul.f32 %v11882_v19, %v13241_v23  ;;  %v9398_v26 = vpop.f32.mrb[181].mxu1 }
 0x335   : > { %v9407_v27 = vmul.f32 %v9398_v26, %v13243_v24 }
 0x336   : > { %v9410_v28 = vadd.f32 %v9408_v25, %v9331_v16 }
 0x337   : > { %v9409_v29 = vadd.f32 %v9407_v27, %v9330_v17  ;;  %v11889_v30 = vpop.f32.mrb[182].mxu1 }
 0x338   : > { %v9487_v9 = vmul.f32 %v11889_v30, %v13267_v40  ;;  %v9477_v31 = vpop.f32.mrb[183].mxu1 }
 0x339   : > { %v9486_v11 = vmul.f32 %v9477_v31, %v13272_v44 }
 0x33a   : > { %v9489_v32 = vadd.f32 %v9487_v9, %v9410_v28 }
 0x33b   : > { %v9488_v18 = vadd.f32 %v9486_v11, %v9409_v29  ;;  %v11896_v33 = vpop.f32.mrb[184].mxu1 }
 0x33c   : > { %v9566_v20 = vmul.f32 %v11896_v33, %v13294_v2  ;;  %v9556_v34 = vpop.f32.mrb[185].mxu1 }
 0x33d   : > { %v9565_v23 = vmul.f32 %v9556_v34, %v13296_v3 }
 0x33e   : > { %v9568_v35 = vadd.f32 %v9566_v20, %v9489_v32 }
 0x33f   : > { %v9567_v24 = vadd.f32 %v9565_v23, %v9488_v18  ;;  %v11903_v36 = vpop.f32.mrb[186].mxu1 }
 0x340   : > { %v9645_v37 = vmul.f32 %v11903_v36, %v13318_v21  ;;  %v9635_v39 = vpop.f32.mrb[187].mxu1 }
 0x341   : > { %v9644_v40 = vmul.f32 %v9635_v39, %v13320_v22 }
 0x342   : > { %v9647_v41 = vadd.f32 %v9645_v37, %v9568_v35 }
 0x343   : > { %v9646_v44 = vadd.f32 %v9644_v40, %v9567_v24  ;;  %v11910_v43 = vpop.f32.mrb[188].mxu1 }
 0x344   : > { %v9724_v46 = vmul.f32 %v11910_v43, %v13342_v38  ;;  %v9714_v2 = vpop.f32.mrb[189].mxu1 }
 0x345   : > { %v9723_v3 = vmul.f32 %v9714_v2, %v13347_v42 }
 0x346   : > { %v9726_v57 = vadd.f32 %v9724_v46, %v9647_v41 }
 0x347   : > { %v9725_v49 = vadd.f32 %v9723_v3, %v9646_v44  ;;  %v11917_v52 = vpop.f32.mrb[190].mxu1 }
 0x348   : > { %v9803_v21 = vmul.f32 %v11917_v52, %v13363_v45  ;;  %v9793_v22 = vpop.f32.mrb[191].mxu1 }
 0x349   : > { %v9802_v53 = vmul.f32 %v9793_v22, %v13370_v48 }
 0x34a   : > { %v9805_v51 = vadd.f32 %v9803_v21, %v9726_v57 }
 0x34b   : > { %v9804_v38 = vadd.f32 %v9802_v53, %v9725_v49 }
 0x34c   : > { %10371 = vst.msk [vmem:[%s13378_s10 + $0xb8] sm:$0xff] %vm504_vm0, %v9805_v51 }
 0x34d   : > { %10370 = vst.msk [vmem:[%s13378_s10 + $0xb0] sm:$0xff] %vm504_vm0, %v9804_v38 }
 0x34e   : > { %12383 = shalt.err (!%p12380_p5)
}
 0x34f   : > { %s12384_s8 = scalar_lea.hbm %s13753_s29, 3072  ;;  %s12388_s11 = scalar_lea.hbm %s13813_s4, 6144 }
 0x350   : > { %p12385_p6 = scmp.ne.s32.totalorder %s13753_s29, %s12384_s8  ;;  %p12389_p10 = scmp.lt.u32.totalorder %s13753_s29, %s13813_s4 }
 0x351   : > { %p12390_p11 = scmp.lt.u32.totalorder %s12388_s11, %s12384_s8  ;;  %p12392_p13 = scmp.lt.u32.totalorder %s12384_s8, %s13753_s29 }
 0x352   : > { %p12386_p7 = pnand %p12385_p6, %p12518_p4 }
 0x353   : > { %p12391_p12 = por %p12390_p11, %p12389_p10 }
 0x354   : > { %p12387_p9 = pneg %p12386_p7 }
 0x355   : > { %p12393_p0 = por %p12392_p13, %p12391_p12 }
 0x357   : > { %p12394_p1 = pnand %p12393_p0, %p12387_p9 }
 0x359   : > { %12397 = shalt.err (!%p12394_p1)
}
 0x35a   : > { %s12451_s14 = smov 128   ;;  %s12452_s21 = smov 8  }
 0x35b   : > { %12309 = dma.vmem_to_hbm [thread:$0]  (%p12518_p4), %s13755_s22, 3072, %s13753_s29, %s13763_s18, %s12451_s14, %s12451_s14, %s12452_s21  }
 0x35c PF: > { %p12315_p2 = scmp.ge.s32.totalorder %s12448_s20, 2  ;;  %s9841_s24 = sand.u32 1, %s12428_s15  }
 0x35d   : > { %s9842_s26 = scalar_lea.sflag [#allocation3], %s9841_s24 }
 0x35e   : > { %p12312_p3 = pnand %p12315_p2, %p12525_p8 }
 0x360   : > { %12423 = dma.done.wait (!%p12312_p3), %s9842_s26, 3072  }
 0x361   : > { %12425 = vsyncadd (!%p12312_p3), %s9842_s26, 4294964224  ;;  %s17_s20 = sadd.s32 1, %s12448_s20   ;;  %s13816_s15 = smov %s12432_s16 }
 0x362   : > { %p14_p5 = scmp.ge.s32.totalorder %s17_s20, 4   ;;  %s13817_s16 = smov %s12436_s17 }
 0x363   : > { %s13818_s17 = smov %s12531_s28  ;;  %s13819_s18 = smov %s12444_s19 }
 0x364   : > { %s13820_s19 = smov %s13822_s23  ;;  %16 = sbr.rel (!%p14_p5) target bundleno = 4 (0x4), region = 91 }
 0x36b   :  { %9847 = vsyncpa [#allocation3], 1 }
 0x36c   :  { %9849 = vsyncpa [#allocation3 + $0x1], 1 }

</bundles_post_ra>
